<compile_context>
chip_gen: v5e
topology: v5e:2x2
jax: 0.10.0
libtpu: 0.0.40
codegen_flags: <defaults>
</compile_context>

<pallas_src>
from functools import partial

import jax
import jax.numpy as jnp
from jax.experimental import pallas as pl
from jax.experimental.pallas import tpu as pltpu


def _hardswish_x6(x):
    # 6 * hardswish(x); the 1/6 is folded into downstream weights host-side.
    return x * jnp.clip(x + 3.0, 0.0, 6.0)


def _hardswish(x):
    return x * jnp.clip(x + 3.0, 0.0, 6.0) * (1.0 / 6.0)


def _hardsigmoid(x):
    return jnp.clip(x * (1.0 / 6.0) + 0.5, 0.0, 1.0)


def inverted_residual_kernel(
    x_ref,                      # (1, Cin, HW)             input, channels-major
    w1t_ref, b1c_ref,           # (Cexp, Cin), (Cexp, 1)   expand 1x1 (BN folded)
    wdw_ref, b2c_ref,           # (Cexp, 9),  (Cexp, 1)    dw 3x3 (BN + HS1 1/6 folded)
    wse1_ref, bse1_ref,         # (Cexp, Csq), (1, Csq)    SE fc1 (HS2 1/6 folded)
    wse2t_ref, bse2c_ref,       # (Cexp, Csq), (Cexp, 1)   SE fc2
    w3t_ref, b3c_ref,           # (Cout, Cexp), (Cout, 1)  project 1x1 (BN + HS2 1/6 folded)
    masks_ref,                  # (8, HW) float 0/1        per-tap border/wrap masks
    out_ref,                    # (1, Cout, HW)
    *, width,
):
    hw = x_ref.shape[2]
    x = x_ref[0]                                   # (Cin, HW), lane-dense load

    # ---- 1) 1x1 expand conv + folded-BN bias + hardswish (x6) ---------------
    a = jnp.dot(w1t_ref[...], x, preferred_element_type=jnp.float32) + b1c_ref[...]
    a = _hardswish_x6(a)                           # (Cexp, HW) == 6 * true activation

    # ---- 2) 3x3 depthwise conv (stride 1, pad 1) via XLU lane rolls ----------
    # Tap (dy, dx) of output pixel p needs input pixel p + dy*W + dx, i.e. a
    # circular roll of the flat lane axis by -(dy*W + dx); the per-tap mask
    # zeroes lanes whose neighbor falls outside the image (this also cancels
    # the roll wrap-around).  Rolls run on the XLU slot, masks/weights on VPU;
    # nothing touches VMEM scratch and every load stays lane-aligned.
    wdw = wdw_ref[...]                             # (Cexp, 9), hoisted once
    acc = a * wdw[:, 4:5]                          # center tap: no mask needed
    mi = 0
    for dy in (-1, 0, 1):                          # static unrolled 8-tap loop
        for dx in (-1, 0, 1):
            if dy == 0 and dx == 0:
                continue
            t = 3 * (dy + 1) + (dx + 1)
            shift = (-(dy * width + dx)) % hw      # nonnegative circular shift
            rolled = pltpu.roll(a, shift, axis=1)  # (Cexp, HW)
            acc = acc + (rolled * masks_ref[mi:mi + 1, :]) * wdw[:, t:t + 1]
            mi += 1
    a2 = _hardswish_x6(acc + b2c_ref[...])         # (Cexp, HW) == 6 * true activation

    # ---- 3) squeeze-excitation (tiny; VPU broadcast-multiply-reduce) ---------
    pooled = jnp.mean(a2, axis=1, keepdims=True)                      # (Cexp, 1)
    se1 = jnp.sum(wse1_ref[...] * pooled, axis=0, keepdims=True)      # (1, Csq)
    se1 = jnp.maximum(se1 + bse1_ref[...], 0.0)                       # ReLU
    se2 = jnp.sum(wse2t_ref[...] * se1, axis=1, keepdims=True)        # (Cexp, 1)
    scale = _hardsigmoid(se2 + bse2c_ref[...])                        # nn.Hardsigmoid
    a3 = a2 * scale                                                   # (Cexp, HW)

    # ---- 4) 1x1 project conv + folded-BN bias (no activation) ----------------
    y = jnp.dot(w3t_ref[...], a3, preferred_element_type=jnp.float32) + b3c_ref[...]

    # ---- 5) residual connection (stride==1 and Cin==Cout) --------------------
    out_ref[0] = (x + y).astype(out_ref.dtype)


def _const_spec(a):
    nd = a.ndim
    return pl.BlockSpec(a.shape, lambda b, _nd=nd: (0,) * _nd)


def inverted_residual(x_nchw, p):
    """x_nchw: (N, Cin, H, W) float32 (native PyTorch layout). Returns (N, Cout, H, W)."""
    N, Cin, H, W = x_nchw.shape
    HW = H * W
    Cexp = p["w1"].shape[1]
    Cout = p["w3"].shape[1]
    assert Cin == Cout, "this config uses the residual connection"
    assert H >= 2 and W >= 2, "3x3 depthwise border masks assume H,W >= 2"

    sixth = 1.0 / 6.0
    # Fold eval-mode BatchNorm scales + hardswish 1/6 constants into the conv
    # weights (host side, once).
    w1t = (p["w1"] * p["s1"]).T                             # (Cexp, Cin)
    b1c = p["b1"].T                                         # (Cexp, 1)
    wdw9 = (p["wdw"] * p["s2"]).reshape(9, Cexp).T * sixth  # (Cexp, 9); HS1 1/6 folded
    b2c = p["b2"].T                                         # (Cexp, 1)
    wse1 = p["wse1"] * sixth                                # (Cexp, Csq); HS2 1/6 folded
    bse1 = p["bse1"]                                        # (1, Csq)
    wse2t = p["wse2"].T                                     # (Cexp, Csq)
    bse2c = p["bse2"].T                                     # (Cexp, 1)
    w3t = (p["w3"] * p["s3"]).T * sixth                     # (Cout, Cexp); HS2 1/6 folded
    b3c = p["b3"].T                                         # (Cout, 1)

    # Per-tap masks over the flattened pixel axis: 1 where the (dy,dx) neighbor
    # is inside the image (zeroes the conv border AND the roll wrap-around).
    y_of = jnp.arange(HW, dtype=jnp.int32) // W
    x_of = jnp.arange(HW, dtype=jnp.int32) % W
    mask_rows = []
    for dy in (-1, 0, 1):
        for dx in (-1, 0, 1):
            if dy == 0 and dx == 0:
                continue
            m = ((y_of + dy >= 0) & (y_of + dy < H) &
                 (x_of + dx >= 0) & (x_of + dx < W))
            mask_rows.append(m.astype(jnp.float32))
    tap_masks = jnp.stack(mask_rows, axis=0)                # (8, HW)

    x_flat = x_nchw.reshape(N, Cin, HW)                     # channels-major, lane-dense

    params = [w1t, b1c, wdw9, b2c, wse1, bse1, wse2t, bse2c, w3t, b3c, tap_masks]

    in_specs = [pl.BlockSpec((1, Cin, HW), lambda b: (b, 0, 0))]
    in_specs += [_const_spec(a) for a in params]

    out_flat = pl.pallas_call(
        partial(inverted_residual_kernel, width=W),
        out_shape=jax.ShapeDtypeStruct((N, Cout, HW), x_nchw.dtype),
        grid=(N,),
        in_specs=in_specs,
        out_specs=pl.BlockSpec((1, Cout, HW), lambda b: (b, 0, 0)),
        compiler_params=pltpu.CompilerParams(
            dimension_semantics=("parallel",)),
    )(x_flat, *params)
    return out_flat.reshape(N, Cout, H, W)


# ---------------- pure-JAX reference (for correctness check) ----------------
def ref_forward(x, p):
    """x: (N, H, W, Cin) NHWC; uses the unfolded BN params -> independent check."""
    N, H, W, Cin = x.shape
    a = jnp.einsum("nhwc,co->nhwo", x, p["w1"]) * p["s1"] + p["b1"]
    a = _hardswish(a)
    ap = jnp.pad(a, ((0, 0), (1, 1), (1, 1), (0, 0)))
    acc = jnp.zeros_like(a)
    for dy in range(3):
        for dx in range(3):
            acc = acc + ap[:, dy:dy + H, dx:dx + W, :] * p["wdw"][dy, dx]
    a2 = _hardswish(acc * p["s2"] + p["b2"])
    pooled = jnp.mean(a2, axis=(1, 2))                           # (N, Cexp)
    se = jnp.maximum(pooled @ p["wse1"] + p["bse1"], 0.0)
    se = _hardsigmoid(se @ p["wse2"] + p["bse2"])
    a3 = a2 * se[:, None, None, :]
    a4 = jnp.einsum("nhwc,co->nhwo", a3, p["w3"]) * p["s3"] + p["b3"]
    return x + a4


def make_params(key, cin, cexp, cout, csq, eps=1e-5):
    keys = jax.random.split(key, 24)
    it = iter(keys)

    def bn_fold(C):
        gamma = 1.0 + 0.1 * jax.random.normal(next(it), (C,), jnp.float32)
        beta = 0.1 * jax.random.normal(next(it), (C,), jnp.float32)
        mean = 0.1 * jax.random.normal(next(it), (C,), jnp.float32)
        var = jnp.abs(1.0 + 0.1 * jax.random.normal(next(it), (C,), jnp.float32))
        scale = gamma / jnp.sqrt(var + eps)          # eval-mode BatchNorm2d folding
        bias = beta - mean * scale
        return scale[None, :], bias[None, :]

    p = {}
    # PyTorch Conv2d weight (Cout, Cin, 1, 1) -> stored here transposed as (Cin, Cout).
    p["w1"] = 0.1 * jax.random.normal(next(it), (cin, cexp), jnp.float32)
    p["s1"], p["b1"] = bn_fold(cexp)
    # Depthwise Conv2d weight (Cexp, 1, 3, 3) -> stored as (3, 3, Cexp).
    p["wdw"] = 0.1 * jax.random.normal(next(it), (3, 3, cexp), jnp.float32)
    p["s2"], p["b2"] = bn_fold(cexp)
    p["wse1"] = 0.1 * jax.random.normal(next(it), (cexp, csq), jnp.float32)
    p["bse1"] = 0.1 * jax.random.normal(next(it), (1, csq), jnp.float32)
    p["wse2"] = 0.1 * jax.random.normal(next(it), (csq, cexp), jnp.float32)
    p["bse2"] = 0.1 * jax.random.normal(next(it), (1, cexp), jnp.float32)
    p["w3"] = 0.1 * jax.random.normal(next(it), (cexp, cout), jnp.float32)
    p["s3"], p["b3"] = bn_fold(cout)
    return p


if __name__ == "__main__":
    # InvertedResidualConfig(16, 3, 64, 16, use_se=True, 'HS', stride=1, dilation=1, width_mult=1.0)
    N, H, W = 2, 16, 16
    Cin, Cexp, Cout = 16, 64, 16
    Csq = 16  # _make_divisible(64 // 4, 8)

    key = jax.random.PRNGKey(0)
    kx, kp = jax.random.split(key)
    x_nchw = jax.random.normal(kx, (N, Cin, H, W), jnp.float32)   # native PyTorch layout
    params = make_params(kp, Cin, Cexp, Cout, Csq)

    out_nchw = inverted_residual(x_nchw, params)
    out_nchw = jax.block_until_ready(out_nchw)

    x_nhwc = jnp.transpose(x_nchw, (0, 2, 3, 1))
    ref_nhwc = jax.block_until_ready(ref_forward(x_nhwc, params))
    out_nhwc = jnp.transpose(out_nchw, (0, 2, 3, 1))

    assert out_nchw.shape == (N, Cout, H, W)
    assert jnp.allclose(out_nhwc, ref_nhwc, rtol=1e-3, atol=1e-3), "mismatch vs pure-JAX reference"

    # TODO(synk): iw>=1 InstanceWhitening branch (extra `w` tensors in x_tuple) not implemented;
    # this config uses iw=0 and BatchNorm in eval mode (running stats folded into the weights).
    print("KERNEL_OK")
</pallas_src>

<mosaic_0001>
module attributes {stable_mosaic.version = 11 : i64} {
  func.func @inverted_residual_kernel(%arg0: i32, %arg1: memref<1x16x256xf32, #tpu.memory_space<vmem>>, %arg2: memref<64x16xf32, #tpu.memory_space<vmem>>, %arg3: memref<64x1xf32, #tpu.memory_space<vmem>>, %arg4: memref<64x9xf32, #tpu.memory_space<vmem>>, %arg5: memref<64x1xf32, #tpu.memory_space<vmem>>, %arg6: memref<64x16xf32, #tpu.memory_space<vmem>>, %arg7: memref<1x16xf32, #tpu.memory_space<vmem>>, %arg8: memref<64x16xf32, #tpu.memory_space<vmem>>, %arg9: memref<64x1xf32, #tpu.memory_space<vmem>>, %arg10: memref<16x64xf32, #tpu.memory_space<vmem>>, %arg11: memref<16x1xf32, #tpu.memory_space<vmem>>, %arg12: memref<8x256xf32, #tpu.memory_space<vmem>>, %arg13: memref<1x16x256xf32, #tpu.memory_space<vmem>>) attributes {dimension_semantics = [#tpu.dimension_semantics<parallel>], iteration_bounds = array<i64: 2>, scalar_prefetch = 0 : i64, scratch_operands = 0 : i64, tpu.core_type = #tpu.core_type<tc>, window_params = [{transform_indices = @transform_0, window_bounds = array<i64: 1, 16, 256>}, {pipeline_mode = #tpu.pipeline_mode<synchronous>, transform_indices = @transform_1, window_bounds = array<i64: 64, 16>}, {pipeline_mode = #tpu.pipeline_mode<synchronous>, transform_indices = @transform_2, window_bounds = array<i64: 64, 1>}, {pipeline_mode = #tpu.pipeline_mode<synchronous>, transform_indices = @transform_3, window_bounds = array<i64: 64, 9>}, {pipeline_mode = #tpu.pipeline_mode<synchronous>, transform_indices = @transform_4, window_bounds = array<i64: 64, 1>}, {pipeline_mode = #tpu.pipeline_mode<synchronous>, transform_indices = @transform_5, window_bounds = array<i64: 64, 16>}, {pipeline_mode = #tpu.pipeline_mode<synchronous>, transform_indices = @transform_6, window_bounds = array<i64: 1, 16>}, {pipeline_mode = #tpu.pipeline_mode<synchronous>, transform_indices = @transform_7, window_bounds = array<i64: 64, 16>}, {pipeline_mode = #tpu.pipeline_mode<synchronous>, transform_indices = @transform_8, window_bounds = array<i64: 64, 1>}, {pipeline_mode = #tpu.pipeline_mode<synchronous>, transform_indices = @transform_9, window_bounds = array<i64: 16, 64>}, {pipeline_mode = #tpu.pipeline_mode<synchronous>, transform_indices = @transform_10, window_bounds = array<i64: 16, 1>}, {pipeline_mode = #tpu.pipeline_mode<synchronous>, transform_indices = @transform_11, window_bounds = array<i64: 8, 256>}, {transform_indices = @transform_12, window_bounds = array<i64: 1, 16, 256>}]} {
    %c0 = arith.constant 0 : index
    %c0_0 = arith.constant 0 : index
    %c0_1 = arith.constant 0 : index
    %0 = vector.load %arg1[%c0, %c0_0, %c0_1] : memref<1x16x256xf32, #tpu.memory_space<vmem>>, vector<1x16x256xf32>
    %1 = vector.shape_cast %0 : vector<1x16x256xf32> to vector<16x256xf32>
    %c0_2 = arith.constant 0 : index
    %c0_3 = arith.constant 0 : index
    %2 = vector.load %arg2[%c0_2, %c0_3] : memref<64x16xf32, #tpu.memory_space<vmem>>, vector<64x16xf32>
    %cst = arith.constant dense<0.000000e+00> : vector<64x256xf32>
    %3 = tpu.matmul %2, %1, %cst {dimension_numbers = #tpu.dot_dimension_numbers<[1], [0], [0], [1], [0, 0, 1, 1], [], []>} : vector<64x16xf32>, vector<16x256xf32>, vector<64x256xf32> -> vector<64x256xf32>
    %c0_4 = arith.constant 0 : index
    %c0_5 = arith.constant 0 : index
    %4 = vector.load %arg3[%c0_4, %c0_5] : memref<64x1xf32, #tpu.memory_space<vmem>>, vector<64x1xf32>
    %5 = vector.broadcast %4 : vector<64x1xf32> to vector<64x256xf32>
    %6 = arith.addf %3, %5 : vector<64x256xf32>
    %cst_6 = arith.constant 3.000000e+00 : f32
    %7 = vector.broadcast %cst_6 : f32 to vector<64x256xf32>
    %8 = arith.addf %6, %7 : vector<64x256xf32>
    %cst_7 = arith.constant 0.000000e+00 : f32
    %cst_8 = arith.constant 6.000000e+00 : f32
    %9 = vector.broadcast %cst_7 : f32 to vector<64x256xf32>
    %10 = arith.maximumf %9, %8 : vector<64x256xf32>
    %11 = vector.broadcast %cst_8 : f32 to vector<64x256xf32>
    %12 = arith.minimumf %11, %10 : vector<64x256xf32>
    %13 = arith.mulf %6, %12 : vector<64x256xf32>
    %c0_9 = arith.constant 0 : index
    %c0_10 = arith.constant 0 : index
    %14 = vector.load %arg4[%c0_9, %c0_10] : memref<64x9xf32, #tpu.memory_space<vmem>>, vector<64x9xf32>
    %15 = vector.extract_strided_slice %14 {offsets = [0, 4], sizes = [64, 1], strides = [1, 1]} : vector<64x9xf32> to vector<64x1xf32>
    %16 = vector.broadcast %15 : vector<64x1xf32> to vector<64x256xf32>
    %17 = arith.mulf %13, %16 : vector<64x256xf32>
    %c17_i32 = arith.constant 17 : i32
    %18 = tpu.dynamic_rotate %13 by %c17_i32 dim 1 : vector<64x256xf32>, i32 -> vector<64x256xf32>
    %c0_11 = arith.constant 0 : index
    %c0_12 = arith.constant 0 : index
    %19 = vector.load %arg12[%c0_11, %c0_12] : memref<8x256xf32, #tpu.memory_space<vmem>>, vector<1x256xf32>
    %20 = vector.broadcast %19 : vector<1x256xf32> to vector<64x256xf32>
    %21 = arith.mulf %18, %20 : vector<64x256xf32>
    %22 = vector.extract_strided_slice %14 {offsets = [0, 0], sizes = [64, 1], strides = [1, 1]} : vector<64x9xf32> to vector<64x1xf32>
    %23 = vector.broadcast %22 : vector<64x1xf32> to vector<64x256xf32>
    %24 = arith.mulf %21, %23 : vector<64x256xf32>
    %25 = arith.addf %17, %24 : vector<64x256xf32>
    %c16_i32 = arith.constant 16 : i32
    %26 = tpu.dynamic_rotate %13 by %c16_i32 dim 1 : vector<64x256xf32>, i32 -> vector<64x256xf32>
    %c1 = arith.constant 1 : index
    %c0_13 = arith.constant 0 : index
    %27 = vector.load %arg12[%c1, %c0_13] : memref<8x256xf32, #tpu.memory_space<vmem>>, vector<1x256xf32>
    %28 = vector.broadcast %27 : vector<1x256xf32> to vector<64x256xf32>
    %29 = arith.mulf %26, %28 : vector<64x256xf32>
    %30 = vector.extract_strided_slice %14 {offsets = [0, 1], sizes = [64, 1], strides = [1, 1]} : vector<64x9xf32> to vector<64x1xf32>
    %31 = vector.broadcast %30 : vector<64x1xf32> to vector<64x256xf32>
    %32 = arith.mulf %29, %31 : vector<64x256xf32>
    %33 = arith.addf %25, %32 : vector<64x256xf32>
    %c15_i32 = arith.constant 15 : i32
    %34 = tpu.dynamic_rotate %13 by %c15_i32 dim 1 : vector<64x256xf32>, i32 -> vector<64x256xf32>
    %c2 = arith.constant 2 : index
    %c0_14 = arith.constant 0 : index
    %35 = vector.load %arg12[%c2, %c0_14] : memref<8x256xf32, #tpu.memory_space<vmem>>, vector<1x256xf32>
    %36 = vector.broadcast %35 : vector<1x256xf32> to vector<64x256xf32>
    %37 = arith.mulf %34, %36 : vector<64x256xf32>
    %38 = vector.extract_strided_slice %14 {offsets = [0, 2], sizes = [64, 1], strides = [1, 1]} : vector<64x9xf32> to vector<64x1xf32>
    %39 = vector.broadcast %38 : vector<64x1xf32> to vector<64x256xf32>
    %40 = arith.mulf %37, %39 : vector<64x256xf32>
    %41 = arith.addf %33, %40 : vector<64x256xf32>
    %c1_i32 = arith.constant 1 : i32
    %42 = tpu.dynamic_rotate %13 by %c1_i32 dim 1 : vector<64x256xf32>, i32 -> vector<64x256xf32>
    %c3 = arith.constant 3 : index
    %c0_15 = arith.constant 0 : index
    %43 = vector.load %arg12[%c3, %c0_15] : memref<8x256xf32, #tpu.memory_space<vmem>>, vector<1x256xf32>
    %44 = vector.broadcast %43 : vector<1x256xf32> to vector<64x256xf32>
    %45 = arith.mulf %42, %44 : vector<64x256xf32>
    %46 = vector.extract_strided_slice %14 {offsets = [0, 3], sizes = [64, 1], strides = [1, 1]} : vector<64x9xf32> to vector<64x1xf32>
    %47 = vector.broadcast %46 : vector<64x1xf32> to vector<64x256xf32>
    %48 = arith.mulf %45, %47 : vector<64x256xf32>
    %49 = arith.addf %41, %48 : vector<64x256xf32>
    %c255_i32 = arith.constant 255 : i32
    %50 = tpu.dynamic_rotate %13 by %c255_i32 dim 1 : vector<64x256xf32>, i32 -> vector<64x256xf32>
    %c4 = arith.constant 4 : index
    %c0_16 = arith.constant 0 : index
    %51 = vector.load %arg12[%c4, %c0_16] : memref<8x256xf32, #tpu.memory_space<vmem>>, vector<1x256xf32>
    %52 = vector.broadcast %51 : vector<1x256xf32> to vector<64x256xf32>
    %53 = arith.mulf %50, %52 : vector<64x256xf32>
    %54 = vector.extract_strided_slice %14 {offsets = [0, 5], sizes = [64, 1], strides = [1, 1]} : vector<64x9xf32> to vector<64x1xf32>
    %55 = vector.broadcast %54 : vector<64x1xf32> to vector<64x256xf32>
    %56 = arith.mulf %53, %55 : vector<64x256xf32>
    %57 = arith.addf %49, %56 : vector<64x256xf32>
    %c241_i32 = arith.constant 241 : i32
    %58 = tpu.dynamic_rotate %13 by %c241_i32 dim 1 : vector<64x256xf32>, i32 -> vector<64x256xf32>
    %c5 = arith.constant 5 : index
    %c0_17 = arith.constant 0 : index
    %59 = vector.load %arg12[%c5, %c0_17] : memref<8x256xf32, #tpu.memory_space<vmem>>, vector<1x256xf32>
    %60 = vector.broadcast %59 : vector<1x256xf32> to vector<64x256xf32>
    %61 = arith.mulf %58, %60 : vector<64x256xf32>
    %62 = vector.extract_strided_slice %14 {offsets = [0, 6], sizes = [64, 1], strides = [1, 1]} : vector<64x9xf32> to vector<64x1xf32>
    %63 = vector.broadcast %62 : vector<64x1xf32> to vector<64x256xf32>
    %64 = arith.mulf %61, %63 : vector<64x256xf32>
    %65 = arith.addf %57, %64 : vector<64x256xf32>
    %c240_i32 = arith.constant 240 : i32
    %66 = tpu.dynamic_rotate %13 by %c240_i32 dim 1 : vector<64x256xf32>, i32 -> vector<64x256xf32>
    %c6 = arith.constant 6 : index
    %c0_18 = arith.constant 0 : index
    %67 = vector.load %arg12[%c6, %c0_18] : memref<8x256xf32, #tpu.memory_space<vmem>>, vector<1x256xf32>
    %68 = vector.broadcast %67 : vector<1x256xf32> to vector<64x256xf32>
    %69 = arith.mulf %66, %68 : vector<64x256xf32>
    %70 = vector.extract_strided_slice %14 {offsets = [0, 7], sizes = [64, 1], strides = [1, 1]} : vector<64x9xf32> to vector<64x1xf32>
    %71 = vector.broadcast %70 : vector<64x1xf32> to vector<64x256xf32>
    %72 = arith.mulf %69, %71 : vector<64x256xf32>
    %73 = arith.addf %65, %72 : vector<64x256xf32>
    %c239_i32 = arith.constant 239 : i32
    %74 = tpu.dynamic_rotate %13 by %c239_i32 dim 1 : vector<64x256xf32>, i32 -> vector<64x256xf32>
    %c7 = arith.constant 7 : index
    %c0_19 = arith.constant 0 : index
    %75 = vector.load %arg12[%c7, %c0_19] : memref<8x256xf32, #tpu.memory_space<vmem>>, vector<1x256xf32>
    %76 = vector.broadcast %75 : vector<1x256xf32> to vector<64x256xf32>
    %77 = arith.mulf %74, %76 : vector<64x256xf32>
    %78 = vector.extract_strided_slice %14 {offsets = [0, 8], sizes = [64, 1], strides = [1, 1]} : vector<64x9xf32> to vector<64x1xf32>
    %79 = vector.broadcast %78 : vector<64x1xf32> to vector<64x256xf32>
    %80 = arith.mulf %77, %79 : vector<64x256xf32>
    %81 = arith.addf %73, %80 : vector<64x256xf32>
    %c0_20 = arith.constant 0 : index
    %c0_21 = arith.constant 0 : index
    %82 = vector.load %arg5[%c0_20, %c0_21] : memref<64x1xf32, #tpu.memory_space<vmem>>, vector<64x1xf32>
    %83 = vector.broadcast %82 : vector<64x1xf32> to vector<64x256xf32>
    %84 = arith.addf %81, %83 : vector<64x256xf32>
    %cst_22 = arith.constant 3.000000e+00 : f32
    %85 = vector.broadcast %cst_22 : f32 to vector<64x256xf32>
    %86 = arith.addf %84, %85 : vector<64x256xf32>
    %cst_23 = arith.constant 0.000000e+00 : f32
    %cst_24 = arith.constant 6.000000e+00 : f32
    %87 = vector.broadcast %cst_23 : f32 to vector<64x256xf32>
    %88 = arith.maximumf %87, %86 : vector<64x256xf32>
    %89 = vector.broadcast %cst_24 : f32 to vector<64x256xf32>
    %90 = arith.minimumf %89, %88 : vector<64x256xf32>
    %91 = arith.mulf %84, %90 : vector<64x256xf32>
    %cst_25 = arith.constant dense<0.000000e+00> : vector<64xf32>
    %92 = vector.multi_reduction <add>, %91, %cst_25 [1] : vector<64x256xf32> to vector<64xf32>
    %93 = vector.shape_cast %92 : vector<64xf32> to vector<64x1xf32>
    %cst_26 = arith.constant 2.560000e+02 : f32
    %94 = vector.broadcast %cst_26 : f32 to vector<64x1xf32>
    %95 = arith.divf %93, %94 : vector<64x1xf32>
    %c0_27 = arith.constant 0 : index
    %c0_28 = arith.constant 0 : index
    %96 = vector.load %arg6[%c0_27, %c0_28] : memref<64x16xf32, #tpu.memory_space<vmem>>, vector<64x16xf32>
    %97 = vector.broadcast %95 : vector<64x1xf32> to vector<64x16xf32>
    %98 = arith.mulf %96, %97 : vector<64x16xf32>
    %cst_29 = arith.constant dense<0.000000e+00> : vector<16xf32>
    %99 = vector.multi_reduction <add>, %98, %cst_29 [0] : vector<64x16xf32> to vector<16xf32>
    %100 = vector.shape_cast %99 : vector<16xf32> to vector<1x16xf32>
    %c0_30 = arith.constant 0 : index
    %c0_31 = arith.constant 0 : index
    %101 = vector.load %arg7[%c0_30, %c0_31] : memref<1x16xf32, #tpu.memory_space<vmem>>, vector<1x16xf32>
    %102 = arith.addf %100, %101 : vector<1x16xf32>
    %cst_32 = arith.constant 0.000000e+00 : f32
    %103 = vector.broadcast %cst_32 : f32 to vector<1x16xf32>
    %104 = arith.maximumf %102, %103 : vector<1x16xf32>
    %c0_33 = arith.constant 0 : index
    %c0_34 = arith.constant 0 : index
    %105 = vector.load %arg8[%c0_33, %c0_34] : memref<64x16xf32, #tpu.memory_space<vmem>>, vector<64x16xf32>
    %106 = vector.broadcast %104 : vector<1x16xf32> to vector<64x16xf32>
    %107 = arith.mulf %105, %106 : vector<64x16xf32>
    %cst_35 = arith.constant dense<0.000000e+00> : vector<64xf32>
    %108 = vector.multi_reduction <add>, %107, %cst_35 [1] : vector<64x16xf32> to vector<64xf32>
    %109 = vector.shape_cast %108 : vector<64xf32> to vector<64x1xf32>
    %c0_36 = arith.constant 0 : index
    %c0_37 = arith.constant 0 : index
    %110 = vector.load %arg9[%c0_36, %c0_37] : memref<64x1xf32, #tpu.memory_space<vmem>>, vector<64x1xf32>
    %111 = arith.addf %109, %110 : vector<64x1xf32>
    %cst_38 = arith.constant 0.166666672 : f32
    %112 = vector.broadcast %cst_38 : f32 to vector<64x1xf32>
    %113 = arith.mulf %111, %112 : vector<64x1xf32>
    %cst_39 = arith.constant 5.000000e-01 : f32
    %114 = vector.broadcast %cst_39 : f32 to vector<64x1xf32>
    %115 = arith.addf %113, %114 : vector<64x1xf32>
    %cst_40 = arith.constant 0.000000e+00 : f32
    %cst_41 = arith.constant 1.000000e+00 : f32
    %116 = vector.broadcast %cst_40 : f32 to vector<64x1xf32>
    %117 = arith.maximumf %116, %115 : vector<64x1xf32>
    %118 = vector.broadcast %cst_41 : f32 to vector<64x1xf32>
    %119 = arith.minimumf %118, %117 : vector<64x1xf32>
    %120 = vector.broadcast %119 : vector<64x1xf32> to vector<64x256xf32>
    %121 = arith.mulf %91, %120 : vector<64x256xf32>
    %c0_42 = arith.constant 0 : index
    %c0_43 = arith.constant 0 : index
    %122 = vector.load %arg10[%c0_42, %c0_43] : memref<16x64xf32, #tpu.memory_space<vmem>>, vector<16x64xf32>
    %cst_44 = arith.constant dense<0.000000e+00> : vector<16x256xf32>
    %123 = tpu.matmul %122, %121, %cst_44 {dimension_numbers = #tpu.dot_dimension_numbers<[1], [0], [0], [1], [0, 0, 1, 1], [], []>} : vector<16x64xf32>, vector<64x256xf32>, vector<16x256xf32> -> vector<16x256xf32>
    %c0_45 = arith.constant 0 : index
    %c0_46 = arith.constant 0 : index
    %124 = vector.load %arg11[%c0_45, %c0_46] : memref<16x1xf32, #tpu.memory_space<vmem>>, vector<16x1xf32>
    %125 = vector.broadcast %124 : vector<16x1xf32> to vector<16x256xf32>
    %126 = arith.addf %123, %125 : vector<16x256xf32>
    %127 = arith.addf %1, %126 : vector<16x256xf32>
    %c0_47 = arith.constant 0 : index
    %c0_48 = arith.constant 0 : index
    %c0_49 = arith.constant 0 : index
    %128 = vector.load %arg13[%c0_47, %c0_48, %c0_49] : memref<1x16x256xf32, #tpu.memory_space<vmem>>, vector<1x16x256xf32>
    %129 = vector.shape_cast %128 : vector<1x16x256xf32> to vector<16x256xf32>
    %130 = vector.shape_cast %127 : vector<16x256xf32> to vector<1x16x256xf32>
    tpu.vector_store %arg13[%c0_47, %c0_48, %c0_49], %130 {strides = array<i32>} : memref<1x16x256xf32, #tpu.memory_space<vmem>>, vector<1x16x256xf32>,
    return
  }
  func.func @transform_0(%arg0: i32) -> (i32, i32, i32) {
    %c0_i32 = arith.constant 0 : i32
    %c0_i32_0 = arith.constant 0 : i32
    %c0_i32_1 = arith.constant 0 : i32
    return %arg0, %c0_i32, %c0_i32_0 : i32, i32, i32
  }
  func.func @transform_1(%arg0: i32) -> (i32, i32) {
    %c0_i32 = arith.constant 0 : i32
    %c0_i32_0 = arith.constant 0 : i32
    %c0_i32_1 = arith.constant 0 : i32
    return %c0_i32, %c0_i32_0 : i32, i32
  }
  func.func @transform_2(%arg0: i32) -> (i32, i32) {
    %c0_i32 = arith.constant 0 : i32
    %c0_i32_0 = arith.constant 0 : i32
    %c0_i32_1 = arith.constant 0 : i32
    return %c0_i32, %c0_i32_0 : i32, i32
  }
  func.func @transform_3(%arg0: i32) -> (i32, i32) {
    %c0_i32 = arith.constant 0 : i32
    %c0_i32_0 = arith.constant 0 : i32
    %c0_i32_1 = arith.constant 0 : i32
    return %c0_i32, %c0_i32_0 : i32, i32
  }
  func.func @transform_4(%arg0: i32) -> (i32, i32) {
    %c0_i32 = arith.constant 0 : i32
    %c0_i32_0 = arith.constant 0 : i32
    %c0_i32_1 = arith.constant 0 : i32
    return %c0_i32, %c0_i32_0 : i32, i32
  }
  func.func @transform_5(%arg0: i32) -> (i32, i32) {
    %c0_i32 = arith.constant 0 : i32
    %c0_i32_0 = arith.constant 0 : i32
    %c0_i32_1 = arith.constant 0 : i32
    return %c0_i32, %c0_i32_0 : i32, i32
  }
  func.func @transform_6(%arg0: i32) -> (i32, i32) {
    %c0_i32 = arith.constant 0 : i32
    %c0_i32_0 = arith.constant 0 : i32
    %c0_i32_1 = arith.constant 0 : i32
    return %c0_i32, %c0_i32_0 : i32, i32
  }
  func.func @transform_7(%arg0: i32) -> (i32, i32) {
    %c0_i32 = arith.constant 0 : i32
    %c0_i32_0 = arith.constant 0 : i32
    %c0_i32_1 = arith.constant 0 : i32
    return %c0_i32, %c0_i32_0 : i32, i32
  }
  func.func @transform_8(%arg0: i32) -> (i32, i32) {
    %c0_i32 = arith.constant 0 : i32
    %c0_i32_0 = arith.constant 0 : i32
    %c0_i32_1 = arith.constant 0 : i32
    return %c0_i32, %c0_i32_0 : i32, i32
  }
  func.func @transform_9(%arg0: i32) -> (i32, i32) {
    %c0_i32 = arith.constant 0 : i32
    %c0_i32_0 = arith.constant 0 : i32
    %c0_i32_1 = arith.constant 0 : i32
    return %c0_i32, %c0_i32_0 : i32, i32
  }
  func.func @transform_10(%arg0: i32) -> (i32, i32) {
    %c0_i32 = arith.constant 0 : i32
    %c0_i32_0 = arith.constant 0 : i32
    %c0_i32_1 = arith.constant 0 : i32
    return %c0_i32, %c0_i32_0 : i32, i32
  }
  func.func @transform_11(%arg0: i32) -> (i32, i32) {
    %c0_i32 = arith.constant 0 : i32
    %c0_i32_0 = arith.constant 0 : i32
    %c0_i32_1 = arith.constant 0 : i32
    return %c0_i32, %c0_i32_0 : i32, i32
  }
  func.func @transform_12(%arg0: i32) -> (i32, i32, i32) {
    %c0_i32 = arith.constant 0 : i32
    %c0_i32_0 = arith.constant 0 : i32
    %c0_i32_1 = arith.constant 0 : i32
    return %arg0, %c0_i32, %c0_i32_0 : i32, i32, i32
  }
}

</mosaic_0001>

<bundles_post_ra>
// kernel: tpu_custom_call.1
= control target key start
LH: loop header
LB: loop body
LE: loop exit
PB: predicated region body
PF: predicated region fallthrough
CT: control target
= control target key end

     0   :  { %s4573_s0 = inlined_call_operand.vmem [shape: f32[2,16,256], index: 0, kind: input, shape index: {}]   ;;  %s4574_s1 = inlined_call_operand.vmem [shape: f32[64,16], index: 1, kind: input, shape index: {}]   ;;  %s4575_s2 = inlined_call_operand.vmem [shape: f32[64,1], index: 2, kind: input, shape index: {}]   ;;  %s4576_s3 = inlined_call_operand.vmem [shape: f32[64,9], index: 3, kind: input, shape index: {}]   ;;  %s4577_s4 = inlined_call_operand.vmem [shape: f32[64,1], index: 4, kind: input, shape index: {}]   ;;  %s4578_s5 = inlined_call_operand.vmem [shape: f32[64,16], index: 5, kind: input, shape index: {}]   ;;  %s4579_s6 = inlined_call_operand.vmem [shape: f32[1,16], index: 6, kind: input, shape index: {}]   ;;  %s4580_s7 = inlined_call_operand.vmem [shape: f32[64,16], index: 7, kind: input, shape index: {}]   ;;  %s4581_s8 = inlined_call_operand.vmem [shape: f32[64,1], index: 8, kind: input, shape index: {}]   ;;  %s4582_s9 = inlined_call_operand.vmem [shape: f32[16,64], index: 9, kind: input, shape index: {}]   ;;  %s4583_s10 = inlined_call_operand.vmem [shape: f32[16,1], index: 10, kind: input, shape index: {}]   ;;  %s4584_s11 = inlined_call_operand.vmem [shape: f32[8,256], index: 11, kind: input, shape index: {}]   ;;  %s4585_s12 = inlined_call_operand.hbm [shape: f32[2,16,256], index: 12, kind: output, shape index: {}]  }
   0x1   :  { %4694 = sst [smem:[#allocation90_spill]] %s4573_s0 }
   0x2   :  { %4695 = sst [smem:[#allocation91_spill]] %s4574_s1 }
   0x3   :  { %4696 = sst [smem:[#allocation92_spill]] %s4575_s2 }
   0x4   :  { %17 = vsyncpa [#allocation3], 0 }
   0x5   :  { %19 = vsyncpa [#allocation3 + $0x1], 0  ;;  %s2611_s21 = smov 0   ;;  %s2613_s22 = smov 0  }
   0x6   :  { %s2615_s23 = smov 0   ;;  %s2617_s24 = smov 0  }
   0x7 LB: > { %s2632_s25 = sadd.s32 4294967295, %s2525_s24   ;;  %s2301_s26 = sadd.s32 4294967294, %s2525_s24   ;;  %s2525_s24 = sphi %s2617_s24, %s4928_s24   ;;  %s2521_s23 = sphi %s2615_s23, %s4927_s23   ;;  %s2517_s22 = sphi %s2613_s22, %s4926_s22   ;;  %s2513_s21 = sphi %s2611_s21, %s4925_s21  }
   0x8   : > { %s2636_s27 = sadd.s32 1, %s2525_s24   ;;  %s289_s28 = sadd.s32 1, %s2521_s23 }
   0x9   : > { %s286_s29 = ssub.s32 %s2525_s24, %s2636_s27  ;;  %p299_p0 = scmp.ne.s32.totalorder %s2521_s23, %s2517_s22 }
   0xa   : > { %p287_p1 = scmp.eq.s32.totalorder %s286_s29, 0  ;;  %p300_p2 = scmp.eq.s32.totalorder %s2632_s25, 1 }
   0xb   : > { %p305_p3 = scmp.ne.s32.totalorder %s2517_s22, %s2513_s21  ;;  %p306_p4 = scmp.eq.s32.totalorder %s2301_s26, 1 }
   0xc   : > { %s2647_s30 = scalar_select %p287_p1, %s2521_s23, %s289_s28  }
   0xd   : > { %p2649_p5 = por %p300_p2, %p299_p0  ;;  %p2653_p6 = por %p306_p4, %p305_p3 }
   0xe   : > { %p2304_p7 = scmp.ge.s32.totalorder %s2525_s24, 1  ;;  %p365_p8 = scmp.lt.s32.totalorder %s2525_s24, 3 }
  0x10   : > { %p366_p9 = pnand %p2304_p7, %p365_p8 }
  0x12   : > { %369 = sbr.rel (%p366_p9) target bundleno = 1369 (0x559), region = 68 }
  0x17   : > { %s4699_s2 = sld [smem:[#allocation92_spill]]  ;;  %p407_p10 = scmp.lt.s32.totalorder %s2632_s25, 1  ;;  %v4586_v2 = vmov 0   ;;  %vm472_vm0 = vcmask 130048   ;;  %v2723_v18 = vld [vmem:[%s4576_s3] sm:$0xff]  ;;  %v2528_v19 = vmov 4  }
  0x18   : > { %2404 = vset.pattern.permute.xlu0 %v4586_v2  ;;  %2405 = vset.pattern.permute.xlu1 %v4586_v2  ;;  %s4700_s0 = sld [smem:[#allocation90_spill]]  ;;  %v2733_v21 = vld [vmem:[%s4576_s3 + $0x8] sm:$0xff]  ;;  %v2738_v22 = vld [vmem:[%s4576_s3 + $0x10] sm:$0xff]  ;;  %v2745_v23 = vld [vmem:[%s4576_s3 + $0x18] sm:$0xff]  ;;  %v2529_v30 = vmov 1   ;;  %s4693_s28 = smov 16  }
  0x19   : > { %s408_s19 = scalar_select %p407_p10, %s2632_s25, 1  ;;  %2406 = vset.pattern.permute.xlu2 %v4586_v2  ;;  %v2757_v25 = vld [vmem:[%s4576_s3 + $0x30] sm:$0xff]  ;;  %v2762_v26 = vld [vmem:[%s4576_s3 + $0x20] sm:$0xff]  ;;  %v2768_v27 = vld [vmem:[%s4576_s3 + $0x28] sm:$0xff]  ;;  %vm2162_vm10 = vcmask 523264  }
  0x1a   : > { %s4701_s1 = sld [smem:[#allocation91_spill]]  ;;  %v2780_v29 = vld [vmem:[%s4576_s3 + $0x38] sm:$0xff]  ;;  %s2531_s29 = smov 17  }
  0x1b   : > { %s2340_s20 = sshll.u32 %s408_s19, 5  ;;  %s2532_s15 = smov 15  }
  0x1c   : > { %s2534_s17 = smov 1   ;;  %s2536_s18 = smov 127  }
  0x1d   : > { %v424_v0 = vld [vmem:[%s4699_s2] sm:$0xff]  ;;  %v426_v1 = vld [vmem:[%s4699_s2 + $0x10] sm:$0xff]  ;;  %v425_v11 = vld [vmem:[%s4699_s2 + $0x8] sm:$0xff]  ;;  %s2538_s26 = smov 113  }
  0x1e   : > { %434 = vperm.xlu0 %2404, %v424_v0   ;;  %444 = vperm.xlu1 %2405, %v426_v1   ;;  %v428_v3 = vld [vmem:[%s4699_s2 + $0x20] sm:$0xff]  ;;  %s2676_s16 = scalar_lea.vmem %s4700_s0, %s2340_s20  ;;  %v427_v12 = vld [vmem:[%s4699_s2 + $0x18] sm:$0xff]  ;;  %v429_v13 = vld [vmem:[%s4699_s2 + $0x28] sm:$0xff]  ;;  %s2541_s20 = smov 112  }
  0x1f   : > { %454 = vperm.xlu2 %2406, %v428_v3   ;;  %v414_v4 = vld [vmem:[%s2676_s16 + $0x10] sm:$0xff]  ;;  %v415_v5 = vld [vmem:[%s2676_s16 + $0x18] sm:$0xff]  ;;  %v412_v6 = vld [vmem:[%s2676_s16] sm:$0xff]  ;;  %s2542_s0 = smov 111  }
  0x20   : > { %511 = vmatpush.msra.mxu0 %v414_v4  ;;  %2342 = vmatpush.msra.mxu2 %v414_v4  ;;  %v413_v7 = vld [vmem:[%s2676_s16 + $0x8] sm:$0xff]  ;;  %v416_v8 = vld [vmem:[%s4701_s1] sm:$0xff]  ;;  %v422_v9 = vld [vmem:[%s4701_s1 + $0x30] sm:$0xff] }
  0x21   : > { %552 = vmatpush.msra.mxu1 %v415_v5  ;;  %2344 = vmatpush.msra.mxu3 %v415_v5  ;;  %v421_v10 = vld [vmem:[%s4701_s1 + $0x28] sm:$0xff]  ;;  %v423_v15 = vld [vmem:[%s4701_s1 + $0x38] sm:$0xff]  ;;  %v430_v16 = vld [vmem:[%s4699_s2 + $0x30] sm:$0xff] }
  0x22   : > { %512 = vmatpush.msra.mxu0 %v412_v6  ;;  %2343 = vmatpush.msra.mxu2 %v412_v6  ;;  %v417_v14 = vld [vmem:[%s4701_s1 + $0x8] sm:$0xff]  ;;  %v431_v17 = vld [vmem:[%s4699_s2 + $0x38] sm:$0xff]  ;;  %v418_v20 = vld [vmem:[%s4701_s1 + $0x10] sm:$0xff] }
  0x23   : > { %553 = vmatpush.msra.mxu1 %v413_v7  ;;  %2345 = vmatpush.msra.mxu3 %v413_v7  ;;  %v419_v24 = vld [vmem:[%s4701_s1 + $0x18] sm:$0xff]  ;;  %v420_v28 = vld [vmem:[%s4701_s1 + $0x20] sm:$0xff] }
  0x24   : > { %2308 = vmatmul.msk.f32.vlgmr.msra.gmra.mxu0 %vm472_vm0, %v416_v8  ;;  %2314 = vmatmul.msk.f32.vlgmr.msra.gmra.mxu2 %vm472_vm0, %v422_v9 }
  0x25   : > { %2316 = vmatmul.msk.f32.vlgmr.msra.gmra.mxu1 %vm472_vm0, %v416_v8  ;;  %2321 = vmatmul.msk.f32.vlgmr.msra.gmra.mxu3 %vm472_vm0, %v421_v10 }
  0x26   : > { %439 = vperm.xlu0 %2404, %v425_v11   ;;  %449 = vperm.xlu1 %2405, %v427_v12  }
  0x27   : > { %459 = vperm.xlu2 %2406, %v429_v13  }
  0x2c   : > { %2309 = vmatmul.msk.f32.gmra.mxu0 %vm472_vm0, %v417_v14  ;;  %2315 = vmatmul.msk.f32.gmra.mxu2 %vm472_vm0, %v423_v15 }
  0x2d   : > { %2317 = vmatmul.msk.f32.gmra.mxu1 %vm472_vm0, %v417_v14  ;;  %2322 = vmatmul.msk.f32.gmra.mxu3 %vm472_vm0, %v422_v9 }
  0x2e   : > { %464 = vperm.xlu0 %2404, %v430_v16   ;;  %469 = vperm.xlu1 %2405, %v431_v17  }
  0x2f   : > { %2407 = vset.pattern.permute.xlu2 %v2528_v19 }
  0x30   : > { %653 = vperm.xlu2 %2407, %v2723_v18  }
  0x34   : > { %2310 = vmatmul.msk.f32.gmra.mxu0 %vm472_vm0, %v418_v20 }
  0x35   : > { %2318 = vmatmul.msk.f32.gmra.mxu1 %vm472_vm0, %v418_v20  ;;  %2323 = vmatmul.msk.f32.gmra.mxu3 %vm472_vm0, %v423_v15 }
  0x36   : > { %2408 = vset.pattern.permute.xlu0 %v2528_v19  ;;  %2409 = vset.pattern.permute.xlu1 %v2528_v19 }
  0x37   : > { %658 = vperm.xlu0 %2408, %v2733_v21   ;;  %663 = vperm.xlu1 %2409, %v2738_v22  }
  0x38   : > { %668 = vperm.xlu2 %2407, %v2745_v23  }
  0x3c   : > { %2311 = vmatmul.msk.f32.gmra.mxu0 %vm472_vm0, %v419_v24 }
  0x3d   : > { %2319 = vmatmul.msk.f32.gmra.mxu1 %vm472_vm0, %v419_v24 }
  0x3f   : > { %683 = vperm.xlu0 %2408, %v2757_v25   ;;  %673 = vperm.xlu1 %2409, %v2762_v26  }
  0x40   : > { %678 = vperm.xlu2 %2407, %v2768_v27  }
  0x44   : > { %2312 = vmatmul.msk.f32.gmra.mxu0 %vm472_vm0, %v420_v28 }
  0x45   : > { %2320 = vmatmul.msk.f32.gmra.mxu1 %vm472_vm0, %v420_v28 }
  0x47   : > { %688 = vperm.xlu1 %2409, %v2780_v29   ;;  %2414 = vset.pattern.permute.xlu0 %v2529_v30 }
  0x48   : > { %2411 = vset.pattern.permute.xlu2 %v4586_v2  ;;  %925 = vperm.xlu0 %2414, %v2738_v22  }
  0x49   : > { %789 = vperm.xlu2 %2411, %v2738_v22  }
  0x4c   : > { %2313 = vmatmul.msk.f32.gmra.mxu0 %vm472_vm0, %v421_v10 }
  0x4f   : > { %2410 = vset.pattern.permute.xlu1 %v4586_v2 }
  0x50   : > { %785 = vperm.xlu1 %2410, %v2733_v21   ;;  %945 = vperm.xlu0 %2414, %v2780_v29  }
  0x51   : > { %797 = vperm.xlu2 %2411, %v2762_v26  }
  0x58   : > { %793 = vperm.xlu1 %2410, %v2745_v23  }
  0x59   : > { %809 = vperm.xlu2 %2411, %v2780_v29  }
  0x60   : > { %805 = vperm.xlu1 %2410, %v2757_v25  }
  0x61   : > { %2413 = vset.pattern.permute.xlu2 %v2529_v30 }
  0x62   : > { %921 = vperm.xlu2 %2413, %v2733_v21  }
  0x68   : > { %2412 = vset.pattern.permute.xlu1 %v2529_v30 }
  0x69   : > { %917 = vperm.xlu1 %2412, %v2723_v18  }
  0x6a   : > { %933 = vperm.xlu2 %2413, %v2762_v26  }
  0x71   : > { %929 = vperm.xlu1 %2412, %v2745_v23  }
  0x72   : > { %941 = vperm.xlu2 %2413, %v2757_v25  }
  0x79   : > { %937 = vperm.xlu1 %2412, %v2768_v27   ;;  %v2801_v32 = vpop.permute.xlu2 %454 }
  0x81   : > { %v2803_v38 = vpop.permute.xlu2 %459 }
  0x8a   : > { %v2816_v55 = vpop.permute.xlu2 %653 }
  0x8b   : > { %4704 = vst [vmem:[#allocation7_spill] sm:$0xff] %v2816_v55 }
  0x90   : > { %v435_v31 = vpop.permute.xlu0 %434  ;;  %v445_v49 = vpop.permute.xlu1 %444 }
  0x92   : > { %v2828_v5 = vpop.permute.xlu2 %668 }
  0x93   : > { %4706 = vst [vmem:[#allocation9_spill] sm:$0xff] %v2828_v5 }
  0x98   : > { %v440_v33 = vpop.permute.xlu0 %439  ;;  %v2820_v0 = vpop.permute.xlu1 %449 }
  0x9a   : > { %v2842_v19 = vpop.permute.xlu2 %678 }
  0x9b   : > { %4708 = vst [vmem:[#allocation11_spill] sm:$0xff] %v2842_v19 }
  0xa0   : > { %v465_v46 = vpop.permute.xlu0 %464  ;;  %v470_v11 = vpop.permute.xlu1 %469 }
  0xa1   : > { %v514_v34 = vpop.f32.mrf.mxu0 }
  0xa2   : > { %v515_v35 = vadd.f32 %v514_v34, %v435_v31  ;;  %v555_v36 = vpop.f32.mrf.mxu1 }
  0xa3   : > { %v556_v37 = vadd.f32 %v555_v36, %v435_v31 }
  0xa4   : > { %v579_v39 = vadd.f32 3.0, %v515_v35 }
  0xa5   : > { %v580_v40 = vadd.f32 3.0, %v556_v37 }
  0xa6   : > { %v595_v41 = vmax.f32 %v579_v39, 0.0  ;;  %v2852_v39 = vpop.permute.xlu2 %789 }
  0xa7   : > { %v596_v42 = vmax.f32 %v580_v40, 0.0  ;;  %v532_v43 = vpop.f32.mrf.mxu2  ;;  %4710 = vst [vmem:[#allocation13_spill] sm:$0xff] %v2852_v39 }
  0xa8   : > { %v611_v44 = vmin.f32 %v595_v41, 6.0  ;;  %v570_v45 = vpop.f32.mrf.mxu3  ;;  %v533_v51 = vadd.f32 %v532_v43, %v465_v46 }
  0xa9   : > { %v612_v47 = vmin.f32 %v596_v42, 6.0  ;;  %v571_v48 = vadd.f32 %v570_v45, %v2803_v38  ;;  %v517_v58 = vpop.f32.mrf.mxu0  ;;  %v2850_v31 = vpop.permute.xlu1 %663 }
  0xaa   : > { %v2806_v50 = vmul.f32 %v611_v44, %v515_v35  ;;  %v591_v56 = vadd.f32 3.0, %v533_v51  ;;  %v558_v59 = vpop.f32.mrf.mxu1  ;;  %v518_v62 = vadd.f32 %v517_v58, %v440_v33  ;;  %4709 = vst [vmem:[#allocation12_spill] sm:$0xff] %v2850_v31 }
  0xab   : > { %v2808_v52 = vmul.f32 %v612_v47, %v556_v37  ;;  %v590_v53 = vadd.f32 3.0, %v571_v48  ;;  %v559_v63 = vadd.f32 %v558_v59, %v440_v33 }
  0xac   : > { %4702 = vst [vmem:[#allocation5_spill] sm:$0xff] %v2806_v50  ;;  %844 = vrot.lane.b32.xlu0 %v2806_v50, %s4693_s28  ;;  %707 = vrot.lane.b32.xlu2 %v2806_v50, %s2531_s29  ;;  %v607_v60 = vmax.f32 %v591_v56, 0.0  ;;  %v581_v3 = vadd.f32 3.0, %v518_v62 }
  0xad   : > { %4703 = vst [vmem:[#allocation6_spill] sm:$0xff] %v2808_v52  ;;  %v606_v54 = vmax.f32 %v590_v53, 0.0  ;;  %723 = vrot.lane.b32.xlu1 %v2808_v52, %s2531_s29  ;;  %v582_v4 = vadd.f32 3.0, %v559_v63 }
  0xae   : > { %v623_v1 = vmin.f32 %v607_v60, 6.0  ;;  %v597_v8 = vmax.f32 %v581_v3, 0.0 }
  0xaf   : > { %v622_v57 = vmin.f32 %v606_v54, 6.0  ;;  %v598_v9 = vmax.f32 %v582_v4, 0.0  ;;  %v535_v15 = vpop.f32.mrf.mxu2 }
  0xb0   : > { %v573_v6 = vpop.f32.mrf.mxu3  ;;  %v2830_v7 = vmul.f32 %v623_v1, %v533_v51  ;;  %v613_v12 = vmin.f32 %v597_v8, 6.0  ;;  %v536_v20 = vadd.f32 %v535_v15, %v470_v11  ;;  %v2870_v51 = vpop.permute.xlu2 %797 }
  0xb1   : > { %v2818_v61 = vmul.f32 %v622_v57, %v571_v48  ;;  %v574_v10 = vadd.f32 %v573_v6, %v465_v46  ;;  %v614_v13 = vmin.f32 %v598_v9, 6.0  ;;  %v520_v33 = vpop.f32.mrf.mxu0  ;;  %4714 = vst [vmem:[#allocation17_spill] sm:$0xff] %v2870_v51 }
  0xb2   : > { %4707 = vst [vmem:[#allocation10_spill] sm:$0xff] %v2830_v7  ;;  %v2838_v16 = vmul.f32 %v613_v12, %v518_v62  ;;  %v593_v28 = vadd.f32 3.0, %v536_v20  ;;  %v561_v34 = vpop.f32.mrf.mxu1  ;;  %v521_v35 = vadd.f32 %v520_v33, %v445_v49 }
  0xb3   : > { %4705 = vst [vmem:[#allocation8_spill] sm:$0xff] %v2818_v61  ;;  %v592_v14 = vadd.f32 3.0, %v574_v10  ;;  %v2840_v17 = vmul.f32 %v614_v13, %v559_v63  ;;  %v562_v36 = vadd.f32 %v561_v34, %v445_v49  ;;  %v2864_v49 = vpop.permute.xlu1 %673 }
  0xb4   : > { %733 = vrot.lane.b32.xlu0 %v2818_v61, %s2531_s29  ;;  %860 = vrot.lane.b32.xlu2 %v2808_v52, %s4693_s28  ;;  %v609_v37 = vmax.f32 %v593_v28, 0.0  ;;  %v583_v41 = vadd.f32 3.0, %v521_v35  ;;  %4713 = vst [vmem:[#allocation16_spill] sm:$0xff] %v2864_v49 }
  0xb5   : > { %980 = vrot.lane.b32.xlu1 %v2806_v50, %s2532_s15  ;;  %v608_v24 = vmax.f32 %v592_v14, 0.0  ;;  %v584_v42 = vadd.f32 3.0, %v562_v36 }
  0xb6   : > { %v625_v43 = vmin.f32 %v609_v37, 6.0  ;;  %v599_v45 = vmax.f32 %v583_v41, 0.0 }
  0xb7   : > { %v624_v30 = vmin.f32 %v608_v24, 6.0  ;;  %v600_v46 = vmax.f32 %v584_v42, 0.0 }
  0xb8   : > { %v576_v44 = vpop.f32.mrf.mxu3  ;;  %v2862_v47 = vmul.f32 %v625_v43, %v536_v20  ;;  %v615_v53 = vmin.f32 %v599_v45, 6.0  ;;  %v2888_v8 = vpop.permute.xlu2 %809 }
  0xb9   : > { %v2854_v40 = vmul.f32 %v624_v30, %v574_v10  ;;  %v577_v48 = vadd.f32 %v576_v44, %v470_v11  ;;  %v616_v54 = vmin.f32 %v600_v46, 6.0  ;;  %v523_v57 = vpop.f32.mrf.mxu0 }
  0xba   : > { %4712 = vst [vmem:[#allocation15_spill] sm:$0xff] %v2862_v47  ;;  %v564_v58 = vpop.f32.mrf.mxu1  ;;  %v2874_v59 = vmul.f32 %v615_v53, %v521_v35  ;;  %v524_v63 = vadd.f32 %v523_v57, %v2820_v0  ;;  %v2925_v53 = vpop.permute.xlu0 %658 }
  0xbb   : > { %4711 = vst [vmem:[#allocation14_spill] sm:$0xff] %v2854_v40  ;;  %v594_v56 = vadd.f32 3.0, %v577_v48  ;;  %v2876_v60 = vmul.f32 %v616_v54, %v562_v36  ;;  %v565_v1 = vadd.f32 %v564_v58, %v2820_v0  ;;  %v2884_v3 = vpop.permute.xlu1 %688 }
  0xbc   : > { %856 = vrot.lane.b32.xlu0 %v2830_v7, %s4693_s28  ;;  %719 = vrot.lane.b32.xlu2 %v2830_v7, %s2531_s29  ;;  %4715 = vst [vmem:[#allocation18_spill] sm:$0xff] %v2874_v59  ;;  %v585_v6 = vadd.f32 3.0, %v524_v63 }
  0xbd   : > { %870 = vrot.lane.b32.xlu1 %v2818_v61, %s4693_s28  ;;  %4716 = vst [vmem:[#allocation19_spill] sm:$0xff] %v2876_v60  ;;  %v610_v62 = vmax.f32 %v594_v56, 0.0  ;;  %v586_v9 = vadd.f32 3.0, %v565_v1 }
  0xbe   : > { %v601_v11 = vmax.f32 %v585_v6, 0.0  ;;  %4723 = vst [vmem:[#allocation26_spill] sm:$0xff] %v2925_v53 }
  0xbf   : > { %v626_v4 = vmin.f32 %v610_v62, 6.0  ;;  %v602_v0 = vmax.f32 %v586_v9, 0.0  ;;  %v2533_v9 = vmov 2  }
  0xc0   : > { %v617_v13 = vmin.f32 %v601_v11, 6.0  ;;  %v2900_v24 = vpop.permute.xlu2 %921  ;;  %2415 = vset.pattern.permute.xlu2 %v2533_v9  ;;  %2417 = vset.pattern.permute.xlu1 %v2533_v9 }
  0xc1   : > { %v2890_v10 = vmul.f32 %v626_v4, %v577_v48  ;;  %v526_v14 = vpop.f32.mrf.mxu0  ;;  %v618_v15 = vmin.f32 %v602_v0, 6.0  ;;  %4718 = vst [vmem:[#allocation21_spill] sm:$0xff] %v2900_v24  ;;  %2416 = vset.pattern.permute.xlu0 %v2533_v9 }
  0xc2   : > { %v567_v20 = vpop.f32.mrf.mxu1  ;;  %v2902_v28 = vmul.f32 %v617_v13, %v524_v63  ;;  %v527_v30 = vadd.f32 %v526_v14, %v2801_v32  ;;  %v2941_v63 = vpop.permute.xlu0 %683 }
  0xc3   : > { %4717 = vst [vmem:[#allocation20_spill] sm:$0xff] %v2890_v10  ;;  %v2896_v12 = vpop.permute.xlu1 %785  ;;  %v568_v33 = vadd.f32 %v567_v20, %v2801_v32  ;;  %v2906_v34 = vmul.f32 %v618_v15, %v565_v1 }
  0xc4   : > { %709 = vrot.lane.b32.xlu0 %v2838_v16, %s2531_s29  ;;  %725 = vrot.lane.b32.xlu2 %v2840_v17, %s2531_s29  ;;  %4719 = vst [vmem:[#allocation22_spill] sm:$0xff] %v2902_v28  ;;  %v587_v35 = vadd.f32 3.0, %v527_v30 }
  0xc5   : > { %846 = vrot.lane.b32.xlu1 %v2838_v16, %s4693_s28  ;;  %4720 = vst [vmem:[#allocation23_spill] sm:$0xff] %v2906_v34  ;;  %v588_v36 = vadd.f32 3.0, %v568_v33 }
  0xc6   : > { %v603_v42 = vmax.f32 %v587_v35, 0.0 }
  0xc7   : > { %v604_v43 = vmax.f32 %v588_v36, 0.0 }
  0xc8   : > { %v2916_v44 = vpop.permute.xlu2 %933  ;;  %v619_v45 = vmin.f32 %v603_v42, 6.0 }
  0xc9   : > { %v529_v41 = vpop.f32.mrf.mxu0  ;;  %4722 = vst [vmem:[#allocation25_spill] sm:$0xff] %v2916_v44  ;;  %v620_v46 = vmin.f32 %v604_v43, 6.0 }
  0xca   : > { %v530_v32 = vadd.f32 %v529_v41, %v2803_v38  ;;  %v2929_v56 = vmul.f32 %v619_v45, %v527_v30  ;;  %v2955_v11 = vpop.permute.xlu0 %925 }
  0xcb   : > { %v2914_v37 = vpop.permute.xlu1 %793  ;;  %v2931_v57 = vmul.f32 %v620_v46, %v568_v33  ;;  %4728 = vst [vmem:[#allocation31_spill] sm:$0xff] %v2955_v11 }
  0xcc   : > { %862 = vrot.lane.b32.xlu0 %v2840_v17, %s4693_s28  ;;  %982 = vrot.lane.b32.xlu2 %v2838_v16, %s2532_s15  ;;  %4721 = vst [vmem:[#allocation24_spill] sm:$0xff] %v2914_v37  ;;  %v589_v48 = vadd.f32 3.0, %v530_v32 }
  0xcd   : > { %735 = vrot.lane.b32.xlu1 %v2854_v40, %s2531_s29  ;;  %4724 = vst [vmem:[#allocation27_spill] sm:$0xff] %v2931_v57 }
  0xce   : > { %v605_v38 = vmax.f32 %v589_v48, 0.0 }
  0xd0   : > { %v2937_v58 = vpop.permute.xlu2 %941  ;;  %v621_v62 = vmin.f32 %v605_v38, 6.0 }
  0xd2   : > { %v2943_v1 = vmul.f32 %v621_v62, %v530_v32  ;;  %v2971_v14 = vpop.permute.xlu0 %945 }
  0xd3   : > { %v2927_v54 = vpop.permute.xlu1 %805 }
  0xd4   : > { %721 = vrot.lane.b32.xlu0 %v2862_v47, %s2531_s29  ;;  %872 = vrot.lane.b32.xlu2 %v2854_v40, %s4693_s28  ;;  %4725 = vst [vmem:[#allocation28_spill] sm:$0xff] %v2943_v1 }
  0xd5   : > { %858 = vrot.lane.b32.xlu1 %v2862_v47, %s4693_s28 }
  0xdb   : > { %v2945_v4 = vpop.permute.xlu1 %917 }
  0xdc   : > { %727 = vrot.lane.b32.xlu0 %v2876_v60, %s2531_s29  ;;  %848 = vrot.lane.b32.xlu2 %v2874_v59, %s4693_s28  ;;  %4726 = vst [vmem:[#allocation29_spill] sm:$0xff] %v2945_v4 }
  0xdd   : > { %711 = vrot.lane.b32.xlu1 %v2874_v59, %s2531_s29 }
  0xe3   : > { %v2961_v0 = vpop.permute.xlu1 %929 }
  0xe4   : > { %984 = vrot.lane.b32.xlu0 %v2874_v59, %s2532_s15  ;;  %737 = vrot.lane.b32.xlu2 %v2890_v10, %s2531_s29  ;;  %4729 = vst [vmem:[#allocation32_spill] sm:$0xff] %v2961_v0 }
  0xe5   : > { %864 = vrot.lane.b32.xlu1 %v2876_v60, %s4693_s28 }
  0xeb   : > { %v2977_v20 = vpop.permute.xlu1 %937 }
  0xec   : > { %874 = vrot.lane.b32.xlu0 %v2890_v10, %s4693_s28  ;;  %713 = vrot.lane.b32.xlu2 %v2902_v28, %s2531_s29  ;;  %4731 = vst [vmem:[#allocation34_spill] sm:$0xff] %v2977_v20 }
  0xed   : > { %729 = vrot.lane.b32.xlu1 %v2906_v34, %s2531_s29 }
  0xf4   : > { %850 = vrot.lane.b32.xlu0 %v2902_v28, %s4693_s28  ;;  %866 = vrot.lane.b32.xlu2 %v2906_v34, %s4693_s28 }
  0xf5   : > { %986 = vrot.lane.b32.xlu1 %v2902_v28, %s2532_s15 }
  0xfc   : > { %715 = vrot.lane.b32.xlu0 %v2929_v56, %s2531_s29  ;;  %731 = vrot.lane.b32.xlu2 %v2931_v57, %s2531_s29 }
  0xfd   : > { %852 = vrot.lane.b32.xlu1 %v2929_v56, %s4693_s28 }
 0x104   : > { %868 = vrot.lane.b32.xlu0 %v2931_v57, %s4693_s28  ;;  %988 = vrot.lane.b32.xlu2 %v2929_v56, %s2532_s15 }
 0x105   : > { %717 = vrot.lane.b32.xlu1 %v2943_v1, %s2531_s29 }
 0x106   : > { %v2953_v6 = vpop.permute.xlu2 %707 }
 0x107   : > { %4727 = vst [vmem:[#allocation30_spill] sm:$0xff] %v2953_v6 }
 0x10c   : > { %996 = vrot.lane.b32.xlu0 %v2808_v52, %s2532_s15  ;;  %854 = vrot.lane.b32.xlu2 %v2943_v1, %s4693_s28 }
 0x10d   : > { %992 = vrot.lane.b32.xlu1 %v2830_v7, %s2532_s15 }
 0x10e   : > { %v2965_v13 = vpop.permute.xlu2 %860 }
 0x10f   : > { %4730 = vst [vmem:[#allocation33_spill] sm:$0xff] %v2965_v13 }
 0x114   : > { %1002 = vrot.lane.b32.xlu0 %v2906_v34, %s2532_s15  ;;  %994 = vrot.lane.b32.xlu2 %v2862_v47, %s2532_s15 }
 0x115   : > { %998 = vrot.lane.b32.xlu1 %v2840_v17, %s2532_s15 }
 0x116   : > { %v2975_v15 = vpop.permute.xlu2 %719 }
 0x11c   : > { %990 = vrot.lane.b32.xlu0 %v2943_v1, %s2532_s15  ;;  %1000 = vrot.lane.b32.xlu2 %v2876_v60, %s2532_s15 }
 0x11d   : > { %1004 = vrot.lane.b32.xlu1 %v2931_v57, %s2532_s15 }
 0x11e   : > { %v2985_v30 = vpop.permute.xlu0 %844  ;;  %v2987_v33 = vpop.permute.xlu2 %725 }
 0x11f   : > { %4732 = vst [vmem:[#allocation35_spill] sm:$0xff] %v2985_v30  ;;  %v2989_v35 = vpop.permute.xlu1 %723 }
 0x120   : > { %4733 = vst [vmem:[#allocation36_spill] sm:$0xff] %v2989_v35 }
 0x124   : > { %1008 = vrot.lane.b32.xlu0 %v2854_v40, %s2532_s15  ;;  %1006 = vrot.lane.b32.xlu2 %v2818_v61, %s2532_s15 }
 0x125   : > { %1010 = vrot.lane.b32.xlu1 %v2890_v10, %s2532_s15 }
 0x126   : > { %v2997_v36 = vpop.permute.xlu0 %733  ;;  %v2999_v41 = vpop.permute.xlu2 %982 }
 0x127   : > { %4734 = vst [vmem:[#allocation37_spill] sm:$0xff] %v2997_v36  ;;  %v3001_v42 = vpop.permute.xlu1 %980  ;;  %v2535_v36 = vmov 3  }
 0x128   : > { %4735 = vst [vmem:[#allocation38_spill] sm:$0xff] %v2999_v41 }
 0x129   : > { %4736 = vst [vmem:[#allocation39_spill] sm:$0xff] %v3001_v42 }
 0x12c   : > { %1057 = vperm.xlu0 %2416, %v2733_v21   ;;  %1053 = vperm.xlu2 %2415, %v2723_v18  }
 0x12d   : > { %1061 = vperm.xlu1 %2417, %v2738_v22  }
 0x12e   : > { %v3006_v43 = vpop.permute.xlu0 %856  ;;  %v3008_v32 = vpop.permute.xlu2 %872 }
 0x12f   : > { %v3010_v45 = vpop.permute.xlu1 %870 }
 0x130   : > { %4737 = vst [vmem:[#allocation40_spill] sm:$0xff] %v3010_v45 }
 0x134   : > { %1077 = vperm.xlu0 %2416, %v2757_v25   ;;  %1065 = vperm.xlu2 %2415, %v2745_v23  }
 0x135   : > { %1069 = vperm.xlu1 %2417, %v2762_v26  }
 0x136   : > { %v3015_v46 = vpop.permute.xlu0 %709  ;;  %v3017_v48 = vpop.permute.xlu2 %848 }
 0x137   : > { %4738 = vst [vmem:[#allocation41_spill] sm:$0xff] %v3017_v48  ;;  %v3019_v38 = vpop.permute.xlu1 %846 }
 0x13c   : > { %1118 = vrot.lane.b32.xlu0 %v2838_v16, %s2534_s17  ;;  %1073 = vperm.xlu2 %2415, %v2768_v27  }
 0x13d   : > { %1081 = vperm.xlu1 %2417, %v2780_v29   ;;  %2418 = vset.pattern.permute.xlu0 %v2535_v36 }
 0x13e   : > { %v3025_v62 = vpop.permute.xlu0 %862  ;;  %v3027_v9 = vpop.permute.xlu2 %737 }
 0x13f   : > { %v3029_v2 = vpop.permute.xlu1 %735 }
 0x144   : > { %1124 = vrot.lane.b32.xlu0 %v2929_v56, %s2534_s17  ;;  %1116 = vrot.lane.b32.xlu2 %v2806_v50, %s2534_s17 }
 0x145   : > { %1120 = vrot.lane.b32.xlu1 %v2874_v59, %s2534_s17  ;;  %2420 = vset.pattern.permute.xlu2 %v2535_v36 }
 0x146   : > { %v3037_v20 = vpop.permute.xlu0 %721  ;;  %v3039_v4 = vpop.permute.xlu2 %713  ;;  %2419 = vset.pattern.permute.xlu1 %v2535_v36 }
 0x147   : > { %4739 = vst [vmem:[#allocation42_spill] sm:$0xff] %v3039_v4  ;;  %v3041_v42 = vpop.permute.xlu1 %858  ;;  %v2537_v4 = vmov 5  }
 0x14c   : > { %1130 = vrot.lane.b32.xlu0 %v2862_v47, %s2534_s17  ;;  %1122 = vrot.lane.b32.xlu2 %v2902_v28, %s2534_s17 }
 0x14d   : > { %1126 = vrot.lane.b32.xlu1 %v2943_v1, %s2534_s17 }
 0x14e   : > { %v3049_v45 = vpop.permute.xlu0 %727  ;;  %v3051_v19 = vpop.permute.xlu2 %866 }
 0x14f   : > { %4740 = vst [vmem:[#allocation43_spill] sm:$0xff] %v3051_v19  ;;  %v3053_v6 = vpop.permute.xlu1 %711 }
 0x154   : > { %1136 = vrot.lane.b32.xlu0 %v2876_v60, %s2534_s17  ;;  %1128 = vrot.lane.b32.xlu2 %v2830_v7, %s2534_s17 }
 0x155   : > { %1132 = vrot.lane.b32.xlu1 %v2808_v52, %s2534_s17 }
 0x156   : > { %v3061_v36 = vpop.permute.xlu0 %984  ;;  %v3063_v35 = vpop.permute.xlu2 %731 }
 0x157   : > { %4741 = vst [vmem:[#allocation44_spill] sm:$0xff] %v3061_v36  ;;  %v3065_v55 = vpop.permute.xlu1 %864 }
 0x158   : > { %4742 = vst [vmem:[#allocation45_spill] sm:$0xff] %v3063_v35 }
 0x159   : > { %4743 = vst [vmem:[#allocation46_spill] sm:$0xff] %v3065_v55 }
 0x15c   : > { %1142 = vrot.lane.b32.xlu0 %v2818_v61, %s2534_s17  ;;  %1134 = vrot.lane.b32.xlu2 %v2840_v17, %s2534_s17 }
 0x15d   : > { %1138 = vrot.lane.b32.xlu1 %v2906_v34, %s2534_s17 }
 0x15e   : > { %v3073_v13 = vpop.permute.xlu0 %874  ;;  %v3075_v30 = vpop.permute.xlu2 %988 }
 0x15f   : > { %4744 = vst [vmem:[#allocation47_spill] sm:$0xff] %v3075_v30  ;;  %v3077_v0 = vpop.permute.xlu1 %729 }
 0x160   : > { %4745 = vst [vmem:[#allocation48_spill] sm:$0xff] %v3077_v0 }
 0x164   : > { %1189 = vperm.xlu0 %2418, %v2723_v18   ;;  %1140 = vrot.lane.b32.xlu2 %v2931_v57, %s2534_s17 }
 0x165   : > { %1144 = vrot.lane.b32.xlu1 %v2854_v40, %s2534_s17 }
 0x166   : > { %v3084_v5 = vpop.permute.xlu0 %850  ;;  %v3086_v37 = vpop.permute.xlu2 %854 }
 0x167   : > { %4746 = vst [vmem:[#allocation49_spill] sm:$0xff] %v3084_v5  ;;  %v3088_v44 = vpop.permute.xlu1 %986 }
 0x168   : > { %4747 = vst [vmem:[#allocation50_spill] sm:$0xff] %v3086_v37 }
 0x169   : > { %4748 = vst [vmem:[#allocation51_spill] sm:$0xff] %v3088_v44 }
 0x16c   : > { %1209 = vperm.xlu0 %2418, %v2768_v27   ;;  %1146 = vrot.lane.b32.xlu2 %v2890_v10, %s2534_s17 }
 0x16d   : > { %1193 = vperm.xlu1 %2419, %v2733_v21  }
 0x16e   : > { %v3094_v51 = vpop.permute.xlu0 %715  ;;  %v995_v19 = vpop.permute.xlu2 %994 }
 0x16f   : > { %4749 = vst [vmem:[#allocation52_spill] sm:$0xff] %v3094_v51  ;;  %v3096_v30 = vpop.permute.xlu1 %852 }
 0x170   : > { %4750 = vst [vmem:[#allocation53_spill] sm:$0xff] %v3096_v30 }
 0x174   : > { %1252 = vrot.lane.b32.xlu0 %v2806_v50, %s2536_s18  ;;  %1197 = vperm.xlu2 %2420, %v2738_v22  }
 0x175   : > { %1201 = vperm.xlu1 %2419, %v2745_v23   ;;  %2423 = vset.pattern.permute.xlu0 %v2537_v4 }
 0x176   : > { %v3102_v37 = vpop.permute.xlu0 %868  ;;  %v3104_v44 = vpop.permute.xlu2 %1000 }
 0x177   : > { %4751 = vst [vmem:[#allocation54_spill] sm:$0xff] %v3102_v37  ;;  %v3106_v5 = vpop.permute.xlu1 %717 }
 0x178   : > { %4752 = vst [vmem:[#allocation55_spill] sm:$0xff] %v3104_v44 }
 0x179   : > { %4753 = vst [vmem:[#allocation56_spill] sm:$0xff] %v3106_v5 }
 0x17c   : > { %1258 = vrot.lane.b32.xlu0 %v2902_v28, %s2536_s18  ;;  %1205 = vperm.xlu2 %2420, %v2762_v26  }
 0x17d   : > { %1213 = vperm.xlu1 %2419, %v2757_v25  }
 0x17e   : > { %v3112_v36 = vpop.permute.xlu0 %996  ;;  %v3114_v41 = vpop.permute.xlu2 %1006 }
 0x17f   : > { %4754 = vst [vmem:[#allocation57_spill] sm:$0xff] %v3112_v36  ;;  %v993_v0 = vpop.permute.xlu1 %992 }
 0x180   : > { %4755 = vst [vmem:[#allocation58_spill] sm:$0xff] %v3114_v41 }
 0x184   : > { %1264 = vrot.lane.b32.xlu0 %v2830_v7, %s2536_s18  ;;  %1217 = vperm.xlu2 %2420, %v2780_v29  }
 0x185   : > { %1254 = vrot.lane.b32.xlu1 %v2838_v16, %s2536_s18 }
 0x186   : > { %v3121_v5 = vpop.permute.xlu0 %1002  ;;  %v3123_v44 = vpop.permute.xlu2 %1053  ;;  %2421 = vset.pattern.permute.xlu1 %v2537_v4 }
 0x187   : > { %4756 = vst [vmem:[#allocation59_spill] sm:$0xff] %v3121_v5  ;;  %v3125_v11 = vpop.permute.xlu1 %998 }
 0x188   : > { %4757 = vst [vmem:[#allocation60_spill] sm:$0xff] %v3123_v44  ;;  %v739_v44 = vlaneseq }
 0x189   : > { %4758 = vst [vmem:[#allocation61_spill] sm:$0xff] %v3125_v11  ;;  %v2325_v11 = vld [vmem:[%s4584_s11 + $0x2] ss:$8 sm:$0x3] }
 0x18a   : > { %v3142_v30 = vand.u32 127, %v739_v44 }
 0x18c   : > { %1270 = vrot.lane.b32.xlu0 %v2840_v17, %s2536_s18  ;;  %1256 = vrot.lane.b32.xlu2 %v2874_v59, %s2536_s18  ;;  %vm1012_vm1 = vcmp.lt.s32.totalorder %v3142_v30, 15  ;;  %vm1148_vm2 = vcmp.lt.s32.totalorder %v3142_v30, 1  ;;  %vm741_vm3 = vcmp.lt.s32.totalorder %v3142_v30, 17  ;;  %vm876_vm4 = vcmp.lt.s32.totalorder %v3142_v30, 16 }
 0x18d   : > { %1260 = vrot.lane.b32.xlu1 %v2929_v56, %s2536_s18  ;;  %2422 = vset.pattern.permute.xlu2 %v2537_v4  ;;  %v3151_v4 = vperm.slane %v2325_v11, 0  ;;  %vm1284_vm5 = vcmp.lt.s32.totalorder %v3142_v30, 127  ;;  %vm1420_vm6 = vcmp.lt.s32.totalorder %v3142_v30, 113  ;;  %vm1556_vm7 = vcmp.lt.s32.totalorder %v3142_v30, 112 }
 0x18e   : > { %v3133_v41 = vpop.permute.xlu0 %990  ;;  %v3135_v36 = vpop.permute.xlu2 %1065  ;;  %vm1692_vm8 = vcmp.lt.s32.totalorder %v3142_v30, 111 }
 0x18f   : > { %4759 = vst [vmem:[#allocation62_spill] sm:$0xff] %v3133_v41  ;;  %v3137_v5 = vpop.permute.xlu1 %1004  ;;  %v3153_v41 = vperm.slane %v2325_v11, 1 }
 0x190   : > { %4760 = vst [vmem:[#allocation63_spill] sm:$0xff] %v3135_v36 }
 0x191   : > { %4761 = vst [vmem:[#allocation64_spill] sm:$0xff] %v3137_v5 }
 0x192   : > { %4762 = vst [vmem:[#allocation65_spill] sm:$0xff] %v3151_v4 }
 0x193   : > { %4763 = vst [vmem:[#allocation66_spill] sm:$0xff] %v3153_v41 }
 0x194   : > { %1276 = vrot.lane.b32.xlu0 %v2931_v57, %s2536_s18  ;;  %1262 = vrot.lane.b32.xlu2 %v2943_v1, %s2536_s18 }
 0x195   : > { %1266 = vrot.lane.b32.xlu1 %v2862_v47, %s2536_s18 }
 0x196   : > { %v1009_v36 = vpop.permute.xlu0 %1008  ;;  %v3155_v5 = vpop.permute.xlu2 %1073 }
 0x197   : > { %4764 = vst [vmem:[#allocation67_spill] sm:$0xff] %v3155_v5  ;;  %v1011_v44 = vpop.permute.xlu1 %1010  ;;  %v1019_v37 = vsel %vm1012_vm1, %v993_v0, %v1009_v36  ;;  %v1027_v51 = vsel %vm1012_vm1, %v1009_v36, %v993_v0 }
 0x198   : > { %v1020_v35 = vsel %vm1012_vm1, %v995_v19, %v1011_v44  ;;  %v1028_v49 = vsel %vm1012_vm1, %v1011_v44, %v995_v19  ;;  %v1048_v39 = vmul.f32 %v3151_v4, %v1027_v51  ;;  %v1049_v11 = vmul.f32 %v3153_v41, %v1019_v37 }
 0x199   : > { %v3168_v31 = vmul.f32 %v3151_v4, %v1028_v49  ;;  %v3171_v5 = vmul.f32 %v3153_v41, %v1020_v35 }
 0x19c   : > { %1282 = vrot.lane.b32.xlu0 %v2890_v10, %s2536_s18  ;;  %1268 = vrot.lane.b32.xlu2 %v2808_v52, %s2536_s18 }
 0x19d   : > { %1272 = vrot.lane.b32.xlu1 %v2876_v60, %s2536_s18 }
 0x19e   : > { %v3179_v19 = vpop.permute.xlu0 %1057  ;;  %v3181_v51 = vpop.permute.xlu2 %1116 }
 0x19f   : > { %4765 = vst [vmem:[#allocation68_spill] sm:$0xff] %v3179_v19  ;;  %v3183_v37 = vpop.permute.xlu1 %1061 }
 0x1a0   : > { %4766 = vst [vmem:[#allocation69_spill] sm:$0xff] %v3181_v51 }
 0x1a1   : > { %4767 = vst [vmem:[#allocation70_spill] sm:$0xff] %v3183_v37 }
 0x1a4   : > { %1333 = vperm.xlu0 %2423, %v2738_v22   ;;  %1274 = vrot.lane.b32.xlu2 %v2906_v34, %s2536_s18 }
 0x1a5   : > { %1278 = vrot.lane.b32.xlu1 %v2818_v61, %s2536_s18 }
 0x1a6   : > { %v1078_v49 = vpop.permute.xlu0 %1077  ;;  %v3190_v0 = vpop.permute.xlu2 %1122 }
 0x1a7   : > { %4768 = vst [vmem:[#allocation71_spill] sm:$0xff] %v3190_v0  ;;  %v3192_v35 = vpop.permute.xlu1 %1069  ;;  %v3194_v36 = vmul.f32 %v1078_v49, %v1048_v39  ;;  %v3196_v44 = vmul.f32 %v1078_v49, %v1049_v11 }
 0x1a8   : > { %4769 = vst [vmem:[#allocation72_spill] sm:$0xff] %v3192_v35 }
 0x1ac   : > { %1353 = vperm.xlu0 %2423, %v2780_v29   ;;  %1280 = vrot.lane.b32.xlu2 %v2854_v40, %s2536_s18 }
 0x1ad   : > { %1325 = vperm.xlu1 %2421, %v2723_v18  }
 0x1ae   : > { %v3202_v22 = vpop.permute.xlu0 %1118  ;;  %v3204_v51 = vpop.permute.xlu2 %1128 }
 0x1af   : > { %v3206_v37 = vpop.permute.xlu1 %1081 }
 0x1b4   : > { %1392 = vrot.lane.b32.xlu0 %v2874_v59, %s2538_s26  ;;  %1329 = vperm.xlu2 %2422, %v2733_v21   ;;  %v2326_v21 = vld [vmem:[%s4584_s11 + $0x3] ss:$8 sm:$0x3] }
 0x1b5   : > { %1337 = vperm.xlu1 %2421, %v2745_v23   ;;  %v3233_v35 = vperm.slane %v2326_v21, 1 }
 0x1b6   : > { %v1125_v29 = vpop.permute.xlu0 %1124  ;;  %v3212_v39 = vpop.permute.xlu2 %1134 }
 0x1b7   : > { %v1121_v11 = vpop.permute.xlu1 %1120  ;;  %4772 = vst [vmem:[#allocation75_spill] sm:$0xff] %v3233_v35 }
 0x1bc   : > { %1398 = vrot.lane.b32.xlu0 %v2943_v1, %s2538_s26  ;;  %1341 = vperm.xlu2 %2422, %v2762_v26   ;;  %v3231_v1 = vperm.slane %v2326_v21, 0  ;;  %v758_v21 = vld [vmem:[%s4584_s11] ss:$8 sm:$0x3] }
 0x1bd   : > { %1345 = vperm.xlu1 %2421, %v2768_v27   ;;  %v3274_v24 = vperm.slane %v758_v21, 1 }
 0x1be   : > { %v1131_v18 = vpop.permute.xlu0 %1130  ;;  %v1141_v49 = vpop.permute.xlu2 %1140  ;;  %4771 = vst [vmem:[#allocation74_spill] sm:$0xff] %v3231_v1 }
 0x1bf   : > { %v3218_v0 = vpop.permute.xlu1 %1126 }
 0x1c4   : > { %1404 = vrot.lane.b32.xlu0 %v2808_v52, %s2538_s26  ;;  %1349 = vperm.xlu2 %2422, %v2757_v25  }
 0x1c5   : > { %1388 = vrot.lane.b32.xlu1 %v2806_v50, %s2538_s26 }
 0x1c6   : > { %v1137_v23 = vpop.permute.xlu0 %1136  ;;  %v1147_v26 = vpop.permute.xlu2 %1146 }
 0x1c7   : > { %v3229_v27 = vpop.permute.xlu1 %1132  ;;  %v1156_v25 = vsel %vm1148_vm2, %v1131_v18, %v1147_v26  ;;  %v1164_v19 = vsel %vm1148_vm2, %v1147_v26, %v1131_v18  ;;  %v1151_v50 = vsel %vm1148_vm2, %v1121_v11, %v1137_v23  ;;  %v3268_v26 = vperm.slane %v758_v21, 0 }
 0x1c8   : > { %4770 = vst [vmem:[#allocation73_spill] sm:$0xff] %v3229_v27  ;;  %v3240_v41 = vmul.f32 %v3231_v1, %v1164_v19  ;;  %v3243_v4 = vmul.f32 %v3233_v35, %v1156_v25  ;;  %v1159_v27 = vsel %vm1148_vm2, %v1137_v23, %v1121_v11  ;;  %v2324_v19 = vld [vmem:[%s4584_s11 + $0x1] ss:$8 sm:$0x3]  ;;  %v757_v11 = vsel %vm741_vm3, %v3027_v9, %v3037_v20 }
 0x1c9   : > { %v1176_v18 = vmul.f32 %v3231_v1, %v1159_v27  ;;  %v1177_v23 = vmul.f32 %v3233_v35, %v1151_v50  ;;  %4773 = vst [vmem:[#allocation76_spill] sm:$0xff] %v3268_v26  ;;  %v749_v25 = vsel %vm741_vm3, %v3037_v20, %v3027_v9  ;;  %v3283_v50 = vperm.slane %v2324_v19, 0 }
 0x1ca   : > { %v3286_v53 = vperm.slane %v2324_v19, 1  ;;  %v779_v20 = vmul.f32 %v3274_v24, %v749_v25  ;;  %v884_v9 = vsel %vm876_vm4, %v3041_v42, %v3073_v13  ;;  %v1153_v21 = vsel %vm1148_vm2, %v1125_v29, %v1141_v49 }
 0x1cb   : > { %v4659_v19 = vmov 6  }
 0x1cc   : > { %1410 = vrot.lane.b32.xlu0 %v2906_v34, %s2538_s26  ;;  %1390 = vrot.lane.b32.xlu2 %v2838_v16, %s2538_s26 }
 0x1cd   : > { %1394 = vrot.lane.b32.xlu1 %v2902_v28, %s2538_s26  ;;  %v778_v28 = vmul.f32 %v3268_v26, %v757_v11  ;;  %v1161_v11 = vsel %vm1148_vm2, %v1141_v49, %v1125_v29  ;;  %v1181_v29 = vmul.f32 %v3233_v35, %v1153_v21  ;;  %2424 = vset.pattern.permute.xlu2 %v4659_v19 }
 0x1ce   : > { %v1143_v34 = vpop.permute.xlu0 %1142  ;;  %v1198_v59 = vpop.permute.xlu2 %1197  ;;  %2425 = vset.pattern.permute.xlu1 %v4659_v19 }
 0x1cf   : > { %v3276_v55 = vpop.permute.xlu1 %1138  ;;  %v3278_v48 = vmul.f32 %v1198_v59, %v1176_v18  ;;  %v3280_v27 = vmul.f32 %v1198_v59, %v1177_v23  ;;  %v892_v59 = vsel %vm876_vm4, %v3073_v13, %v3041_v42  ;;  %v4657_v18 = vmov 7  }
 0x1d0   : > { %4774 = vst [vmem:[#allocation77_spill] sm:$0xff] %v3276_v55  ;;  %2427 = vset.pattern.permute.xlu0 %v4657_v18  ;;  %v826_v23 = vmul.f32 %v2888_v8, %v778_v28  ;;  %v914_v25 = vmul.f32 %v3283_v50, %v892_v59  ;;  %v915_v55 = vmul.f32 %v3286_v53, %v884_v9 }
 0x1d1   : > { %4775 = vst [vmem:[#allocation78_spill] sm:$0xff] %v3278_v48  ;;  %v827_v13 = vmul.f32 %v2888_v8, %v779_v20  ;;  %v1180_v42 = vmul.f32 %v3231_v1, %v1161_v11  ;;  %v705_v9 = vmul.f32 %v2884_v3, %v2862_v47  ;;  %v706_v59 = vmul.f32 %v2884_v3, %v2890_v10 }
 0x1d2   : > { %4776 = vst [vmem:[#allocation79_spill] sm:$0xff] %v3280_v27  ;;  %v962_v11 = vmul.f32 %v2971_v14, %v914_v25  ;;  %v963_v21 = vmul.f32 %v2971_v14, %v915_v55  ;;  %v1098_v25 = vmul.f32 %v3206_v37, %v3168_v31  ;;  %v1099_v55 = vmul.f32 %v3206_v37, %v3171_v5 }
 0x1d3   : > { %v842_v27 = vadd.f32 %v826_v23, %v705_v9  ;;  %v843_v48 = vadd.f32 %v827_v13, %v706_v59  ;;  %v1154_v14 = vsel %vm1148_vm2, %v3218_v0, %v1143_v34  ;;  %v1158_v31 = vsel %vm1148_vm2, %v3212_v39, %v3202_v22 }
 0x1d4   : > { %1416 = vrot.lane.b32.xlu0 %v2854_v40, %s2538_s26  ;;  %1396 = vrot.lane.b32.xlu2 %v2929_v56, %s2538_s26  ;;  %v756_v37 = vsel %vm741_vm3, %v3029_v2, %v2975_v15 }
 0x1d5   : > { %1400 = vrot.lane.b32.xlu1 %v2830_v7, %s2538_s26  ;;  %v979_v5 = vadd.f32 %v963_v21, %v843_v48  ;;  %v1183_v48 = vmul.f32 %v3233_v35, %v1154_v14 }
 0x1d6   : > { %v3316_v28 = vpop.permute.xlu0 %1189  ;;  %v1206_v49 = vpop.permute.xlu2 %1205 }
 0x1d7   : > { %4777 = vst [vmem:[#allocation80_spill] sm:$0xff] %v3316_v28  ;;  %v1145_v18 = vpop.permute.xlu1 %1144  ;;  %v3322_v8 = vmul.f32 %v1206_v49, %v1180_v42  ;;  %v3324_v20 = vmul.f32 %v1206_v49, %v1181_v29 }
 0x1d8   : > { %v1155_v19 = vsel %vm1148_vm2, %v3204_v51, %v1145_v18  ;;  %v1163_v28 = vsel %vm1148_vm2, %v1145_v18, %v3204_v51  ;;  %v1162_v51 = vsel %vm1148_vm2, %v1143_v34, %v3218_v0  ;;  %v978_v18 = vadd.f32 %v962_v11, %v842_v27 }
 0x1d9   : > { %v3335_v3 = vmul.f32 %v3231_v1, %v1163_v28  ;;  %v3338_v42 = vmul.f32 %v3233_v35, %v1155_v19  ;;  %v1150_v19 = vsel %vm1148_vm2, %v3202_v22, %v3212_v39  ;;  %v748_v34 = vsel %vm741_vm3, %v2975_v15, %v3029_v2 }
 0x1da   : > { %v1182_v0 = vmul.f32 %v3231_v1, %v1162_v51  ;;  %v1114_v22 = vadd.f32 %v1098_v25, %v978_v18  ;;  %v1115_v39 = vadd.f32 %v1099_v55, %v979_v5  ;;  %v1174_v27 = vmul.f32 %v3231_v1, %v1158_v31  ;;  %v4815_v1 = vld [vmem:[#allocation47_spill] sm:$0xff] }
 0x1db   : > { %v1175_v23 = vmul.f32 %v3233_v35, %v1150_v19  ;;  %v776_v55 = vmul.f32 %v3268_v26, %v756_v37  ;;  %v777_v14 = vmul.f32 %v3274_v24, %v748_v34  ;;  %v703_v34 = vmul.f32 %v2941_v63, %v2830_v7 }
 0x1dc   : > { %1540 = vrot.lane.b32.xlu0 %v2808_v52, %s2541_s20  ;;  %1402 = vrot.lane.b32.xlu2 %v2862_v47, %s2538_s26  ;;  %v704_v37 = vmul.f32 %v2941_v63, %v2854_v40  ;;  %v4801_v47 = vld [vmem:[#allocation54_spill] sm:$0xff]  ;;  %v4805_v40 = vld [vmem:[#allocation48_spill] sm:$0xff] }
 0x1dd   : > { %1406 = vrot.lane.b32.xlu1 %v2840_v17, %s2538_s26  ;;  %v824_v51 = vmul.f32 %v2927_v54, %v776_v55  ;;  %v825_v19 = vmul.f32 %v2927_v54, %v777_v14 }
 0x1de   : > { %v1210_v13 = vpop.permute.xlu0 %1209  ;;  %v1218_v29 = vpop.permute.xlu2 %1217 }
 0x1df   : > { %v1194_v28 = vpop.permute.xlu1 %1193  ;;  %v3376_v49 = vmul.f32 %v1210_v13, %v1182_v0  ;;  %v3378_v9 = vmul.f32 %v1210_v13, %v1183_v48  ;;  %v1234_v2 = vmul.f32 %v1218_v29, %v3240_v41  ;;  %v1235_v15 = vmul.f32 %v1218_v29, %v3243_v4 }
 0x1e0   : > { %v3382_v59 = vmul.f32 %v1194_v28, %v1174_v27  ;;  %v3384_v11 = vmul.f32 %v1194_v28, %v1175_v23  ;;  %v883_v41 = vsel %vm876_vm4, %v3006_v43, %v3008_v32  ;;  %v891_v4 = vsel %vm876_vm4, %v3008_v32, %v3006_v43 }
 0x1e1   : > { %4778 = vst [vmem:[#allocation81_spill] sm:$0xff] %v3376_v49  ;;  %v3386_v21 = vadd.f32 %v1234_v2, %v1114_v22  ;;  %v3388_v25 = vadd.f32 %v1235_v15, %v1115_v39  ;;  %v912_v43 = vmul.f32 %v3283_v50, %v891_v4  ;;  %v913_v32 = vmul.f32 %v3286_v53, %v883_v41 }
 0x1e2   : > { %4779 = vst [vmem:[#allocation82_spill] sm:$0xff] %v3378_v9  ;;  %v840_v0 = vadd.f32 %v824_v51, %v703_v34  ;;  %v841_v48 = vadd.f32 %v825_v19, %v704_v37  ;;  %v751_v15 = vsel %vm741_vm3, %v2987_v33, %v3015_v46  ;;  %v878_v4 = vsel %vm876_vm4, %v3019_v38, %v3025_v62  ;;  %v4800_v9 = vld [vmem:[#allocation52_spill] sm:$0xff] }
 0x1e3   : > { %4780 = vst [vmem:[#allocation83_spill] sm:$0xff] %v3386_v21  ;;  %v960_v22 = vmul.f32 %v2937_v58, %v912_v43  ;;  %v961_v54 = vmul.f32 %v2937_v58, %v913_v32  ;;  %v752_v51 = vsel %vm741_vm3, %v3049_v45, %v3053_v6  ;;  %v744_v37 = vsel %vm741_vm3, %v3053_v6, %v3049_v45  ;;  %v4787_v45 = vld [vmem:[#allocation26_spill] sm:$0xff] }
 0x1e4   : > { %4781 = vst [vmem:[#allocation84_spill] sm:$0xff] %v3388_v25  ;;  %1544 = vrot.lane.b32.xlu0 %v2876_v60, %s2541_s20  ;;  %1408 = vrot.lane.b32.xlu2 %v2876_v60, %s2538_s26  ;;  %v769_v6 = vmul.f32 %v3274_v24, %v744_v37 }
 0x1e5   : > { %1412 = vrot.lane.b32.xlu1 %v2931_v57, %s2538_s26  ;;  %v976_v63 = vadd.f32 %v960_v22, %v840_v0  ;;  %v977_v39 = vadd.f32 %v961_v54, %v841_v48  ;;  %v903_v48 = vmul.f32 %v3286_v53, %v878_v4  ;;  %v768_v22 = vmul.f32 %v3268_v26, %v752_v51  ;;  %v4795_v51 = vld [vmem:[#allocation5_spill] sm:$0xff] }
 0x1e6   : > { %v1253_v31 = vpop.permute.xlu0 %1252  ;;  %v3408_v18 = vpop.permute.xlu2 %1256 }
 0x1e7   : > { %v3410_v5 = vpop.permute.xlu1 %1201  ;;  %v1112_v29 = vadd.f32 %v3194_v36, %v976_v63  ;;  %v1113_v58 = vadd.f32 %v3196_v44, %v977_v39  ;;  %v743_v36 = vsel %vm741_vm3, %v3015_v46, %v2987_v33  ;;  %v3447_v44 = vld [vmem:[%s4576_s3 + $0x8] sm:$0xff]  ;;  %v886_v33 = vsel %vm876_vm4, %v3025_v62, %v3019_v38  ;;  %v3465_v46 = vld [vmem:[%s4576_s3 + $0x10] sm:$0xff]  ;;  %v4788_v39 = vld [vmem:[#allocation41_spill] sm:$0xff] }
 0x1e8   : > { %4782 = vst [vmem:[#allocation85_spill] sm:$0xff] %v3410_v5  ;;  %v767_v41 = vmul.f32 %v3274_v24, %v743_v36  ;;  %v902_v62 = vmul.f32 %v3283_v50, %v886_v33  ;;  %v693_v63 = vmul.f32 %v4787_v45, %v2838_v16  ;;  %v4792_v36 = vld [vmem:[#allocation18_spill] sm:$0xff] }
 0x1e9   : > { %4785 = vst [vmem:[#allocation88_spill] sm:$0xff] %v3447_v44 }
 0x1ea   : > { %4786 = vst [vmem:[#allocation89_spill] sm:$0xff] %v3465_v46  ;;  %v815_v54 = vmul.f32 %v2896_v12, %v767_v41  ;;  %v4794_v41 = vld [vmem:[#allocation13_spill] sm:$0xff] }
 0x1eb   : > { %v816_v4 = vmul.f32 %v4794_v41, %v768_v22  ;;  %v817_v37 = vmul.f32 %v4794_v41, %v769_v6 }
 0x1ec   : > { %1676 = vrot.lane.b32.xlu0 %v2808_v52, %s2542_s0  ;;  %1414 = vrot.lane.b32.xlu2 %v2818_v61, %s2538_s26  ;;  %v4810_v61 = vmov 6  }
 0x1ed   : > { %1418 = vrot.lane.b32.xlu1 %v2890_v10, %s2538_s26  ;;  %v4804_v10 = vld [vmem:[#allocation42_spill] sm:$0xff] }
 0x1ee   : > { %v1259_v27 = vpop.permute.xlu0 %1258  ;;  %v3426_v23 = vpop.permute.xlu2 %1262 }
 0x1ef   : > { %v1214_v13 = vpop.permute.xlu1 %1213 }
 0x1f0   : > { %v1232_v28 = vmul.f32 %v1214_v13, %v3335_v3  ;;  %v1233_v2 = vmul.f32 %v1214_v13, %v3338_v42  ;;  %v3453_v3 = vld [vmem:[%s4576_s3] sm:$0xff]  ;;  %v766_v42 = vmul.f32 %v3268_v26, %v751_v15  ;;  %v4789_v13 = vld [vmem:[#allocation46_spill] sm:$0xff] }
 0x1f2   : > { %v3436_v55 = vadd.f32 %v1232_v28, %v1112_v29  ;;  %v3438_v14 = vadd.f32 %v1233_v2, %v1113_v58  ;;  %v814_v0 = vmul.f32 %v2896_v12, %v766_v42  ;;  %v694_v29 = vmul.f32 %v4787_v45, %v2840_v17  ;;  %v4790_v58 = vld [vmem:[#allocation21_spill] sm:$0xff]  ;;  %v3510_v12 = vld [vmem:[%s4576_s3 + $0x18] sm:$0xff] }
 0x1f3   : > { %v950_v28 = vmul.f32 %v4790_v58, %v902_v62  ;;  %4791 = vst [vmem:[#allocation26_spill] sm:$0xff] %v3510_v12  ;;  %v951_v15 = vmul.f32 %v4790_v58, %v903_v48  ;;  %v4793_v42 = vld [vmem:[#allocation12_spill] sm:$0xff]  ;;  %v879_v62 = vsel %vm876_vm4, %v4788_v39, %v4789_v13 }
 0x1f4   : > { %4783 = vst [vmem:[#allocation86_spill] sm:$0xff] %v3436_v55  ;;  %1601 = vperm.xlu0 %2427, %v3447_v44   ;;  %1461 = vperm.xlu2 %2424, %v3453_v3   ;;  %v830_v2 = vadd.f32 %v814_v0, %v693_v63  ;;  %v695_v33 = vmul.f32 %v4793_v42, %v4792_v36 }
 0x1f5   : > { %4784 = vst [vmem:[#allocation87_spill] sm:$0xff] %v3438_v14  ;;  %1469 = vperm.xlu1 %2425, %v3465_v46   ;;  %v905_v52 = vmul.f32 %v3286_v53, %v879_v62  ;;  %v4816_v14 = vld [vmem:[#allocation64_spill] sm:$0xff] }
 0x1f6   : > { %v3477_v19 = vpop.permute.xlu0 %1264  ;;  %v1269_v34 = vpop.permute.xlu2 %1268  ;;  %v832_v41 = vadd.f32 %v816_v4, %v695_v33  ;;  %v4803_v33 = vld [vmem:[#allocation31_spill] sm:$0xff] }
 0x1f7   : > { %v1255_v43 = vpop.permute.xlu1 %1254  ;;  %v3485_v32 = vsel %vm1284_vm5, %v1253_v31, %v1269_v34  ;;  %v3489_v38 = vsel %vm1284_vm5, %v1269_v34, %v1253_v31  ;;  %v887_v31 = vsel %vm876_vm4, %v4789_v13, %v4788_v39  ;;  %v831_v34 = vadd.f32 %v815_v54, %v694_v29  ;;  %v4798_v13 = vld [vmem:[#allocation16_spill] sm:$0xff] }
 0x1f8   : > { %v904_v0 = vmul.f32 %v3283_v50, %v887_v31  ;;  %v696_v39 = vmul.f32 %v4793_v42, %v2876_v60  ;;  %v3545_v31 = vmul.f32 %v4798_v13, %v2929_v56  ;;  %v3549_v29 = vmul.f32 %v4798_v13, %v2931_v57  ;;  %v4802_v13 = vld [vmem:[#allocation53_spill] sm:$0xff] }
 0x1f9   : > { %v967_v42 = vadd.f32 %v951_v15, %v831_v34  ;;  %v4806_v15 = vld [vmem:[#allocation61_spill] sm:$0xff]  ;;  %v4807_v34 = vld [vmem:[#allocation38_spill] sm:$0xff] }
 0x1fa   : > { %v952_v4 = vmul.f32 %v4803_v33, %v904_v0  ;;  %v1022_v62 = vsel %vm1012_vm1, %v4806_v15, %v4807_v34 }
 0x1fc   : > { %1605 = vperm.xlu0 %2427, %v3465_v46   ;;  %1473 = vperm.xlu2 %2424, %v3510_v12  }
 0x1fd   : > { %1524 = vrot.lane.b32.xlu1 %v4795_v51, %s2541_s20 }
 0x1fe   : > { %v1271_v45 = vpop.permute.xlu0 %1270  ;;  %v1275_v48 = vpop.permute.xlu2 %1274 }
 0x1ff   : > { %v1261_v63 = vpop.permute.xlu1 %1260  ;;  %v3527_v58 = vsel %vm1284_vm5, %v1255_v43, %v1271_v45  ;;  %v3531_v22 = vsel %vm1284_vm5, %v1271_v45, %v1255_v43  ;;  %v3535_v54 = vsel %vm1284_vm5, %v1259_v27, %v1275_v48  ;;  %v3539_v6 = vsel %vm1284_vm5, %v1275_v48, %v1259_v27  ;;  %v4799_v45 = vld [vmem:[#allocation45_spill] sm:$0xff] }
 0x200   : > { %4796 = vst [vmem:[#allocation41_spill] sm:$0xff] %v3535_v54  ;;  %v966_v43 = vadd.f32 %v950_v28, %v830_v2  ;;  %v746_v49 = vsel %vm741_vm3, %v4800_v9, %v4799_v45  ;;  %v754_v27 = vsel %vm741_vm3, %v4799_v45, %v4800_v9  ;;  %v3559_v48 = vadd.f32 %v817_v37, %v696_v39  ;;  %v4808_v45 = vld [vmem:[#allocation55_spill] sm:$0xff] }
 0x201   : > { %4797 = vst [vmem:[#allocation46_spill] sm:$0xff] %v3539_v6  ;;  %v881_v28 = vsel %vm876_vm4, %v4802_v13, %v4801_v47  ;;  %v889_v2 = vsel %vm876_vm4, %v4801_v47, %v4802_v13  ;;  %v753_v9 = vsel %vm741_vm3, %v4805_v40, %v4804_v10  ;;  %v1014_v37 = vsel %vm1012_vm1, %v4807_v34, %v4806_v15  ;;  %v2327_v47 = vld [vmem:[%s4584_s11 + $0x4] ss:$8 sm:$0x3]  ;;  %v4809_v13 = vld [vmem:[#allocation44_spill] sm:$0xff] }
 0x202   : > { %v772_v0 = vmul.f32 %v3268_v26, %v754_v27  ;;  %v773_v39 = vmul.f32 %v3274_v24, %v746_v49  ;;  %v1015_v12 = vsel %vm1012_vm1, %v4809_v13, %v4808_v45  ;;  %v908_v15 = vmul.f32 %v3283_v50, %v889_v2  ;;  %v4811_v49 = vld [vmem:[#allocation65_spill] sm:$0xff] }
 0x203   : > { %v909_v34 = vmul.f32 %v3286_v53, %v881_v28  ;;  %v1023_v27 = vsel %vm1012_vm1, %v4808_v45, %v4809_v13  ;;  %v1038_v57 = vmul.f32 %v4811_v49, %v1022_v62  ;;  %v3606_v60 = vperm.slane %v2327_v47, 0 }
 0x204   : > { %2428 = vset.pattern.permute.xlu0 %v4810_v61  ;;  %1526 = vrot.lane.b32.xlu2 %v2838_v16, %s2541_s20  ;;  %v4812_v61 = vld [vmem:[#allocation66_spill] sm:$0xff]  ;;  %v3608_v46 = vperm.slane %v2327_v47, 1  ;;  %v4813_v6 = vmov 7   ;;  %v4681_v54 = vmov 8  }
 0x205   : > { %1542 = vrot.lane.b32.xlu1 %v2840_v17, %s2541_s20  ;;  %1465 = vperm.xlu0 %2428, %v3447_v44   ;;  %v1039_v7 = vmul.f32 %v4812_v61, %v1014_v37  ;;  %v4814_v44 = vld [vmem:[#allocation68_spill] sm:$0xff] }
 0x206   : > { %v1277_v2 = vpop.permute.xlu0 %1276  ;;  %v1281_v28 = vpop.permute.xlu2 %1280  ;;  %2426 = vset.pattern.permute.xlu2 %v4813_v6  ;;  %2429 = vset.pattern.permute.xlu1 %v4681_v54  ;;  %v1086_v6 = vmul.f32 %v4814_v44, %v1038_v57  ;;  %v1025_v57 = vsel %vm1012_vm1, %v4816_v14, %v4815_v1 }
 0x207   : > { %v1267_v45 = vpop.permute.xlu1 %1266  ;;  %v1289_v13 = vsel %vm1284_vm5, %v1261_v63, %v1277_v2  ;;  %v1297_v62 = vsel %vm1284_vm5, %v1277_v2, %v1261_v63  ;;  %v1291_v37 = vsel %vm1284_vm5, %v3477_v19, %v1281_v28  ;;  %v1299_v47 = vsel %vm1284_vm5, %v1281_v28, %v3477_v19  ;;  %v4818_v28 = vld [vmem:[#allocation43_spill] sm:$0xff] }
 0x208   : > { %v1087_v5 = vmul.f32 %v4814_v44, %v1039_v7  ;;  %v3625_v54 = vmul.f32 %v3606_v60, %v1291_v37  ;;  %v3628_v35 = vmul.f32 %v3608_v46, %v1299_v47  ;;  %v953_v63 = vmul.f32 %v4803_v33, %v905_v52  ;;  %v4817_v44 = vld [vmem:[#allocation49_spill] sm:$0xff] }
 0x209   : > { %v745_v2 = vsel %vm741_vm3, %v4804_v10, %v4805_v40  ;;  %v968_v19 = vadd.f32 %v952_v4, %v832_v41  ;;  %v770_v7 = vmul.f32 %v3268_v26, %v753_v9  ;;  %v888_v37 = vsel %vm876_vm4, %v4818_v28, %v4817_v44  ;;  %v4819_v47 = vld [vmem:[#allocation17_spill] sm:$0xff] }
 0x20a   : > { %v820_v52 = vmul.f32 %v4819_v47, %v772_v0  ;;  %v1017_v40 = vsel %vm1012_vm1, %v4815_v1, %v4816_v14  ;;  %v821_v10 = vmul.f32 %v4819_v47, %v773_v39  ;;  %v4820_v33 = vld [vmem:[#allocation25_spill] sm:$0xff]  ;;  %v1040_v41 = vmul.f32 %v4811_v49, %v1023_v27 }
 0x20b   : > { %v956_v55 = vmul.f32 %v4820_v33, %v908_v15  ;;  %v1041_v4 = vmul.f32 %v4812_v61, %v1015_v12  ;;  %v957_v9 = vmul.f32 %v4820_v33, %v909_v34  ;;  %v1044_v26 = vmul.f32 %v4811_v49, %v1025_v57  ;;  %v4821_v12 = vld [vmem:[#allocation70_spill] sm:$0xff] }
 0x20c   : > { %v1102_v25 = vadd.f32 %v1086_v6, %v966_v43  ;;  %v1103_v21 = vadd.f32 %v1087_v5, %v967_v42  ;;  %1528 = vrot.lane.b32.xlu2 %v4792_v36, %s2541_s20  ;;  %v1045_v0 = vmul.f32 %v4812_v61, %v1017_v40  ;;  %v1310_v1 = vmul.f32 %v3606_v60, %v3527_v58 }
 0x20d   : > { %v1311_v14 = vmul.f32 %v3608_v46, %v3531_v22  ;;  %1660 = vrot.lane.b32.xlu1 %v4795_v51, %s2542_s0  ;;  %1532 = vrot.lane.b32.xlu0 %v2929_v56, %s2541_s20  ;;  %v1088_v6 = vmul.f32 %v4821_v12, %v1040_v41  ;;  %v1089_v5 = vmul.f32 %v4821_v12, %v1041_v4  ;;  %v4823_v12 = vld [vmem:[#allocation24_spill] sm:$0xff] }
 0x20e   : > { %v1238_v43 = vadd.f32 %v3382_v59, %v1102_v25  ;;  %v1239_v42 = vadd.f32 %v3384_v11, %v1103_v21  ;;  %v1283_v39 = vpop.permute.xlu0 %1282  ;;  %v1330_v15 = vpop.permute.xlu2 %1329  ;;  %v836_v25 = vadd.f32 %v820_v52, %v3545_v31  ;;  %v771_v41 = vmul.f32 %v3274_v24, %v745_v2 }
 0x20f   : > { %v1273_v58 = vpop.permute.xlu1 %1272  ;;  %v1292_v22 = vsel %vm1284_vm5, %v1267_v45, %v1283_v39  ;;  %v1300_v34 = vsel %vm1284_vm5, %v1283_v39, %v1267_v45  ;;  %v1358_v27 = vmul.f32 %v1330_v15, %v1310_v1  ;;  %v1359_v57 = vmul.f32 %v1330_v15, %v1311_v14  ;;  %v4822_v1 = vld [vmem:[#allocation72_spill] sm:$0xff] }
 0x210   : > { %v1287_v47 = vsel %vm1284_vm5, %v3408_v18, %v1273_v58  ;;  %v1295_v59 = vsel %vm1284_vm5, %v1273_v58, %v3408_v18  ;;  %v3681_v11 = vmul.f32 %v3606_v60, %v1292_v22  ;;  %v3684_v21 = vmul.f32 %v3608_v46, %v1300_v34 }
 0x211   : > { %v969_v45 = vadd.f32 %v953_v63, %v3559_v48  ;;  %v3688_v40 = vadd.f32 %v1358_v27, %v1238_v43  ;;  %v3690_v33 = vadd.f32 %v1359_v57, %v1239_v42  ;;  %v837_v4 = vadd.f32 %v821_v10, %v3549_v29 }
 0x212   : > { %v1092_v18 = vmul.f32 %v4822_v1, %v1044_v26  ;;  %v1093_v14 = vmul.f32 %v4822_v1, %v1045_v0  ;;  %v818_v39 = vmul.f32 %v4823_v12, %v770_v7  ;;  %v880_v31 = vsel %vm876_vm4, %v4817_v44, %v4818_v28  ;;  %v4824_v44 = vld [vmem:[#allocation23_spill] sm:$0xff]  ;;  %v4825_v28 = vld [vmem:[#allocation78_spill] sm:$0xff] }
 0x213   : > { %v906_v48 = vmul.f32 %v3283_v50, %v888_v37  ;;  %v972_v63 = vadd.f32 %v956_v55, %v836_v25  ;;  %v1104_v52 = vadd.f32 %v1088_v6, %v968_v19  ;;  %v1105_v43 = vadd.f32 %v1089_v5, %v969_v45  ;;  %v4830_v45 = vld [vmem:[#allocation59_spill] sm:$0xff] }
 0x214   : > { %v973_v42 = vadd.f32 %v957_v9, %v837_v4  ;;  %v1316_v2 = vmul.f32 %v3606_v60, %v1289_v13  ;;  %1662 = vrot.lane.b32.xlu2 %v2838_v16, %s2542_s0  ;;  %v1317_v26 = vmul.f32 %v3608_v46, %v1297_v62  ;;  %v1312_v29 = vmul.f32 %v3606_v60, %v1287_v47  ;;  %v4826_v13 = vld [vmem:[#allocation79_spill] sm:$0xff] }
 0x215   : > { %v1313_v7 = vmul.f32 %v3608_v46, %v1295_v59  ;;  %1678 = vrot.lane.b32.xlu1 %v2840_v17, %s2542_s0  ;;  %1682 = vrot.lane.b32.xlu0 %v4824_v44, %s2542_s0  ;;  %v1108_v55 = vadd.f32 %v1092_v18, %v972_v63  ;;  %v1240_v37 = vadd.f32 %v4825_v28, %v1104_v52  ;;  %v4827_v59 = vld [vmem:[#allocation22_spill] sm:$0xff]  ;;  %v4831_v63 = vld [vmem:[#allocation32_spill] sm:$0xff] }
 0x216   : > { %v1109_v19 = vadd.f32 %v1093_v14, %v973_v42  ;;  %v1241_v10 = vadd.f32 %v4826_v13, %v1105_v43  ;;  %v1334_v9 = vpop.permute.xlu0 %1333  ;;  %v1342_v16 = vpop.permute.xlu2 %1341  ;;  %v907_v27 = vmul.f32 %v3286_v53, %v880_v31  ;;  %v819_v14 = vmul.f32 %v4823_v12, %v771_v41  ;;  %v3757_v41 = vld [vmem:[%s4576_s3 + $0x28] sm:$0xff]  ;;  %v4832_v12 = vld [vmem:[#allocation77_spill] sm:$0xff] }
 0x217   : > { %v1279_v0 = vpop.permute.xlu1 %1278  ;;  %v1360_v62 = vmul.f32 %v1334_v9, %v1312_v29  ;;  %v1361_v6 = vmul.f32 %v1334_v9, %v1313_v7  ;;  %v1364_v5 = vmul.f32 %v1342_v16, %v1316_v2  ;;  %v1365_v15 = vmul.f32 %v1342_v16, %v1317_v26 }
 0x218   : > { %v1244_v58 = vadd.f32 %v3322_v8, %v1108_v55  ;;  %v1245_v17 = vadd.f32 %v3324_v20, %v1109_v19  ;;  %v3719_v22 = vsel %vm1284_vm5, %v3426_v23, %v1279_v0  ;;  %v3724_v34 = vsel %vm1284_vm5, %v1279_v0, %v3426_v23  ;;  %v4828_v8 = vld [vmem:[#allocation9_spill] sm:$0xff]  ;;  %v4829_v20 = vld [vmem:[#allocation51_spill] sm:$0xff] }
 0x219   : > { %v3727_v57 = vadd.f32 %v1360_v62, %v1240_v37  ;;  %v3729_v47 = vadd.f32 %v1361_v6, %v1241_v10  ;;  %v697_v25 = vmul.f32 %v4828_v8, %v4827_v59  ;;  %v1024_v4 = vsel %vm1012_vm1, %v4830_v45, %v4829_v20  ;;  %v4834_v0 = vld [vmem:[#allocation63_spill] sm:$0xff] }
 0x21a   : > { %v3737_v1 = vadd.f32 %v1364_v5, %v1244_v58  ;;  %v3739_v18 = vadd.f32 %v1365_v15, %v1245_v17  ;;  %v698_v23 = vmul.f32 %v4828_v8, %v4824_v44  ;;  %v954_v52 = vmul.f32 %v4831_v63, %v906_v48  ;;  %v4837_v15 = vld [vmem:[#allocation84_spill] sm:$0xff]  ;;  %v4843_v8 = vld [vmem:[#allocation74_spill] sm:$0xff] }
 0x21b   : > { %v834_v31 = vadd.f32 %v818_v39, %v697_v25  ;;  %v955_v43 = vmul.f32 %v4831_v63, %v907_v27  ;;  %v1016_v42 = vsel %vm1012_vm1, %v4829_v20, %v4830_v45  ;;  %v1042_v2 = vmul.f32 %v4811_v49, %v1024_v4  ;;  %v4833_v39 = vld [vmem:[#allocation71_spill] sm:$0xff] }
 0x21c   : > { %1597 = vperm.xlu2 %2426, %v3453_v3   ;;  %v1152_v48 = vsel %vm1148_vm2, %v4833_v39, %v4832_v12  ;;  %v1160_v26 = vsel %vm1148_vm2, %v4832_v12, %v4833_v39  ;;  %v1308_v29 = vmul.f32 %v3606_v60, %v3485_v32  ;;  %v1309_v7 = vmul.f32 %v3608_v46, %v3489_v38  ;;  %v4835_v38 = vld [vmem:[#allocation83_spill] sm:$0xff] }
 0x21d   : > { %1530 = vrot.lane.b32.xlu1 %v4827_v59, %s2541_s20  ;;  %1481 = vperm.xlu0 %2428, %v3757_v41   ;;  %v1043_v16 = vmul.f32 %v4812_v61, %v1016_v42  ;;  %v1090_v62 = vmul.f32 %v4834_v0, %v1042_v2  ;;  %v1178_v25 = vmul.f32 %v4843_v8, %v1160_v26  ;;  %v4844_v20 = vld [vmem:[#allocation75_spill] sm:$0xff]  ;;  %v4845_v42 = vld [vmem:[#allocation85_spill] sm:$0xff] }
 0x21e   : > { %v1354_v55 = vpop.permute.xlu0 %1353  ;;  %v1350_v19 = vpop.permute.xlu2 %1349  ;;  %v1179_v45 = vmul.f32 %v4844_v20, %v1152_v48  ;;  %v970_v4 = vadd.f32 %v954_v52, %v834_v31  ;;  %v4848_v48 = vld [vmem:[#allocation46_spill] sm:$0xff]  ;;  %v4849_v52 = vld [vmem:[#allocation89_spill] sm:$0xff] }
 0x21f   : > { %v1326_v28 = vpop.permute.xlu1 %1325  ;;  %v1370_v37 = vmul.f32 %v1354_v55, %v3681_v11  ;;  %v1371_v13 = vmul.f32 %v1354_v55, %v3684_v21  ;;  %v1368_v10 = vmul.f32 %v1350_v19, %v3625_v54  ;;  %v1369_v9 = vmul.f32 %v1350_v19, %v3628_v35  ;;  %v4839_v11 = vld [vmem:[#allocation86_spill] sm:$0xff]  ;;  %v4841_v54 = vld [vmem:[#allocation87_spill] sm:$0xff] }
 0x220   : > { %v3778_v6 = vmul.f32 %v1326_v28, %v1308_v29  ;;  %v3780_v32 = vmul.f32 %v1326_v28, %v1309_v7  ;;  %v835_v35 = vadd.f32 %v819_v14, %v698_v23  ;;  %v1091_v27 = vmul.f32 %v4834_v0, %v1043_v16  ;;  %v4847_v29 = vld [vmem:[#allocation41_spill] sm:$0xff]  ;;  %v4851_v0 = vld [vmem:[#allocation10_spill] sm:$0xff] }
 0x221   : > { %v3783_v5 = vadd.f32 %v1370_v37, %v4835_v38  ;;  %v3786_v58 = vadd.f32 %v1371_v13, %v4837_v15  ;;  %v3789_v21 = vadd.f32 %v1368_v10, %v4839_v11  ;;  %v3792_v17 = vadd.f32 %v1369_v9, %v4841_v54  ;;  %v4850_v10 = vld [vmem:[#allocation19_spill] sm:$0xff] }
 0x222   : > { %v971_v63 = vadd.f32 %v955_v43, %v835_v35  ;;  %v1226_v2 = vmul.f32 %v4845_v42, %v1178_v25  ;;  %v1227_v12 = vmul.f32 %v4845_v42, %v1179_v45  ;;  %v1106_v39 = vadd.f32 %v1090_v62, %v970_v4  ;;  %v4852_v35 = vld [vmem:[#allocation88_spill] sm:$0xff] }
 0x223   : > { %4836 = vst [vmem:[#allocation21_spill] sm:$0xff] %v3783_v5  ;;  %v4846_v23 = vmov 8   ;;  %v1314_v26 = vmul.f32 %v3606_v60, %v4847_v29  ;;  %v1315_v31 = vmul.f32 %v3608_v46, %v4848_v48  ;;  %v1318_v9 = vmul.f32 %v3606_v60, %v3719_v22  ;;  %v4854_v60 = vld [vmem:[#allocation8_spill] sm:$0xff]  ;;  %v2328_v48 = vld [vmem:[%s4584_s11 + $0x5] ss:$8 sm:$0x3] }
 0x224   : > { %4838 = vst [vmem:[#allocation18_spill] sm:$0xff] %v3786_v58  ;;  %1546 = vrot.lane.b32.xlu2 %v4824_v44, %s2541_s20  ;;  %v1107_v14 = vadd.f32 %v1091_v27, %v971_v63  ;;  %v1242_v55 = vadd.f32 %v1226_v2, %v1106_v39  ;;  %v1319_v16 = vmul.f32 %v3608_v46, %v3724_v34  ;;  %v4853_v27 = vld [vmem:[#allocation27_spill] sm:$0xff]  ;;  %v4855_v34 = vmov 6   ;;  %v2456_v63 = vld [vmem:[%s4576_s3 + $0x20] sm:$0xff] }
 0x225   : > { %4840 = vst [vmem:[#allocation12_spill] sm:$0xff] %v3789_v21  ;;  %1664 = vrot.lane.b32.xlu1 %v4792_v36, %s2542_s0  ;;  %2433 = vset.pattern.permute.xlu0 %v4846_v23  ;;  %v4856_v42 = vmov 7  }
 0x226   : > { %4842 = vst [vmem:[#allocation13_spill] sm:$0xff] %v3792_v17  ;;  %1741 = vperm.xlu0 %2433, %v4849_v52   ;;  %v1393_v43 = vpop.permute.xlu0 %1392  ;;  %v3809_v7 = vpop.permute.xlu2 %1390  ;;  %2430 = vset.pattern.permute.xlu2 %v4846_v23  ;;  %v1243_v19 = vadd.f32 %v1227_v12, %v1107_v14  ;;  %v4858_v52 = vld [vmem:[#allocation28_spill] sm:$0xff] }
 0x227   : > { %v1338_v44 = vpop.permute.xlu1 %1337 }
 0x228   : > { %v1362_v36 = vmul.f32 %v1338_v44, %v1314_v26  ;;  %v1363_v28 = vmul.f32 %v1338_v44, %v1315_v31  ;;  %v4857_v31 = vld [vmem:[#allocation26_spill] sm:$0xff] }
 0x229   : > { %v4859_v44 = vld [vmem:[#allocation14_spill] sm:$0xff] }
 0x22a   : > { %v3812_v37 = vadd.f32 %v1362_v36, %v1242_v55  ;;  %v3814_v13 = vadd.f32 %v1363_v28, %v1243_v19  ;;  %v3871_v19 = vperm.slane %v2328_v48, 0  ;;  %v3873_v36 = vperm.slane %v2328_v48, 1 }
 0x22c   : > { %1680 = vrot.lane.b32.xlu2 %v4850_v10, %s2542_s0 }
 0x22d   : > { %1733 = vperm.xlu1 %2429, %v3453_v3  }
 0x22e   : > { %1536 = vrot.lane.b32.xlu0 %v4851_v0, %s2541_s20  ;;  %v1399_v62 = vpop.permute.xlu0 %1398  ;;  %v3825_v38 = vpop.permute.xlu2 %1396 }
 0x22f   : > { %v1346_v15 = vpop.permute.xlu1 %1345 }
 0x230   : > { %v3827_v11 = vmul.f32 %v1346_v15, %v1318_v9  ;;  %v3829_v54 = vmul.f32 %v1346_v15, %v1319_v16 }
 0x234   : > { %1737 = vperm.xlu2 %2430, %v4852_v35  }
 0x235   : > { %1548 = vrot.lane.b32.xlu1 %v4853_v27, %s2541_s20 }
 0x236   : > { %1686 = vrot.lane.b32.xlu0 %v4854_v60, %s2542_s0  ;;  %v1405_v46 = vpop.permute.xlu0 %1404  ;;  %v3837_v22 = vpop.permute.xlu2 %1402  ;;  %2431 = vset.pattern.permute.xlu1 %v4855_v34 }
 0x237   : > { %v1389_v25 = vpop.permute.xlu1 %1388 }
 0x238   : > { %v1421_v45 = vsel %vm1420_vm6, %v1389_v25, %v1405_v46  ;;  %v1429_v4 = vsel %vm1420_vm6, %v1405_v46, %v1389_v25 }
 0x239   : > { %v1444_v25 = vmul.f32 %v3871_v19, %v1421_v45 }
 0x23c   : > { %1666 = vrot.lane.b32.xlu2 %v4827_v59, %s2542_s0 }
 0x23d   : > { %1477 = vperm.xlu1 %2431, %v2456_v63   ;;  %2432 = vset.pattern.permute.xlu2 %v4856_v42 }
 0x23e   : > { %1749 = vperm.xlu0 %2433, %v2456_v63   ;;  %v1411_v2 = vpop.permute.xlu0 %1410  ;;  %v1409_v12 = vpop.permute.xlu2 %1408 }
 0x23f   : > { %v1395_v39 = vpop.permute.xlu1 %1394  ;;  %v3852_v14 = vsel %vm1420_vm6, %v1393_v43, %v1409_v12  ;;  %v3856_v29 = vsel %vm1420_vm6, %v1409_v12, %v1393_v43 }
 0x240   : > { %v1424_v59 = vsel %vm1420_vm6, %v1395_v39, %v1411_v2  ;;  %v1432_v26 = vsel %vm1420_vm6, %v1411_v2, %v1395_v39 }
 0x244   : > { %1609 = vperm.xlu2 %2432, %v4857_v31  }
 0x245   : > { %1534 = vrot.lane.b32.xlu1 %v4858_v52, %s2541_s20 }
 0x246   : > { %1688 = vrot.lane.b32.xlu0 %v4859_v44, %s2542_s0  ;;  %v1417_v43 = vpop.permute.xlu0 %1416  ;;  %v1415_v55 = vpop.permute.xlu2 %1414  ;;  %2434 = vset.pattern.permute.xlu1 %v4856_v42 }
 0x247   : > { %v1401_v28 = vpop.permute.xlu1 %1400  ;;  %v3877_v10 = vsel %vm1420_vm6, %v1399_v62, %v1415_v55  ;;  %v3881_v9 = vsel %vm1420_vm6, %v1415_v55, %v1399_v62  ;;  %v1445_v62 = vmul.f32 %v3873_v36, %v1429_v4  ;;  %v1450_v4 = vmul.f32 %v3871_v19, %v1424_v59 }
 0x248   : > { %v1427_v16 = vsel %vm1420_vm6, %v1401_v28, %v1417_v43  ;;  %v1435_v15 = vsel %vm1420_vm6, %v1417_v43, %v1401_v28  ;;  %v1451_v55 = vmul.f32 %v3873_v36, %v1432_v26  ;;  %v4862_v28 = vmov 0  }
 0x249   : > { %v3888_v35 = vmul.f32 %v3871_v19, %v1427_v16  ;;  %v3891_v46 = vmul.f32 %v3873_v36, %v1435_v15 }
 0x24b   : > { %4860 = vst [vmem:[#allocation5_spill] sm:$0xff] %v3888_v35 }
 0x24c   : > { %4861 = vst [vmem:[#allocation16_spill] sm:$0xff] %v3891_v46  ;;  %1550 = vrot.lane.b32.xlu2 %v4854_v60, %s2541_s20 }
 0x24d   : > { %1668 = vrot.lane.b32.xlu1 %v2929_v56, %s2542_s0  ;;  %2435 = vset.pattern.permute.xlu2 %v4846_v23 }
 0x24e   : > { %1753 = vperm.xlu0 %2433, %v3757_v41   ;;  %v3901_v2 = vpop.permute.xlu0 %1540  ;;  %v1462_v12 = vpop.permute.xlu2 %1461 }
 0x24f   : > { %v1407_v39 = vpop.permute.xlu1 %1406  ;;  %v3903_v48 = vmul.f32 %v1462_v12, %v1444_v25  ;;  %v3905_v43 = vmul.f32 %v1462_v12, %v1445_v62 }
 0x250   : > { %v3910_v45 = vsel %vm1420_vm6, %v3809_v7, %v1407_v39  ;;  %v3915_v56 = vsel %vm1420_vm6, %v1407_v39, %v3809_v7 }
 0x254   : > { %1684 = vrot.lane.b32.xlu2 %v4853_v27, %s2542_s0 }
 0x255   : > { %1613 = vperm.xlu1 %2434, %v2456_v63  }
 0x256   : > { %2442 = vset.pattern.permute.xlu0 %v4862_v28  ;;  %v1545_v16 = vpop.permute.xlu0 %1544  ;;  %v1474_v15 = vpop.permute.xlu2 %1473 }
 0x257   : > { %v1413_v25 = vpop.permute.xlu1 %1412  ;;  %v1498_v62 = vmul.f32 %v1474_v15, %v1450_v4  ;;  %v1499_v12 = vmul.f32 %v1474_v15, %v1451_v55  ;;  %781 = vperm.xlu0 %2442, %v3453_v3   ;;  %v1796_v3 = vld [vmem:[%s4577_s4] sm:$0xff]  ;;  %v1797_v55 = vld [vmem:[%s4577_s4 + $0x8] sm:$0xff]  ;;  %v1448_v15 = vmul.f32 %v3871_v19, %v3852_v14  ;;  %v4865_v14 = vld [vmem:[#allocation20_spill] sm:$0xff] }
 0x258   : > { %v3926_v7 = vsel %vm1420_vm6, %v3825_v38, %v1413_v25  ;;  %v3931_v27 = vsel %vm1420_vm6, %v1413_v25, %v3825_v38 }
 0x259   : > { %v3934_v63 = vadd.f32 %v1498_v62, %v3812_v37  ;;  %v3937_v59 = vadd.f32 %v1499_v12, %v3814_v13  ;;  %v2329_v62 = vld [vmem:[%s4584_s11 + $0x6] ss:$8 sm:$0x3] }
 0x25c   : > { %1745 = vperm.xlu2 %2435, %v4857_v31  }
 0x25d   : > { %2436 = vset.pattern.permute.xlu1 %v4862_v28 }
 0x25e   : > { %1806 = vperm.xlu1 %2436, %v1796_v3   ;;  %v3944_v26 = vpop.permute.xlu0 %1676  ;;  %v1527_v39 = vpop.permute.xlu2 %1526 }
 0x25f   : > { %v1419_v38 = vpop.permute.xlu1 %1418  ;;  %801 = vperm.xlu0 %2442, %v3757_v41  }
 0x260   : > { %v1428_v37 = vsel %vm1420_vm6, %v3837_v22, %v1419_v38  ;;  %v1436_v13 = vsel %vm1420_vm6, %v1419_v38, %v3837_v22  ;;  %v1449_v22 = vmul.f32 %v3873_v36, %v3856_v29 }
 0x261   : > { %v3954_v4 = vmul.f32 %v3871_v19, %v1428_v37  ;;  %v3957_v31 = vmul.f32 %v3873_v36, %v1436_v13  ;;  %v3980_v13 = vperm.slane %v2329_v62, 0 }
 0x263   : > { %4863 = vst [vmem:[#allocation45_spill] sm:$0xff] %v3954_v4  ;;  %v1798_v4 = vld [vmem:[%s4577_s4 + $0x10] sm:$0xff] }
 0x264   : > { %4864 = vst [vmem:[#allocation52_spill] sm:$0xff] %v3957_v31  ;;  %2437 = vset.pattern.permute.xlu2 %v4862_v28  ;;  %v1800_v31 = vld [vmem:[%s4577_s4 + $0x20] sm:$0xff] }
 0x265   : > { %1811 = vperm.xlu2 %2437, %v1797_v55   ;;  %v3982_v55 = vperm.slane %v2329_v62, 1 }
 0x266   : > { %1552 = vrot.lane.b32.xlu1 %v4859_v44, %s2541_s20  ;;  %v1602_v25 = vpop.permute.xlu0 %1601  ;;  %v1529_v12 = vpop.permute.xlu2 %1528 }
 0x267   : > { %v1470_v3 = vpop.permute.xlu1 %1469  ;;  %v1559_v38 = vsel %vm1556_vm7, %v1529_v12, %v1545_v16  ;;  %v1567_v37 = vsel %vm1556_vm7, %v1545_v16, %v1529_v12  ;;  %1690 = vrot.lane.b32.xlu0 %v4865_v14, %s2542_s0  ;;  %2438 = vset.pattern.permute.xlu1 %v4855_v34 }
 0x268   : > { %v1496_v29 = vmul.f32 %v1470_v3, %v1448_v15  ;;  %v1497_v44 = vmul.f32 %v1470_v3, %v1449_v22  ;;  %v1584_v16 = vmul.f32 %v3980_v13, %v1559_v38  ;;  %v1585_v12 = vmul.f32 %v3982_v55, %v1567_v37  ;;  %v3996_v15 = vld [vmem:[%s4576_s3 + $0x30] sm:$0xff] }
 0x26a   : > { %v1512_v58 = vadd.f32 %v1496_v29, %v3727_v57  ;;  %v1513_v5 = vadd.f32 %v1497_v44, %v3729_v47 }
 0x26d   : > { %1670 = vrot.lane.b32.xlu2 %v4858_v52, %s2542_s0 }
 0x26e   : > { %1485 = vperm.xlu1 %2438, %v3996_v15   ;;  %v1606_v57 = vpop.permute.xlu0 %1605  ;;  %v1663_v47 = vpop.permute.xlu2 %1662  ;;  %2439 = vset.pattern.permute.xlu2 %v4856_v42 }
 0x26f   : > { %v1525_v22 = vpop.permute.xlu1 %1524  ;;  %v1632_v62 = vmul.f32 %v1606_v57, %v1584_v16  ;;  %v1633_v3 = vmul.f32 %v1606_v57, %v1585_v12  ;;  %1826 = vperm.xlu0 %2442, %v1800_v31   ;;  %v1446_v12 = vmul.f32 %v3871_v19, %v3910_v45 }
 0x270   : > { %v1557_v38 = vsel %vm1556_vm7, %v1525_v22, %v3901_v2  ;;  %v1565_v37 = vsel %vm1556_vm7, %v3901_v2, %v1525_v22  ;;  %v1447_v2 = vmul.f32 %v3873_v36, %v3915_v56 }
 0x271   : > { %v4006_v29 = vadd.f32 %v1632_v62, %v1512_v58  ;;  %v4008_v44 = vadd.f32 %v1633_v3, %v1513_v5  ;;  %v1580_v16 = vmul.f32 %v3980_v13, %v1557_v38  ;;  %v1581_v31 = vmul.f32 %v3982_v55, %v1565_v37 }
 0x275   : > { %1617 = vperm.xlu2 %2439, %v3757_v41  }
 0x276   : > { %2440 = vset.pattern.permute.xlu1 %v4862_v28  ;;  %v1598_v5 = vpop.permute.xlu2 %1597 }
 0x277   : > { %1816 = vperm.xlu1 %2440, %v1798_v4   ;;  %v1543_v58 = vpop.permute.xlu1 %1542  ;;  %v4021_v57 = vmul.f32 %v1598_v5, %v1580_v16  ;;  %v4023_v22 = vmul.f32 %v1598_v5, %v1581_v31  ;;  %v1466_v62 = vpop.permute.xlu0 %1465  ;;  %v4866_v5 = vld [vmem:[#allocation15_spill] sm:$0xff] }
 0x278   : > { %v1558_v3 = vsel %vm1556_vm7, %v1527_v39, %v1543_v58  ;;  %v1566_v41 = vsel %vm1556_vm7, %v1543_v58, %v1527_v39  ;;  %v1494_v45 = vmul.f32 %v1466_v62, %v1446_v12  ;;  %v1495_v38 = vmul.f32 %v1466_v62, %v1447_v2  ;;  %v2330_v62 = vld [vmem:[%s4584_s11 + $0x7] ss:$8 sm:$0x3] }
 0x279   : > { %v1582_v56 = vmul.f32 %v3980_v13, %v1558_v3  ;;  %v1583_v37 = vmul.f32 %v3982_v55, %v1566_v41  ;;  %v4063_v3 = vperm.slane %v2330_v62, 0 }
 0x27a   : > { %v1510_v4 = vadd.f32 %v1494_v45, %v3688_v40  ;;  %v1511_v16 = vadd.f32 %v1495_v38, %v3690_v33  ;;  %v1799_v38 = vld [vmem:[%s4577_s4 + $0x18] sm:$0xff] }
 0x27b   : > { %v1630_v17 = vmul.f32 %v1602_v25, %v1582_v56  ;;  %v1631_v31 = vmul.f32 %v1602_v25, %v1583_v37  ;;  %v2458_v25 = vld [vmem:[%s4576_s3 + $0x38] sm:$0xff]  ;;  %v1454_v56 = vmul.f32 %v3871_v19, %v3877_v10 }
 0x27d   : > { %1538 = vrot.lane.b32.xlu2 %v4866_v5, %s2541_s20  ;;  %v1646_v21 = vadd.f32 %v1630_v17, %v1510_v4  ;;  %v1647_v46 = vadd.f32 %v1631_v31, %v1511_v16 }
 0x27e   : > { %v1547_v39 = vpop.permute.xlu2 %1546 }
 0x27f   : > { %1554 = vrot.lane.b32.xlu1 %v4865_v14, %s2541_s20  ;;  %v1661_v12 = vpop.permute.xlu1 %1660  ;;  %v4038_v2 = vpop.permute.xlu0 %1532  ;;  %s2341_s20 = sshll.u32 %s2632_s25, 5 }
 0x280   : > { %v4043_v40 = vsel %vm1692_vm8, %v1661_v12, %v3944_v26  ;;  %v4048_v33 = vsel %vm1692_vm8, %v3944_v26, %v1661_v12  ;;  %2441 = vset.pattern.permute.xlu1 %v4855_v34  ;;  %s2235_s29 = scalar_lea.hbm %s4585_s12, %s2341_s20 }
 0x281   : > { %s2238_s28 = sshll.u32 %s2235_s29, 4  ;;  %s2483_s29 = scalar_lea.hbm %s4585_s12, 64  ;;  %s2239_s28 = int_to_ptr.hbm [resolvable:$true] %s2238_s28 }
 0x285   : > { %1672 = vrot.lane.b32.xlu2 %v4851_v0, %s2542_s0  ;;  %v4065_v0 = vperm.slane %v2330_v62, 1 }
 0x286   : > { %v1681_v17 = vpop.permute.xlu2 %1680 }
 0x287   : > { %1489 = vperm.xlu1 %2441, %v2458_v25   ;;  %v1679_v14 = vpop.permute.xlu1 %1678  ;;  %v1683_v58 = vpop.permute.xlu0 %1682 }
 0x288   : > { %v1694_v26 = vsel %vm1692_vm8, %v1663_v47, %v1679_v14  ;;  %v1702_v34 = vsel %vm1692_vm8, %v1679_v14, %v1663_v47  ;;  %v1455_v47 = vmul.f32 %v3873_v36, %v3881_v9 }
 0x289   : > { %v1718_v41 = vmul.f32 %v4063_v3, %v1694_v26  ;;  %v1719_v45 = vmul.f32 %v4065_v0, %v1702_v34 }
 0x28d   : > { %1621 = vperm.xlu2 %2439, %v3996_v15  }
 0x28e   : > { %v1738_v37 = vpop.permute.xlu2 %1737 }
 0x28f   : > { %2443 = vset.pattern.permute.xlu1 %v4862_v28  ;;  %v1531_v4 = vpop.permute.xlu1 %1530  ;;  %v1766_v16 = vmul.f32 %v1738_v37, %v1718_v41  ;;  %v1767_v31 = vmul.f32 %v1738_v37, %v1719_v45  ;;  %v1482_v12 = vpop.permute.xlu0 %1481 }
 0x290   : > { %v1560_v14 = vsel %vm1556_vm7, %v1531_v4, %v1547_v39  ;;  %v1568_v62 = vsel %vm1556_vm7, %v1547_v39, %v1531_v4  ;;  %1821 = vperm.xlu1 %2443, %v1799_v38   ;;  %v4082_v26 = vmul.f32 %v1482_v12, %v1454_v56  ;;  %v4084_v10 = vmul.f32 %v1482_v12, %v1455_v47 }
 0x291   : > { %v1782_v34 = vadd.f32 %v1766_v16, %v1646_v21  ;;  %v1783_v9 = vadd.f32 %v1767_v31, %v1647_v46  ;;  %v1586_v4 = vmul.f32 %v3980_v13, %v1560_v14 }
 0x292   : > { %4867 = vst [vmem:[#allocation54_spill] sm:$0xff] %v4082_v26 }
 0x293   : > { %4868 = vst [vmem:[#allocation53_spill] sm:$0xff] %v4084_v10 }
 0x295   : > { %1674 = vrot.lane.b32.xlu2 %v4866_v5, %s2542_s0  ;;  %s404_s0 = sand.u32 1, %s2517_s22  }
 0x296   : > { %v1667_v35 = vpop.permute.xlu2 %1666  ;;  %2445 = vset.pattern.permute.xlu2 %v4846_v23  ;;  %s2305_s17 = sshll.u32 %s404_s0, 5  ;;  %s2224_s25 = scalar_lea.sflag [#allocation3], %s404_s0 }
 0x297   : > { %v1665_v41 = vpop.permute.xlu1 %1664  ;;  %v1696_v45 = vsel %vm1692_vm8, %v1667_v35, %v1683_v58  ;;  %v1704_v39 = vsel %vm1692_vm8, %v1683_v58, %v1667_v35  ;;  %v1587_v35 = vmul.f32 %v3982_v55, %v1568_v62  ;;  %s406_s18 = scalar_lea.vmem [#allocation2], %s2305_s17  ;;  %s2477_s17 = sshra.s32 %s2239_s28, 4  ;;  %s2478_s17 = int_to_ptr.hbm [resolvable:$true] %s2477_s17 }
 0x298   : > { %v1695_v38 = vsel %vm1692_vm8, %v1665_v41, %v1681_v17  ;;  %v1703_v21 = vsel %vm1692_vm8, %v1681_v17, %v1665_v41  ;;  %2444 = vset.pattern.permute.xlu1 %v4856_v42  ;;  %v1742_v46 = vpop.permute.xlu0 %1741  ;;  %s2236_s15 = sshll.u32 %s406_s18, 4  ;;  %s2479_s20 = scalar_lea.hbm %s2478_s17, 32  ;;  %s2237_s15 = int_to_ptr.vmem [resolvable:$true] %s2236_s15 }
 0x299   : > { %v1720_v5 = vmul.f32 %v4063_v3, %v1695_v38  ;;  %v1721_v56 = vmul.f32 %v4065_v0, %v1703_v21  ;;  %1625 = vperm.xlu1 %2444, %v2458_v25   ;;  %p2480_p11 = scmp.ne.s32.totalorder %s2478_s17, %s2479_s20  ;;  %p2484_p0 = scmp.lt.s32.totalorder %s2478_s17, %s4585_s12 }
 0x29a   : > { %p2485_p1 = scmp.lt.s32.totalorder %s2483_s29, %s2479_s20 }
 0x29b   : > { %v1768_v47 = vmul.f32 %v1742_v46, %v1720_v5  ;;  %v1769_v37 = vmul.f32 %v1742_v46, %v1721_v56  ;;  %p2481_p12 = pnand %p2480_p11, %p2649_p5 }
 0x29c   : > { %p2486_p2 = por %p2485_p1, %p2484_p0 }
 0x29d   : > { %1757 = vperm.xlu2 %2445, %v3996_v15   ;;  %v4104_v58 = vadd.f32 %v1768_v47, %v4006_v29  ;;  %v4107_v17 = vadd.f32 %v1769_v37, %v4008_v44  ;;  %v1801_v15 = vld [vmem:[%s4577_s4 + $0x28] sm:$0xff]  ;;  %p2482_p13 = pneg %p2481_p12 }
 0x29e   : > { %v1610_v42 = vpop.permute.xlu2 %1609 }
 0x29f   : > { %4869 = vst [vmem:[#allocation31_spill] sm:$0xff] %v4104_v58  ;;  %v4109_v16 = vpop.permute.xlu1 %1733  ;;  %v1634_v31 = vmul.f32 %v1610_v42, %v1586_v4  ;;  %v1635_v12 = vmul.f32 %v1610_v42, %v1587_v35  ;;  %v1722_v4 = vmul.f32 %v4063_v3, %v1696_v45  ;;  %v1723_v35 = vmul.f32 %v4065_v0, %v1704_v39  ;;  %v4877_v45 = vld [vmem:[#allocation35_spill] sm:$0xff]  ;;  %v4878_v39 = vld [vmem:[#allocation33_spill] sm:$0xff]  ;;  %p2487_p3 = pnand %p2486_p2, %p2482_p13 }
 0x2a0   : > { %4870 = vst [vmem:[#allocation42_spill] sm:$0xff] %v4107_v17  ;;  %v4111_v41 = vpop.permute.xlu0 %1536 }
 0x2a1   : > { %4871 = vst [vmem:[#allocation48_spill] sm:$0xff] %v4111_v41  ;;  %v1650_v38 = vadd.f32 %v1634_v31, %v3934_v63  ;;  %v1651_v14 = vadd.f32 %v1635_v12, %v3937_v59  ;;  %2446 = vset.pattern.permute.xlu1 %v4846_v23  ;;  %v1802_v63 = vld [vmem:[%s4577_s4 + $0x30] sm:$0xff]  ;;  %v1803_v23 = vld [vmem:[%s4577_s4 + $0x38] sm:$0xff]  ;;  %v1452_v59 = vmul.f32 %v3871_v19, %v3926_v7 }
 0x2a2   : > { %1761 = vperm.xlu1 %2446, %v2458_v25   ;;  %v1453_v25 = vmul.f32 %v3873_v36, %v3931_v27 }
 0x2a5   : > { %2447 = vset.pattern.permute.xlu2 %v4862_v28 }
 0x2a6   : > { %1831 = vperm.xlu2 %2447, %v1801_v15   ;;  %v4120_v29 = vpop.permute.xlu2 %1550 }
 0x2a7   : > { %v1549_v44 = vpop.permute.xlu1 %1548 }
 0x2a8   : > { %v4122_v62 = vpop.permute.xlu0 %1686 }
 0x2aa   : > { %2448 = vset.pattern.permute.xlu1 %v4862_v28 }
 0x2ab   : > { %1836 = vperm.xlu1 %2448, %v1802_v63  }
 0x2ae   : > { %v4135_v21 = vpop.permute.xlu2 %1684  ;;  %1841 = vperm.xlu2 %2447, %v1803_v23  }
 0x2af   : > { %v1478_v46 = vpop.permute.xlu1 %1477 }
 0x2b0   : > { %v1500_v5 = vmul.f32 %v1478_v46, %v1452_v59  ;;  %v1501_v56 = vmul.f32 %v1478_v46, %v1453_v25  ;;  %v4137_v47 = vpop.permute.xlu0 %1749  ;;  %v885_v59 = vsel %vm876_vm4, %v4878_v39, %v4877_v45 }
 0x2b1   : > { %4872 = vst [vmem:[#allocation61_spill] sm:$0xff] %v4137_v47 }
 0x2b2   : > { %v1516_v28 = vadd.f32 %v1500_v5, %v3737_v1  ;;  %v1517_v37 = vadd.f32 %v1501_v56, %v3739_v18  ;;  %v4880_v56 = vld [vmem:[#allocation36_spill] sm:$0xff] }
 0x2b6   : > { %v1746_v19 = vpop.permute.xlu2 %1745 }
 0x2b7   : > { %v4143_v7 = vpop.permute.xlu1 %1534  ;;  %v1770_v36 = vmul.f32 %v1746_v19, %v1722_v4  ;;  %v1771_v27 = vmul.f32 %v1746_v19, %v1723_v35  ;;  %v4881_v4 = vld [vmem:[#allocation30_spill] sm:$0xff]  ;;  %v900_v19 = vmul.f32 %v3283_v50, %v885_v59 }
 0x2b8   : > { %v4145_v42 = vpop.permute.xlu0 %1688  ;;  %v742_v35 = vsel %vm741_vm3, %v4881_v4, %v4880_v56 }
 0x2b9   : > { %4873 = vst [vmem:[#allocation38_spill] sm:$0xff] %v4145_v42  ;;  %v4147_v31 = vadd.f32 %v1770_v36, %v1650_v38  ;;  %v4149_v12 = vadd.f32 %v1771_v27, %v1651_v14  ;;  %v877_v38 = vsel %vm876_vm4, %v4877_v45, %v4878_v39  ;;  %v4879_v14 = vld [vmem:[#allocation7_spill] sm:$0xff]  ;;  %v4882_v36 = vld [vmem:[#allocation6_spill] sm:$0xff]  ;;  %v4885_v39 = vld [vmem:[#allocation40_spill] sm:$0xff]  ;;  %v765_v41 = vmul.f32 %v3274_v24, %v742_v35 }
 0x2ba   : > { %v691_v25 = vmul.f32 %v4879_v14, %v4795_v51  ;;  %v750_v51 = vsel %vm741_vm3, %v4880_v56, %v4881_v4  ;;  %v692_v27 = vmul.f32 %v4879_v14, %v4882_v36  ;;  %v4884_v45 = vld [vmem:[#allocation50_spill] sm:$0xff]  ;;  %v4886_v14 = vld [vmem:[#allocation39_spill] sm:$0xff]  ;;  %v4887_v56 = vld [vmem:[#allocation57_spill] sm:$0xff] }
 0x2bb   : > { %4874 = vst [vmem:[#allocation55_spill] sm:$0xff] %v4147_v31  ;;  %v882_v59 = vsel %vm876_vm4, %v4884_v45, %v4885_v39  ;;  %v4891_v35 = vld [vmem:[#allocation69_spill] sm:$0xff] }
 0x2bc   : > { %4875 = vst [vmem:[#allocation44_spill] sm:$0xff] %v4149_v12  ;;  %v890_v12 = vsel %vm876_vm4, %v4885_v39, %v4884_v45 }
 0x2bd   : > { %v910_v39 = vmul.f32 %v3283_v50, %v890_v12 }
 0x2bf   : > { %v4151_v15 = vpop.permute.xlu1 %1668  ;;  %v1812_v1 = vpop.permute.xlu2 %1811 }
 0x2c0   : > { %v1846_v63 = vadd.f32 %v1812_v1, %v1782_v34  ;;  %v1847_v18 = vadd.f32 %v1812_v1, %v1783_v9  ;;  %v4153_v23 = vpop.permute.xlu0 %1753  ;;  %v1561_v34 = vsel %vm1556_vm7, %v4038_v2, %v1549_v44  ;;  %v1569_v9 = vsel %vm1556_vm7, %v1549_v44, %v4038_v2  ;;  %v4883_v1 = vld [vmem:[#allocation11_spill] sm:$0xff] }
 0x2c1   : > { %4876 = vst [vmem:[#allocation65_spill] sm:$0xff] %v4153_v23  ;;  %v4184_v2 = vmul.f32 %v4883_v1, %v4854_v60  ;;  %v901_v44 = vmul.f32 %v3286_v53, %v877_v38  ;;  %v4193_v31 = vmul.f32 %v4883_v1, %v4858_v52  ;;  %v1021_v60 = vsel %vm1012_vm1, %v4887_v56, %v4886_v14  ;;  %v4888_v52 = vld [vmem:[#allocation76_spill] sm:$0xff]  ;;  %v4889_v23 = vld [vmem:[#allocation29_spill] sm:$0xff] }
 0x2c2   : > { %v1862_v46 = vadd.f32 3.0, %v1846_v63  ;;  %v1863_v5 = vadd.f32 3.0, %v1847_v18  ;;  %v1588_v38 = vmul.f32 %v3980_v13, %v1561_v34  ;;  %v1589_v4 = vmul.f32 %v3982_v55, %v1569_v9 }
 0x2c3   : > { %v764_v1 = vmul.f32 %v4888_v52, %v750_v51  ;;  %v948_v45 = vmul.f32 %v4889_v23, %v900_v19  ;;  %v949_v47 = vmul.f32 %v4889_v23, %v901_v44  ;;  %v911_v34 = vmul.f32 %v3286_v53, %v882_v59  ;;  %v4890_v51 = vld [vmem:[#allocation73_spill] sm:$0xff] }
 0x2c4   : > { %v1878_v36 = vmax.f32 %v1862_v46, 0.0  ;;  %v1879_v42 = vmax.f32 %v1863_v5, 0.0  ;;  %v1013_v9 = vsel %vm1012_vm1, %v4886_v14, %v4887_v56  ;;  %v1036_v46 = vmul.f32 %v4811_v49, %v1021_v60  ;;  %v4894_v14 = vld [vmem:[#allocation34_spill] sm:$0xff]  ;;  %v4895_v60 = vld [vmem:[#allocation37_spill] sm:$0xff] }
 0x2c5   : > { %v1149_v19 = vsel %vm1148_vm2, %v4891_v35, %v4890_v51  ;;  %v1157_v50 = vsel %vm1148_vm2, %v4890_v51, %v4891_v35  ;;  %v958_v56 = vmul.f32 %v4894_v14, %v910_v39 }
 0x2c6   : > { %v1894_v12 = vmin.f32 %v1878_v36, 6.0  ;;  %v1895_v23 = vmin.f32 %v1879_v42, 6.0  ;;  %v4899_v42 = vld [vmem:[#allocation58_spill] sm:$0xff]  ;;  %v1172_v35 = vmul.f32 %v4843_v8, %v1157_v50 }
 0x2c7   : > { %v1614_v17 = vpop.permute.xlu1 %1613  ;;  %v4205_v58 = vpop.permute.xlu2 %1670 }
 0x2c8   : > { %v1636_v10 = vmul.f32 %v1614_v17, %v1588_v38  ;;  %v1637_v26 = vmul.f32 %v1614_v17, %v1589_v4  ;;  %v4896_v38 = vld [vmem:[#allocation56_spill] sm:$0xff] }
 0x2c9   : > { %v782_v5 = vpop.permute.xlu0 %781  ;;  %v747_v4 = vsel %vm741_vm3, %v4896_v38, %v4895_v60  ;;  %v755_v51 = vsel %vm741_vm3, %v4895_v60, %v4896_v38  ;;  %v4252_v60 = vmul.f32 %v1894_v12, %v1846_v63 }
 0x2ca   : > { %v4226_v17 = vadd.f32 %v1636_v10, %v1516_v28  ;;  %v4228_v53 = vadd.f32 %v1637_v26, %v1517_v37  ;;  %v812_v44 = vmul.f32 %v782_v5, %v764_v1  ;;  %v813_v59 = vmul.f32 %v782_v5, %v765_v41  ;;  %v4897_v26 = vld [vmem:[#allocation60_spill] sm:$0xff]  ;;  %v4898_v37 = vld [vmem:[#allocation62_spill] sm:$0xff] }
 0x2cb   : > { %v1037_v10 = vmul.f32 %v4812_v61, %v1013_v9  ;;  %v1084_v28 = vmul.f32 %v4897_v26, %v1036_v46  ;;  %v1026_v41 = vsel %vm1012_vm1, %v4899_v42, %v4898_v37  ;;  %v1018_v5 = vsel %vm1012_vm1, %v4898_v37, %v4899_v42 }
 0x2cc   : > { %4892 = vst [vmem:[#allocation66_spill] sm:$0xff] %v4226_v17  ;;  %v828_v36 = vadd.f32 %v812_v44, %v691_v25  ;;  %v829_v1 = vadd.f32 %v813_v59, %v692_v27  ;;  %v1173_v9 = vmul.f32 %v4844_v20, %v1149_v19  ;;  %v4254_v46 = vmul.f32 %v1895_v23, %v1847_v18  ;;  %v4901_v23 = vld [vmem:[#allocation67_spill] sm:$0xff] }
 0x2cd   : > { %4893 = vst [vmem:[#allocation68_spill] sm:$0xff] %v4228_v53  ;;  %v1085_v39 = vmul.f32 %v4897_v26, %v1037_v10  ;;  %v959_v25 = vmul.f32 %v4894_v14, %v911_v34  ;;  %v1046_v27 = vmul.f32 %v4811_v49, %v1026_v41  ;;  %v774_v59 = vmul.f32 %v4888_v52, %v755_v51  ;;  %v4900_v26 = vld [vmem:[#allocation80_spill] sm:$0xff] }
 0x2ce   : > { %v964_v38 = vadd.f32 %v948_v45, %v828_v36  ;;  %v965_v53 = vadd.f32 %v949_v47, %v829_v1  ;;  %v775_v10 = vmul.f32 %v3274_v24, %v747_v4  ;;  %v1220_v8 = vmul.f32 %v4900_v26, %v1172_v35  ;;  %v4902_v35 = vld [vmem:[#allocation81_spill] sm:$0xff] }
 0x2cf   : > { %v1618_v17 = vpop.permute.xlu2 %1617  ;;  %v1221_v20 = vmul.f32 %v4900_v26, %v1173_v9  ;;  %v1047_v45 = vmul.f32 %v4812_v61, %v1018_v5  ;;  %v1716_v47 = vmul.f32 %v4063_v3, %v4043_v40  ;;  %v1717_v49 = vmul.f32 %v4065_v0, %v4048_v33 }
 0x2d0   : > { %v1807_v44 = vpop.permute.xlu1 %1806  ;;  %v1100_v63 = vadd.f32 %v1084_v28, %v964_v38  ;;  %v1101_v19 = vadd.f32 %v1085_v39, %v965_v53  ;;  %v1927_v24 = vadd.f32 %v4254_v46, %v4252_v60  ;;  %v1094_v14 = vmul.f32 %v4901_v23, %v1046_v27  ;;  %v4903_v38 = vld [vmem:[#allocation82_spill] sm:$0xff] }
 0x2d1   : > { %v802_v18 = vpop.permute.xlu0 %801  ;;  %v1095_v53 = vmul.f32 %v4901_v23, %v1047_v45  ;;  %v1764_v40 = vmul.f32 %v4109_v16, %v1716_v47  ;;  %v1765_v51 = vmul.f32 %v4109_v16, %v1717_v49  ;;  %v1697_v37 = vsel %vm1692_vm8, %v4151_v15, %v4135_v21  ;;  %v4906_v49 = vld [vmem:[#allocation53_spill] sm:$0xff] }
 0x2d2   : > { %v822_v34 = vmul.f32 %v802_v18, %v774_v59  ;;  %v823_v50 = vmul.f32 %v802_v18, %v775_v10  ;;  %v1236_v52 = vadd.f32 %v1220_v8, %v1100_v63  ;;  %v1237_v12 = vadd.f32 %v1221_v20, %v1101_v19  ;;  %v4904_v8 = vld [vmem:[#allocation61_spill] sm:$0xff] }
 0x2d4   : > { %v838_v4 = vadd.f32 %v822_v34, %v4193_v31  ;;  %v839_v61 = vadd.f32 %v823_v50, %v4184_v2  ;;  %v1372_v28 = vadd.f32 %v3778_v6, %v1236_v52  ;;  %v1373_v33 = vadd.f32 %v3780_v32, %v1237_v12  ;;  %v4905_v34 = vld [vmem:[#allocation54_spill] sm:$0xff]  ;;  %v4907_v12 = vld [vmem:[#allocation65_spill] sm:$0xff] }
 0x2d5   : > { %1928 = vadd.xlane.f32.xlu1 %v1927_v24  ;;  %v1705_v31 = vsel %vm1692_vm8, %v4135_v21, %v4151_v15  ;;  %v1562_v6 = vsel %vm1556_vm7, %v4143_v7, %v4120_v29  ;;  %v1570_v32 = vsel %vm1556_vm7, %v4120_v29, %v4143_v7  ;;  %v1698_v21 = vsel %vm1692_vm8, %v4205_v58, %v4122_v62 }
 0x2d6   : > { %v974_v2 = vadd.f32 %v958_v56, %v838_v4  ;;  %v975_v42 = vadd.f32 %v959_v25, %v839_v61  ;;  %v1508_v16 = vadd.f32 %v3903_v48, %v1372_v28  ;;  %v1509_v41 = vadd.f32 %v3905_v43, %v1373_v33  ;;  %v4908_v4 = vld [vmem:[#allocation66_spill] sm:$0xff] }
 0x2d7   : > { %v4295_v36 = vpop.permute.xlu2 %1538  ;;  %v1706_v15 = vsel %vm1692_vm8, %v4122_v62, %v4205_v58  ;;  %v1724_v29 = vmul.f32 %v4063_v3, %v1697_v37  ;;  %v1725_v48 = vmul.f32 %v4065_v0, %v1705_v31  ;;  %v1726_v27 = vmul.f32 %v4063_v3, %v1698_v21  ;;  %v4910_v37 = vld [vmem:[#allocation5_spill] sm:$0xff] }
 0x2d8   : > { %v1110_v56 = vadd.f32 %v1094_v14, %v974_v2  ;;  %v1111_v1 = vadd.f32 %v1095_v53, %v975_v42  ;;  %v1553_v39 = vpop.permute.xlu1 %1552  ;;  %v1644_v43 = vadd.f32 %v4021_v57, %v1508_v16  ;;  %v1645_v7 = vadd.f32 %v4023_v22, %v1509_v41  ;;  %v4911_v2 = vld [vmem:[#allocation16_spill] sm:$0xff] }
 0x2d9   : > { %v4309_v5 = vpop.permute.xlu0 %1690  ;;  %v1727_v58 = vmul.f32 %v4065_v0, %v1706_v15  ;;  %v1590_v10 = vmul.f32 %v3980_v13, %v1562_v6  ;;  %v1591_v26 = vmul.f32 %v3982_v55, %v1570_v32  ;;  %v1772_v20 = vmul.f32 %v4904_v8, %v1724_v29  ;;  %v4912_v32 = vld [vmem:[#allocation48_spill] sm:$0xff] }
 0x2da   : > { %v1246_v9 = vadd.f32 %v4902_v35, %v1110_v56  ;;  %v1247_v25 = vadd.f32 %v4903_v38, %v1111_v1  ;;  %v1780_v62 = vadd.f32 %v1764_v40, %v1644_v43  ;;  %v1781_v59 = vadd.f32 %v1765_v51, %v1645_v7  ;;  %v4909_v40 = vld [vmem:[#allocation68_spill] sm:$0xff]  ;;  %v4914_v43 = vld [vmem:[#allocation13_spill] sm:$0xff] }
 0x2db   : > { %v1773_v63 = vmul.f32 %v4904_v8, %v1725_v48  ;;  %v1638_v45 = vmul.f32 %v1618_v17, %v1590_v10  ;;  %v1639_v47 = vmul.f32 %v1618_v17, %v1591_v26  ;;  %v1774_v24 = vmul.f32 %v4907_v12, %v1726_v27  ;;  %v4913_v29 = vld [vmem:[#allocation12_spill] sm:$0xff] }
 0x2dc   : > { %v1382_v57 = vadd.f32 %v3827_v11, %v1246_v9  ;;  %v1383_v22 = vadd.f32 %v3829_v54, %v1247_v25  ;;  %v1844_v19 = vadd.f32 %v1807_v44, %v1780_v62  ;;  %v1845_v18 = vadd.f32 %v1807_v44, %v1781_v59 }
 0x2dd   : > { %v1775_v23 = vmul.f32 %v4907_v12, %v1727_v58  ;;  %v1788_v61 = vadd.f32 %v1772_v20, %v4908_v4  ;;  %v1789_v51 = vadd.f32 %v1773_v63, %v4909_v40  ;;  %v1563_v16 = vsel %vm1556_vm7, %v4912_v32, %v1553_v39 }
 0x2de   : > { %v1518_v50 = vadd.f32 %v4905_v34, %v1382_v57  ;;  %v1519_v52 = vadd.f32 %v4906_v49, %v1383_v22  ;;  %v1860_v14 = vadd.f32 3.0, %v1844_v19  ;;  %v1861_v11 = vadd.f32 3.0, %v1845_v18 }
 0x2df   : > { %v1673_v53 = vpop.permute.xlu2 %1672  ;;  %v1571_v41 = vsel %vm1556_vm7, %v1553_v39, %v4912_v32  ;;  %v1592_v62 = vmul.f32 %v3980_v13, %v1563_v16 }
 0x2e0   : > { %v1486_v54 = vpop.permute.xlu1 %1485  ;;  %v1654_v28 = vadd.f32 %v1638_v45, %v1518_v50  ;;  %v1655_v44 = vadd.f32 %v1639_v47, %v1519_v52  ;;  %v1876_v33 = vmax.f32 %v1860_v14, 0.0  ;;  %v1877_v17 = vmax.f32 %v1861_v11, 0.0  ;;  %v4915_v50 = vld [vmem:[#allocation31_spill] sm:$0xff]  ;;  %v4916_v52 = vld [vmem:[#allocation42_spill] sm:$0xff] }
 0x2e1   : > { %v1504_v31 = vmul.f32 %v1486_v54, %v4910_v37  ;;  %v1505_v42 = vmul.f32 %v1486_v54, %v4911_v2  ;;  %v1827_v6 = vpop.permute.xlu0 %1826  ;;  %v1593_v39 = vmul.f32 %v3982_v55, %v1571_v41 }
 0x2e2   : > { %v1852_v21 = vadd.f32 %v1827_v6, %v1788_v61  ;;  %v1853_v15 = vadd.f32 %v1827_v6, %v1789_v51  ;;  %v1892_v56 = vmin.f32 %v1876_v33, 6.0  ;;  %v1893_v1 = vmin.f32 %v1877_v17, 6.0 }
 0x2e3   : > { %v1520_v48 = vadd.f32 %v1504_v31, %v4913_v29  ;;  %v1521_v7 = vadd.f32 %v1505_v42, %v4914_v43  ;;  %v1790_v38 = vadd.f32 %v1774_v24, %v1654_v28  ;;  %v1791_v25 = vadd.f32 %v1775_v23, %v1655_v44  ;;  %v4917_v28 = vld [vmem:[#allocation38_spill] sm:$0xff] }
 0x2e4   : > { %v1868_v35 = vadd.f32 3.0, %v1852_v21  ;;  %v1869_v9 = vadd.f32 3.0, %v1853_v15  ;;  %v4337_v27 = vmul.f32 %v1892_v56, %v1844_v19  ;;  %v4339_v58 = vmul.f32 %v1893_v1, %v1845_v18  ;;  %v4919_v56 = vld [vmem:[#allocation52_spill] sm:$0xff] }
 0x2e5   : > { %v1699_v44 = vsel %vm1692_vm8, %v1673_v53, %v4917_v28  ;;  %v1707_v33 = vsel %vm1692_vm8, %v4917_v28, %v1673_v53 }
 0x2e6   : > { %v1884_v59 = vmax.f32 %v1868_v35, 0.0  ;;  %v1885_v10 = vmax.f32 %v1869_v9, 0.0  ;;  %v1924_v57 = vadd.f32 %v4339_v58, %v4337_v27  ;;  %v1728_v2 = vmul.f32 %v4063_v3, %v1699_v44 }
 0x2e7   : > { %v1622_v26 = vpop.permute.xlu2 %1621  ;;  %v1729_v42 = vmul.f32 %v4065_v0, %v1707_v33 }
 0x2e8   : > { %v1900_v22 = vmin.f32 %v1884_v59, 6.0  ;;  %v1901_v8 = vmin.f32 %v1885_v10, 6.0  ;;  %v1640_v20 = vmul.f32 %v1622_v26, %v1592_v62  ;;  %v1641_v63 = vmul.f32 %v1622_v26, %v1593_v39  ;;  %1925 = vadd.xlane.f32.xlu0 %v1924_v57  ;;  %v4922_v57 = vld [vmem:[#allocation55_spill] sm:$0xff] }
 0x2e9   : > { %v1817_v45 = vpop.permute.xlu1 %1816 }
 0x2ea   : > { %v1656_v19 = vadd.f32 %v1640_v20, %v1520_v48  ;;  %v1657_v47 = vadd.f32 %v1641_v63, %v1521_v7  ;;  %v4345_v18 = vmul.f32 %v1900_v22, %v1852_v21  ;;  %v4347_v34 = vmul.f32 %v1901_v8, %v1853_v15  ;;  %v4918_v21 = vld [vmem:[#allocation45_spill] sm:$0xff]  ;;  %v4921_v7 = vld [vmem:[#allocation18_spill] sm:$0xff]  ;;  %v4923_v8 = vld [vmem:[#allocation44_spill] sm:$0xff] }
 0x2eb   : > { %v1848_v49 = vadd.f32 %v1817_v45, %v4915_v50  ;;  %v1849_v12 = vadd.f32 %v1817_v45, %v4916_v52  ;;  %v4920_v48 = vld [vmem:[#allocation21_spill] sm:$0xff] }
 0x2ec   : > { %v1936_v4 = vadd.f32 %v4347_v34, %v4345_v18 }
 0x2ed   : > { %v1864_v24 = vadd.f32 3.0, %v1848_v49  ;;  %v1865_v23 = vadd.f32 3.0, %v1849_v12 }
 0x2ef   : > { %v1880_v14 = vmax.f32 %v1864_v24, 0.0  ;;  %v1881_v11 = vmax.f32 %v1865_v23, 0.0  ;;  %v1675_v54 = vpop.permute.xlu2 %1674 }
 0x2f0   : > { %1937 = vadd.xlane.f32.xlu0 %v1936_v4 }
 0x2f1   : > { %v1896_v61 = vmin.f32 %v1880_v14, 6.0  ;;  %v1897_v40 = vmin.f32 %v1881_v11, 6.0  ;;  %v1555_v51 = vpop.permute.xlu1 %1554 }
 0x2f2   : > { %v1572_v28 = vsel %vm1556_vm7, %v1555_v51, %v4295_v36 }
 0x2f3   : > { %v4359_v17 = vmul.f32 %v1896_v61, %v1848_v49  ;;  %v4361_v37 = vmul.f32 %v1897_v40, %v1849_v12  ;;  %v1564_v40 = vsel %vm1556_vm7, %v4295_v36, %v1555_v51 }
 0x2f4   : > { %v1594_v33 = vmul.f32 %v3980_v13, %v1564_v40 }
 0x2f5   : > { %v1930_v31 = vadd.f32 %v4361_v37, %v4359_v17 }
 0x2f7   : > { %1931 = vadd.xlane.f32.xlu2 %v1930_v31  ;;  %v1758_v6 = vpop.permute.xlu2 %1757  ;;  %v1595_v31 = vmul.f32 %v3982_v55, %v1572_v28  ;;  %v1963_v28 = vld [vmem:[%s4578_s5] sm:$0xff] }
 0x2f8   : > { %v1776_v32 = vmul.f32 %v1758_v6, %v1728_v2  ;;  %v1777_v16 = vmul.f32 %v1758_v6, %v1729_v42  ;;  %v1700_v2 = vsel %vm1692_vm8, %v1675_v54, %v4309_v5  ;;  %v1708_v42 = vsel %vm1692_vm8, %v4309_v5, %v1675_v54 }
 0x2f9   : > { %v1490_v41 = vpop.permute.xlu1 %1489  ;;  %v1730_v36 = vmul.f32 %v4063_v3, %v1700_v2  ;;  %v1731_v51 = vmul.f32 %v4065_v0, %v1708_v42  ;;  %v1964_v2 = vld [vmem:[%s4578_s5 + $0x8] sm:$0xff]  ;;  %v1965_v42 = vld [vmem:[%s4578_s5 + $0x10] sm:$0xff] }
 0x2fa   : > { %v1506_v15 = vmul.f32 %v1490_v41, %v4918_v21  ;;  %v1507_v53 = vmul.f32 %v1490_v41, %v4919_v56  ;;  %v1792_v1 = vadd.f32 %v1776_v32, %v1656_v19  ;;  %v1793_v29 = vadd.f32 %v1777_v16, %v1657_v47 }
 0x2fc   : > { %v1522_v43 = vadd.f32 %v1506_v15, %v4920_v48  ;;  %v1523_v35 = vadd.f32 %v1507_v53, %v4921_v7 }
 0x300   : > { %v1832_v9 = vpop.permute.xlu2 %1831 }
 0x301   : > { %v1854_v62 = vadd.f32 %v1832_v9, %v1790_v38  ;;  %v1855_v39 = vadd.f32 %v1832_v9, %v1791_v25 }
 0x302   : > { %v1822_v59 = vpop.permute.xlu1 %1821 }
 0x303   : > { %v1870_v10 = vadd.f32 3.0, %v1854_v62  ;;  %v1871_v26 = vadd.f32 3.0, %v1855_v39  ;;  %v1850_v22 = vadd.f32 %v1822_v59, %v4922_v57  ;;  %v1851_v20 = vadd.f32 %v1822_v59, %v4923_v8 }
 0x305   : > { %v1886_v63 = vmax.f32 %v1870_v10, 0.0  ;;  %v1887_v45 = vmax.f32 %v1871_v26, 0.0  ;;  %v1866_v50 = vadd.f32 3.0, %v1850_v22  ;;  %v1867_v49 = vadd.f32 3.0, %v1851_v20 }
 0x307   : > { %v1902_v19 = vmin.f32 %v1886_v63, 6.0  ;;  %v1903_v47 = vmin.f32 %v1887_v45, 6.0  ;;  %v1882_v52 = vmax.f32 %v1866_v50, 0.0  ;;  %v1883_v12 = vmax.f32 %v1867_v49, 0.0 }
 0x308   : > { %v1842_v15 = vpop.permute.xlu2 %1841  ;;  %v2544_v50 = vmov 256.0  }
 0x309   : > { %v4373_v24 = vmul.f32 %v1902_v19, %v1854_v62  ;;  %v4375_v23 = vmul.f32 %v1903_v47, %v1855_v39  ;;  %v1898_v38 = vmin.f32 %v1882_v52, 6.0  ;;  %v1899_v25 = vmin.f32 %v1883_v12, 6.0 }
 0x30a   : > { %2449 = vrcp.f32 %v2544_v50 }
 0x30b   : > { %v4377_v14 = vmul.f32 %v1898_v38, %v1850_v22  ;;  %v4379_v11 = vmul.f32 %v1899_v25, %v1851_v20  ;;  %v1626_v4 = vpop.permute.xlu1 %1625  ;;  %v1939_v61 = vadd.f32 %v4375_v23, %v4373_v24 }
 0x30c   : > { %v1642_v6 = vmul.f32 %v1626_v4, %v1594_v33  ;;  %v1643_v32 = vmul.f32 %v1626_v4, %v1595_v31 }
 0x30d   : > { %1940 = vadd.xlane.f32.xlu1 %v1939_v61  ;;  %v1933_v44 = vadd.f32 %v4379_v11, %v4377_v14 }
 0x30e   : > { %v1658_v41 = vadd.f32 %v1642_v6, %v1522_v43  ;;  %v1659_v13 = vadd.f32 %v1643_v32, %v1523_v35 }
 0x30f   : > { %1934 = vadd.xlane.f32.xlu2 %v1933_v44 }
 0x310   : > { %v2450_v49 = vpop.eup %2449 }
 0x311   : > { %v1949_v19 = vmul.f32 256.0, %v2450_v49  ;;  %vm1953_vm9 = vweird.f32 %v2450_v49 }
 0x313   : > { %v1950_v47 = vsub.f32 1.0, %v1949_v19 }
 0x314   : > { %v1762_v16 = vpop.permute.xlu1 %1761 }
 0x315   : > { %v1778_v21 = vmul.f32 %v1762_v16, %v1730_v36  ;;  %v1779_v55 = vmul.f32 %v1762_v16, %v1731_v51  ;;  %v1951_v52 = vmul.f32 %v2450_v49, %v1950_v47  ;;  %v1966_v36 = vld [vmem:[%s4578_s5 + $0x18] sm:$0xff] }
 0x317   : > { %v1794_v56 = vadd.f32 %v1778_v21, %v1658_v41  ;;  %v1795_v53 = vadd.f32 %v1779_v55, %v1659_v13  ;;  %v1952_v38 = vadd.f32 %v2450_v49, %v1951_v52 }
 0x319   : > { %v1858_v48 = vadd.f32 %v1842_v15, %v1794_v56  ;;  %v1859_v7 = vadd.f32 %v1842_v15, %v1795_v53  ;;  %v1954_v4 = vsel %vm1953_vm9, %v2450_v49, %v1952_v38 }
 0x31b   : > { %v1874_v9 = vadd.f32 3.0, %v1858_v48  ;;  %v1875_v62 = vadd.f32 3.0, %v1859_v7 }
 0x31d   : > { %v1890_v30 = vmax.f32 %v1874_v9, 0.0  ;;  %v1891_v5 = vmax.f32 %v1875_v62, 0.0  ;;  %v1837_v54 = vpop.permute.xlu1 %1836 }
 0x31e   : > { %v1856_v39 = vadd.f32 %v1837_v54, %v1792_v1  ;;  %v1857_v59 = vadd.f32 %v1837_v54, %v1793_v29  ;;  %v1968_v54 = vld [vmem:[%s4578_s5 + $0x28] sm:$0xff] }
 0x31f   : > { %v1906_v3 = vmin.f32 %v1890_v30, 6.0  ;;  %v1907_v10 = vmin.f32 %v1891_v5, 6.0 }
 0x320   : > { %v1872_v0 = vadd.f32 3.0, %v1856_v39  ;;  %v1873_v26 = vadd.f32 3.0, %v1857_v59 }
 0x321   : > { %v4401_v43 = vmul.f32 %v1906_v3, %v1858_v48  ;;  %v4403_v35 = vmul.f32 %v1907_v10, %v1859_v7  ;;  %v1967_v48 = vld [vmem:[%s4578_s5 + $0x20] sm:$0xff] }
 0x322   : > { %v1888_v57 = vmax.f32 %v1872_v0, 0.0  ;;  %v1889_v22 = vmax.f32 %v1873_v26, 0.0 }
 0x323   : > { %v1945_v8 = vadd.f32 %v4403_v35, %v4401_v43 }
 0x324   : > { %v1904_v20 = vmin.f32 %v1888_v57, 6.0  ;;  %v1905_v63 = vmin.f32 %v1889_v22, 6.0  ;;  %v1970_v57 = vld [vmem:[%s4578_s5 + $0x38] sm:$0xff]  ;;  %v1969_v22 = vld [vmem:[%s4578_s5 + $0x30] sm:$0xff] }
 0x325   : > { %1946 = vadd.xlane.f32.xlu0 %v1945_v8 }
 0x326   : > { %v4407_v45 = vmul.f32 %v1904_v20, %v1856_v39  ;;  %v4409_v1 = vmul.f32 %v1905_v63, %v1857_v59 }
 0x328   : > { %v1942_v29 = vadd.f32 %v4409_v1, %v4407_v45 }
 0x32a   : > { %1943 = vadd.xlane.f32.xlu2 %v1942_v29 }
 0x348   : > { %v1929_v61 = vpop.xlane.xlu1 %1928 }
 0x349   : > { %v1956_v33 = vmul.f32 %v1954_v4, %v1929_v61 }
 0x34b   : > { %v1972_v51 = vmul.f32 %v1964_v2, %v1956_v33  ;;  %v2010_v2 = vld [vmem:[%s4580_s7 + $0x38] sm:$0xff] }
 0x34d   : > { %v1980_v55 = vsel %vm472_vm0, %v1972_v51, 0.0 }
 0x35b   : > { %v1926_v25 = vpop.xlane.xlu0 %1925 }
 0x35c   : > { %v1955_v40 = vmul.f32 %v1954_v4, %v1926_v25 }
 0x35e   : > { %v1971_v6 = vmul.f32 %v1963_v28, %v1955_v40 }
 0x360   : > { %v1979_v13 = vsel %vm472_vm0, %v1971_v6, 0.0  ;;  %v2008_v6 = vld [vmem:[%s4580_s7 + $0x28] sm:$0xff] }
 0x361   : > { %v1981_v53 = vadd.f32 %v1980_v55, %v1979_v13  ;;  %v2007_v55 = vld [vmem:[%s4580_s7 + $0x20] sm:$0xff] }
 0x363   : > { %v1938_v41 = vpop.xlane.xlu0 %1937 }
 0x364   : > { %v1959_v15 = vmul.f32 %v1954_v4, %v1938_v41 }
 0x366   : > { %v1975_v30 = vmul.f32 %v1967_v48, %v1959_v15  ;;  %v2006_v15 = vld [vmem:[%s4580_s7 + $0x18] sm:$0xff] }
 0x368   : > { %v1986_v3 = vsel %vm472_vm0, %v1975_v30, 0.0 }
 0x36a   : > { %v1932_v12 = vpop.xlane.xlu2 %1931 }
 0x36b   : > { %v1957_v31 = vmul.f32 %v1954_v4, %v1932_v12 }
 0x36d   : > { %v1973_v16 = vmul.f32 %v1965_v42, %v1957_v31  ;;  %v2009_v42 = vld [vmem:[%s4580_s7 + $0x30] sm:$0xff] }
 0x36f   : > { %v1982_v56 = vsel %vm472_vm0, %v1973_v16, 0.0 }
 0x370   : > { %v1983_v62 = vadd.f32 %v1982_v56, %v1981_v53  ;;  %v2005_v56 = vld [vmem:[%s4580_s7 + $0x10] sm:$0xff] }
 0x380   : > { %v1941_v7 = vpop.xlane.xlu1 %1940 }
 0x381   : > { %v1960_v5 = vmul.f32 %v1954_v4, %v1941_v7 }
 0x382   : > { %v1935_v44 = vpop.xlane.xlu2 %1934 }
 0x383   : > { %v1958_v32 = vmul.f32 %v1954_v4, %v1935_v44  ;;  %v1976_v10 = vmul.f32 %v1968_v54, %v1960_v5  ;;  %v2004_v5 = vld [vmem:[%s4580_s7 + $0x8] sm:$0xff]  ;;  %v2003_v54 = vld [vmem:[%s4580_s7] sm:$0xff] }
 0x385   : > { %v1974_v21 = vmul.f32 %v1966_v36, %v1958_v32  ;;  %v1988_v63 = vsel %vm472_vm0, %v1976_v10, 0.0 }
 0x387   : > { %v1984_v9 = vsel %vm472_vm0, %v1974_v21, 0.0 }
 0x388   : > { %v1985_v39 = vadd.f32 %v1984_v9, %v1983_v62 }
 0x38a   : > { %v1987_v26 = vadd.f32 %v1986_v3, %v1985_v39 }
 0x38c   : > { %v1989_v49 = vadd.f32 %v1988_v63, %v1987_v26  ;;  %v2050_v26 = vld [vmem:[%s4581_s8 + $0x30] sm:$0xff] }
 0x398   : > { %v1947_v59 = vpop.xlane.xlu0 %1946 }
 0x399   : > { %v1962_v0 = vmul.f32 %v1954_v4, %v1947_v59 }
 0x39b   : > { %v1978_v29 = vmul.f32 %v1970_v57, %v1962_v0  ;;  %v2051_v0 = vld [vmem:[%s4581_s8 + $0x38] sm:$0xff]  ;;  %v2049_v57 = vld [vmem:[%s4581_s8 + $0x28] sm:$0xff] }
 0x39d   : > { %v1944_v8 = vpop.xlane.xlu2 %1943  ;;  %v1992_v52 = vsel %vm472_vm0, %v1978_v29, 0.0 }
 0x39e   : > { %v1961_v20 = vmul.f32 %v1954_v4, %v1944_v8  ;;  %v2000_v4 = vld [vmem:[%s4579_s6] sm:$0x1] }
 0x3a0   : > { %v1977_v50 = vmul.f32 %v1969_v22, %v1961_v20 }
 0x3a2   : > { %v1990_v19 = vsel %vm472_vm0, %v1977_v50, 0.0 }
 0x3a3   : > { %v1991_v47 = vadd.f32 %v1990_v19, %v1989_v49 }
 0x3a5   : > { %v1993_v12 = vadd.f32 %v1992_v52, %v1991_v47 }
 0x3a7   : > { %v1994_v38 = vrot.slane %v1993_v12, 4 }
 0x3a9   : > { %v1995_v25 = vadd.f32 %v1994_v38, %v1993_v12 }
 0x3ab   : > { %v1996_v61 = vrot.slane %v1995_v25, 2 }
 0x3ad   : > { %v1997_v40 = vadd.f32 %v1996_v61, %v1995_v25  ;;  %v2048_v25 = vld [vmem:[%s4581_s8 + $0x20] sm:$0xff]  ;;  %v2047_v61 = vld [vmem:[%s4581_s8 + $0x18] sm:$0xff] }
 0x3af   : > { %v1998_v28 = vrot.slane %v1997_v40, 1 }
 0x3b1   : > { %v1999_v44 = vadd.f32 %v1998_v28, %v1997_v40 }
 0x3b3   : > { %v2001_v33 = vadd.f32 %v2000_v4, %v1999_v44  ;;  %v2046_v4 = vld [vmem:[%s4581_s8 + $0x10] sm:$0xff] }
 0x3b5   : > { %v2002_v31 = vmax.f32 %v2001_v33, 0.0 }
 0x3b7   : > { %v2011_v32 = vperm.slane %v2002_v31, 0 }
 0x3b9   : > { %v2019_v36 = vmul.f32 %v2011_v32, %v2010_v2  ;;  %v2018_v51 = vmul.f32 %v2011_v32, %v2009_v42  ;;  %v2017_v16 = vmul.f32 %v2011_v32, %v2008_v6  ;;  %v2016_v53 = vmul.f32 %v2011_v32, %v2007_v55 }
 0x3ba   : > { %v2015_v48 = vmul.f32 %v2011_v32, %v2006_v15  ;;  %v2014_v7 = vmul.f32 %v2011_v32, %v2005_v56  ;;  %v2013_v39 = vmul.f32 %v2011_v32, %v2004_v5  ;;  %v2012_v59 = vmul.f32 %v2011_v32, %v2003_v54  ;;  %v2045_v56 = vld [vmem:[%s4581_s8 + $0x8] sm:$0xff] }
 0x3bb   : > { %v2041_v41 = vsel %vm472_vm0, %v2019_v36, 0.0  ;;  %v2038_v13 = vsel %vm472_vm0, %v2018_v51, 0.0  ;;  %v2035_v21 = vsel %vm472_vm0, %v2017_v16, 0.0  ;;  %v2032_v9 = vsel %vm472_vm0, %v2016_v53, 0.0  ;;  %v2044_v53 = vld [vmem:[%s4581_s8] sm:$0xff] }
 0x3bc   : > { %2042 = vadd.xlane.f32.xlu1 %v2041_v41  ;;  %2039 = vadd.xlane.f32.xlu2 %v2038_v13  ;;  %v2029_v62 = vsel %vm472_vm0, %v2015_v48, 0.0  ;;  %v2026_v30 = vsel %vm472_vm0, %v2014_v7, 0.0  ;;  %v2023_v3 = vsel %vm472_vm0, %v2013_v39, 0.0  ;;  %v2020_v10 = vsel %vm472_vm0, %v2012_v59, 0.0 }
 0x3bd   : > { %2036 = vadd.xlane.f32.xlu0 %v2035_v21 }
 0x3c4   : > { %2033 = vadd.xlane.f32.xlu1 %v2032_v9  ;;  %2030 = vadd.xlane.f32.xlu2 %v2029_v62 }
 0x3c5   : > { %2027 = vadd.xlane.f32.xlu0 %v2026_v30 }
 0x3cc   : > { %2024 = vadd.xlane.f32.xlu1 %v2023_v3  ;;  %2021 = vadd.xlane.f32.xlu2 %v2020_v10 }
 0x42f   : > { %v2043_v22 = vpop.xlane.xlu1 %2042  ;;  %v2040_v8 = vpop.xlane.xlu2 %2039 }
 0x430   : > { %v2059_v20 = vadd.f32 %v2051_v0, %v2043_v22  ;;  %v2058_v63 = vadd.f32 %v2050_v26, %v2040_v8  ;;  %v2037_v29 = vpop.xlane.xlu0 %2036 }
 0x431   : > { %v2057_v50 = vadd.f32 %v2049_v57, %v2037_v29 }
 0x432   : > { %v2067_v49 = vmul.f32 0.16666667, %v2059_v20  ;;  %v2066_v19 = vmul.f32 0.16666667, %v2058_v63 }
 0x433   : > { %v2065_v47 = vmul.f32 0.16666667, %v2057_v50  ;;  %v2150_v50 = vld [vmem:[%s4583_s10] sm:$0xff] }
 0x434   : > { %v2075_v52 = vadd.f32 0.5, %v2067_v49  ;;  %v2074_v12 = vadd.f32 0.5, %v2066_v19  ;;  %v2151_v49 = vld [vmem:[%s4583_s10 + $0x8] sm:$0xff] }
 0x435   : > { %v2073_v38 = vadd.f32 0.5, %v2065_v47 }
 0x436   : > { %v2083_v40 = vmax.f32 %v2075_v52, 0.0  ;;  %v2082_v28 = vmax.f32 %v2074_v12, 0.0 }
 0x437   : > { %v2081_v44 = vmax.f32 %v2073_v38, 0.0  ;;  %v2034_v33 = vpop.xlane.xlu1 %2033  ;;  %v2031_v31 = vpop.xlane.xlu2 %2030 }
 0x438   : > { %v2091_v2 = vmin.f32 %v2083_v40, 1.0  ;;  %v2090_v42 = vmin.f32 %v2082_v28, 1.0  ;;  %v2056_v6 = vadd.f32 %v2048_v25, %v2034_v33  ;;  %v2055_v32 = vadd.f32 %v2047_v61, %v2031_v31  ;;  %v2028_v36 = vpop.xlane.xlu0 %2027 }
 0x439   : > { %v2089_v51 = vmin.f32 %v2081_v44, 1.0  ;;  %v2054_v16 = vadd.f32 %v2046_v4, %v2028_v36  ;;  %v2460_v36 = vld [vmem:[%s2676_s16 + $0x8] sm:$0xff] }
 0x43a   : > { %v2064_v41 = vmul.f32 0.16666667, %v2056_v6  ;;  %v2063_v13 = vmul.f32 0.16666667, %v2055_v32  ;;  %2129 = vperm.xlu0 %2442, %v2091_v2   ;;  %2124 = vperm.xlu1 %2448, %v2090_v42   ;;  %v2459_v6 = vld [vmem:[%s2676_s16] sm:$0xff] }
 0x43b   : > { %v2062_v21 = vmul.f32 0.16666667, %v2054_v16  ;;  %2119 = vperm.xlu2 %2447, %v2089_v51  }
 0x43c   : > { %v2072_v55 = vadd.f32 0.5, %v2064_v41  ;;  %v2071_v15 = vadd.f32 0.5, %v2063_v13 }
 0x43d   : > { %v2070_v9 = vadd.f32 0.5, %v2062_v21 }
 0x43e   : > { %v2080_v48 = vmax.f32 %v2072_v55, 0.0  ;;  %v2079_v7 = vmax.f32 %v2071_v15, 0.0  ;;  %v2461_v15 = vld [vmem:[%s2676_s16 + $0x10] sm:$0xff] }
 0x43f   : > { %v2025_v62 = vpop.xlane.xlu1 %2024  ;;  %v2022_v30 = vpop.xlane.xlu2 %2021  ;;  %v2078_v0 = vmax.f32 %v2070_v9, 0.0 }
 0x440   : > { %v2088_v5 = vmin.f32 %v2080_v48, 1.0  ;;  %v2087_v54 = vmin.f32 %v2079_v7, 1.0  ;;  %v2053_v39 = vadd.f32 %v2045_v56, %v2025_v62  ;;  %v2052_v59 = vadd.f32 %v2044_v53, %v2022_v30  ;;  %v2462_v53 = vld [vmem:[%s2676_s16 + $0x18] sm:$0xff] }
 0x441   : > { %v2086_v20 = vmin.f32 %v2078_v0, 1.0 }
 0x442   : > { %v2061_v3 = vmul.f32 0.16666667, %v2053_v39  ;;  %v2060_v10 = vmul.f32 0.16666667, %v2052_v59  ;;  %2114 = vperm.xlu0 %2442, %v2088_v5   ;;  %2109 = vperm.xlu1 %2448, %v2087_v54  }
 0x444   : > { %v2069_v26 = vadd.f32 0.5, %v2061_v3  ;;  %v2068_v57 = vadd.f32 0.5, %v2060_v10 }
 0x446   : > { %v2077_v22 = vmax.f32 %v2069_v26, 0.0  ;;  %v2076_v8 = vmax.f32 %v2068_v57, 0.0 }
 0x448   : > { %v2085_v63 = vmin.f32 %v2077_v22, 1.0  ;;  %v2084_v29 = vmin.f32 %v2076_v8, 1.0 }
 0x44a   : > { %2104 = vperm.xlu0 %2442, %v2086_v20   ;;  %2099 = vperm.xlu2 %2447, %v2085_v63  }
 0x44b   : > { %2094 = vperm.xlu1 %2448, %v2084_v29  }
 0x452   : > { %2154 = vperm.xlu0 %2442, %v2150_v50   ;;  %2159 = vperm.xlu2 %2447, %v2151_v49  }
 0x495   : > { %v2120_v38 = vpop.permute.xlu2 %2119 }
 0x496   : > { %v2142_v40 = vmul.f32 %v2120_v38, %v4373_v24  ;;  %v2143_v28 = vmul.f32 %v2120_v38, %v4375_v23 }
 0x4a4   : > { %v2100_v33 = vpop.permute.xlu2 %2099 }
 0x4ac   : > { %v2130_v19 = vpop.permute.xlu0 %2129  ;;  %v2125_v47 = vpop.permute.xlu1 %2124 }
 0x4ad   : > { %v2146_v52 = vmul.f32 %v2130_v19, %v4401_v43  ;;  %v2147_v12 = vmul.f32 %v2130_v19, %v4403_v35  ;;  %v2144_v25 = vmul.f32 %v2125_v47, %v4407_v45  ;;  %v2145_v61 = vmul.f32 %v2125_v47, %v4409_v1  ;;  %v2160_v16 = vpop.permute.xlu2 %2159 }
 0x4af   : > { %2177 = vmatpush.msrb.mxu2 %v2146_v52  ;;  %2200 = vmatpush.msrb.mxu3 %v2147_v12 }
 0x4b1   : > { %2178 = vmatpush.msrb.mxu2 %v2144_v25  ;;  %2201 = vmatpush.msrb.mxu3 %v2145_v61 }
 0x4b3   : > { %2179 = vmatpush.msrb.mxu2 %v2142_v40  ;;  %2202 = vmatpush.msrb.mxu3 %v2143_v28 }
 0x4b4   : > { %v2115_v4 = vpop.permute.xlu0 %2114  ;;  %v2110_v44 = vpop.permute.xlu1 %2109 }
 0x4b5   : > { %v2140_v43 = vmul.f32 %v2115_v4, %v4345_v18  ;;  %v2141_v35 = vmul.f32 %v2115_v4, %v4347_v34  ;;  %v2138_v45 = vmul.f32 %v2110_v44, %v4377_v14  ;;  %v2139_v1 = vmul.f32 %v2110_v44, %v4379_v11 }
 0x4b6   : > { %v2134_v18 = vmul.f32 %v2100_v33, %v4252_v60  ;;  %v2135_v34 = vmul.f32 %v2100_v33, %v4254_v46  ;;  %v2149_v60 = vld [vmem:[%s4582_s9 + $0x8] sm:$0xff] }
 0x4b7   : > { %2180 = vmatpush.msrb.mxu2 %v2140_v43  ;;  %2203 = vmatpush.msrb.mxu3 %v2141_v35 }
 0x4b9   : > { %2181 = vmatpush.msrb.mxu2 %v2138_v45  ;;  %2204 = vmatpush.msrb.mxu3 %v2139_v1 }
 0x4bc   : > { %v2105_v24 = vpop.permute.xlu0 %2104 }
 0x4bd   : > { %v2136_v23 = vmul.f32 %v2105_v24, %v4359_v17  ;;  %v2137_v31 = vmul.f32 %v2105_v24, %v4361_v37  ;;  %v2095_v2 = vpop.permute.xlu1 %2094  ;;  %v2148_v17 = vld [vmem:[%s4582_s9] sm:$0xff] }
 0x4be   : > { %v2132_v14 = vmul.f32 %v2095_v2, %v4337_v27  ;;  %v2133_v11 = vmul.f32 %v2095_v2, %v4339_v58 }
 0x4bf   : > { %2182 = vmatpush.msrb.mxu2 %v2136_v23  ;;  %2205 = vmatpush.msrb.mxu3 %v2137_v31 }
 0x4c1   : > { %2183 = vmatpush.msrb.mxu2 %v2134_v18  ;;  %2206 = vmatpush.msrb.mxu3 %v2135_v34 }
 0x4c3   : > { %2184 = vmatpush.msrb.mxu2 %v2132_v14  ;;  %2207 = vmatpush.msrb.mxu3 %v2133_v11 }
 0x4c4   : > { %2331 = vmatmul.msk.f32.vlgmr.msrb.gmra.mxu2 %vm2162_vm10, %v2148_v17  ;;  %2333 = vmatmul.msk.f32.vlgmr.msrb.gmra.mxu3 %vm2162_vm10, %v2148_v17  ;;  %v2155_v46 = vpop.permute.xlu0 %2154 }
 0x4cc   : > { %2332 = vmatmul.msk.f32.gmra.mxu2 %vm2162_vm10, %v2149_v60  ;;  %2334 = vmatmul.msk.f32.gmra.mxu3 %vm2162_vm10, %v2149_v60 }
 0x547   : > { %v2186_v27 = vpop.f32.mrf.mxu2  ;;  %v2209_v58 = vpop.f32.mrf.mxu3 }
 0x548   : > { %v2187_v37 = vadd.f32 %v2186_v27, %v2155_v46  ;;  %v2210_v42 = vadd.f32 %v2209_v58, %v2155_v46 }
 0x54a   : > { %v2215_v32 = vadd.f32 %v2459_v6, %v2187_v37  ;;  %v2216_v51 = vadd.f32 %v2460_v36, %v2210_v42 }
 0x54c   : > { %2219 = vst [vmem:[%s406_s18] sm:$0xff] %v2215_v32 }
 0x54d   : > { %2220 = vst [vmem:[%s406_s18 + $0x8] sm:$0xff] %v2216_v51 }
 0x54f   : > { %v2189_v41 = vpop.f32.mrf.mxu2  ;;  %v2212_v13 = vpop.f32.mrf.mxu3 }
 0x550   : > { %v2190_v21 = vadd.f32 %v2189_v41, %v2160_v16  ;;  %v2213_v55 = vadd.f32 %v2212_v13, %v2160_v16 }
 0x552   : > { %v2217_v56 = vadd.f32 %v2461_v15, %v2190_v21  ;;  %v2218_v48 = vadd.f32 %v2462_v53, %v2213_v55 }
 0x554   : > { %2221 = vst [vmem:[%s406_s18 + $0x10] sm:$0xff] %v2217_v56 }
 0x555   : > { %2222 = vst [vmem:[%s406_s18 + $0x18] sm:$0xff] %v2218_v48 }
 0x556   : > { %2490 = shalt.err (!%p2487_p3)
}
 0x557   : > { %s2545_s16 = smov 256   ;;  %s4924_s0 = smov 16  }
 0x558   : > { %2346 = dma.vmem_to_hbm [thread:$0]  (%p2649_p5), %s2237_s15, 512, %s2239_s28, %s2224_s25, %s2545_s16, %s2545_s16, %s4924_s0  }
 0x559 PF: > { %p2352_p4 = scmp.ge.s32.totalorder %s2525_s24, 2  ;;  %s2253_s18 = sand.u32 1, %s2513_s21  }
 0x55a   : > { %s2254_s1 = scalar_lea.sflag [#allocation3], %s2253_s18 }
 0x55b   : > { %p2349_p7 = pnand %p2352_p4, %p2653_p6 }
 0x55d   : > { %p2350_p8 = pneg %p2349_p7 }
 0x55f   : > { %2508 = dma.done.wait (%p2350_p8), %s2254_s1, 512  }
 0x560   : > { %2510 = vsyncadd (%p2350_p8), %s2254_s1, 4294966784  ;;  %p22_p9 = scmp.ge.s32.totalorder %s2636_s27, 4   ;;  %s4925_s21 = smov %s2517_s22 }
 0x561   : > { %s4926_s22 = smov %s2521_s23  ;;  %s4927_s23 = smov %s2647_s30 }
 0x562   : > { %s4928_s24 = smov %s2636_s27  ;;  %24 = sbr.rel (!%p22_p9) target bundleno = 7 (0x7), region = 110 }
 0x567   :  { %2260 = vsyncpa [#allocation3], 1 }
 0x568   :  { %2262 = vsyncpa [#allocation3 + $0x1], 1 }

</bundles_post_ra>
